<compile_context>
chip_gen: v7x
topology: tpu7x:2x2x1
jax: 0.10.0
libtpu: 0.0.40
codegen_flags: <defaults>
</compile_context>

<pallas_src>
import math
import functools

import jax
import jax.numpy as jnp
from jax.experimental import pallas as pl
from jax.experimental.pallas import tpu as pltpu


def _layer_norm(v, gamma, beta, eps=1e-5):
    mu = jnp.mean(v, axis=-1, keepdims=True)
    var = jnp.mean((v - mu) ** 2, axis=-1, keepdims=True)
    return (v - mu) * jax.lax.rsqrt(var + eps) * gamma + beta


def _block_kernel(x_ref,
                  ln1g_ref, ln1b_ref,
                  wqkv_ref, bqkv_ref,
                  wp_ref, bp_ref,
                  ln2g_ref, ln2b_ref,
                  w1_ref, b1_ref, w2_ref, b2_ref,
                  out_ref,
                  qh_ref, kh_ref, vh_ref,
                  *, n_head: int, q_tile: int):
    qi = pl.program_id(1)
    _, t, c = x_ref.shape
    hd = c // n_head

    # ---- once per batch: LN over full slab + fused QKV matmul + head split ----
    @pl.when(qi == 0)
    def _():
        x_f = x_ref[0]                                            # (T, C) fp32
        h = _layer_norm(x_f, ln1g_ref[0], ln1b_ref[0]).astype(jnp.bfloat16)
        qkv = jnp.dot(h, wqkv_ref[...],
                      preferred_element_type=jnp.float32) + bqkv_ref[0]   # (T, 3C)
        q3 = qkv[:, :c].reshape(t, n_head, hd)
        k3 = qkv[:, c:2 * c].reshape(t, n_head, hd)
        v3 = qkv[:, 2 * c:].reshape(t, n_head, hd)
        # store head-batched (H, T, hd) bf16; transposes run once per batch
        qh_ref[...] = jnp.transpose(q3, (1, 0, 2)).astype(jnp.bfloat16)
        kh_ref[...] = jnp.transpose(k3, (1, 0, 2)).astype(jnp.bfloat16)
        vh_ref[...] = jnp.transpose(v3, (1, 0, 2)).astype(jnp.bfloat16)

    # ---- per query tile ----
    row0 = pl.multiple_of(qi * q_tile, q_tile)
    x_q = x_ref[0, pl.ds(row0, q_tile), :]                        # (tq, C) fp32
    qh = qh_ref[:, pl.ds(row0, q_tile), :]                        # (H, tq, hd) bf16

    # head-batched attention, softmax statistics in fp32
    att = jnp.einsum("hqd,hkd->hqk", qh, kh_ref[...],
                     preferred_element_type=jnp.float32)          # (H, tq, T)
    att = jnp.exp(att - jnp.max(att, axis=-1, keepdims=True))
    denom = jnp.sum(att, axis=-1, keepdims=True)                  # (H, tq, 1)

    yh = jnp.einsum("hqk,hkd->hqd", att.astype(jnp.bfloat16), vh_ref[...],
                    preferred_element_type=jnp.float32)           # (H, tq, hd)
    # flash-style: normalize AFTER the PV matmul (small tensor, EUP reciprocal)
    yh = yh * pl.reciprocal(denom, approx=True)
    y = jnp.transpose(yh, (1, 0, 2)).reshape(q_tile, c).astype(jnp.bfloat16)

    y = jnp.dot(y, wp_ref[...], preferred_element_type=jnp.float32) + bp_ref[0]
    x1 = x_q + y                                                  # residual 1 (fp32)

    # ---- MLP branch ----
    h2 = _layer_norm(x1, ln2g_ref[0], ln2b_ref[0]).astype(jnp.bfloat16)
    m = jnp.dot(h2, w1_ref[...], preferred_element_type=jnp.float32) + b1_ref[0]
    m = jnp.maximum(m, 0.0).astype(jnp.bfloat16)
    m = jnp.dot(m, w2_ref[...], preferred_element_type=jnp.float32) + b2_ref[0]

    out_ref[0] = x1 + m                                           # residual 2


def block_forward(x, params, n_head, *, q_tile=None):
    """x: (B, T, C) float32; params: dict of fp32 weights with (in, out) layout."""
    b, t, c = x.shape
    assert c % n_head == 0, "n_embd must be divisible by n_head"
    hd = c // n_head

    if q_tile is None:
        # Larger tiles amortize per-step overhead and feed the 256-wide MXU on
        # v6e/v7x; bounded so the (H, tq, T) scores stay comfortably in VMEM.
        if t <= 256:
            q_tile = t
        elif t % 256 == 0:
            q_tile = 256
        else:
            q_tile = 128
    assert t % q_tile == 0, "seq length must be divisible by the query tile"
    assert q_tile % 8 == 0 or q_tile == t, "query tile should be a multiple of 8"
    nq = t // q_tile

    # Fuse Q/K/V into one (C, 3C) projection (done once per batch in-kernel)
    # and fold 1/sqrt(hd) into the Q columns + bias here, once.
    scale = 1.0 / math.sqrt(hd)
    wqkv = jnp.concatenate(
        [params["wq"] * scale, params["wk"], params["wv"]], axis=1
    ).astype(jnp.bfloat16)                                        # (C, 3C) bf16
    bqkv = jnp.concatenate(
        [params["bq"] * scale, params["bk"], params["bv"]], axis=1)  # (1, 3C) fp32

    bf16 = lambda w: w.astype(jnp.bfloat16)
    ordered = [
        params["ln1_g"], params["ln1_b"],
        wqkv, bqkv,
        bf16(params["wp"]), params["bp"],
        params["ln2_g"], params["ln2_b"],
        bf16(params["w1"]), params["b1"],
        bf16(params["w2"]), params["b2"],
    ]

    def const_spec(arr):
        n = arr.ndim
        return pl.BlockSpec(arr.shape, lambda bi, qi, n=n: (0,) * n)

    param_specs = [const_spec(a) for a in ordered]

    kernel = functools.partial(_block_kernel, n_head=n_head, q_tile=q_tile)
    return pl.pallas_call(
        kernel,
        out_shape=jax.ShapeDtypeStruct((b, t, c), jnp.float32),
        grid_spec=pltpu.PrefetchScalarGridSpec(
            num_scalar_prefetch=0,
            grid=(b, nq),
            in_specs=[pl.BlockSpec((1, t, c), lambda bi, qi: (bi, 0, 0))]
                     + param_specs,
            out_specs=pl.BlockSpec((1, q_tile, c), lambda bi, qi: (bi, qi, 0)),
            scratch_shapes=[pltpu.VMEM((n_head, t, hd), jnp.bfloat16),   # Qh
                            pltpu.VMEM((n_head, t, hd), jnp.bfloat16),   # Kh
                            pltpu.VMEM((n_head, t, hd), jnp.bfloat16)],  # Vh
        ),
        compiler_params=pltpu.CompilerParams(
            # batch axis shards across v7x's two TensorCores; the query-tile
            # axis carries the per-batch QKV scratch so it stays sequential.
            dimension_semantics=("parallel", "arbitrary"),
            # leave headroom below v7x's 64 MiB physical VMEM per core
            vmem_limit_bytes=48 * 1024 * 1024),
    )(x, *ordered)


# ---------------- pure-JAX fp32 reference (for correctness check) ----------------
def block_reference(x, params, n_head):
    b, t, c = x.shape
    hd = c // n_head

    def ln(v, g, b_):
        mu = jnp.mean(v, axis=-1, keepdims=True)
        var = jnp.mean((v - mu) ** 2, axis=-1, keepdims=True)
        return (v - mu) / jnp.sqrt(var + 1e-5) * g[0] + b_[0]

    h = ln(x, params["ln1_g"], params["ln1_b"])
    q = h @ params["wq"] + params["bq"][0]
    k = h @ params["wk"] + params["bk"][0]
    v = h @ params["wv"] + params["bv"][0]
    q = q.reshape(b, t, n_head, hd).transpose(0, 2, 1, 3)
    k = k.reshape(b, t, n_head, hd).transpose(0, 2, 1, 3)
    v = v.reshape(b, t, n_head, hd).transpose(0, 2, 1, 3)
    att = jnp.einsum("bhqd,bhkd->bhqk", q, k) / math.sqrt(hd)
    att = jax.nn.softmax(att, axis=-1)
    y = jnp.einsum("bhqk,bhkd->bhqd", att, v)
    y = y.transpose(0, 2, 1, 3).reshape(b, t, c)
    y = y @ params["wp"] + params["bp"][0]
    x1 = x + y
    h2 = ln(x1, params["ln2_g"], params["ln2_b"])
    m = jnp.maximum(h2 @ params["w1"] + params["b1"][0], 0.0)
    m = m @ params["w2"] + params["b2"][0]
    return x1 + m


def init_params(key, n_embd, n_head, block_exp):
    hidden = block_exp * n_embd
    keys = jax.random.split(key, 8)
    s = 1.0 / math.sqrt(n_embd)
    sh = 1.0 / math.sqrt(hidden)
    return {
        "ln1_g": jnp.ones((1, n_embd), jnp.float32),
        "ln1_b": jnp.zeros((1, n_embd), jnp.float32),
        "ln2_g": jnp.ones((1, n_embd), jnp.float32),
        "ln2_b": jnp.zeros((1, n_embd), jnp.float32),
        # linear weights stored (in, out) so the kernel does x @ W
        "wq": jax.random.uniform(keys[0], (n_embd, n_embd), jnp.float32, -s, s),
        "wk": jax.random.uniform(keys[1], (n_embd, n_embd), jnp.float32, -s, s),
        "wv": jax.random.uniform(keys[2], (n_embd, n_embd), jnp.float32, -s, s),
        "wp": jax.random.uniform(keys[3], (n_embd, n_embd), jnp.float32, -s, s),
        "w1": jax.random.uniform(keys[4], (n_embd, hidden), jnp.float32, -s, s),
        "w2": jax.random.uniform(keys[5], (hidden, n_embd), jnp.float32, -sh, sh),
        "bq": jax.random.uniform(keys[6], (1, n_embd), jnp.float32, -s, s),
        "bk": jnp.zeros((1, n_embd), jnp.float32),
        "bv": jax.random.uniform(keys[7], (1, n_embd), jnp.float32, -s, s),
        "bp": jnp.zeros((1, n_embd), jnp.float32),
        "b1": jnp.zeros((1, hidden), jnp.float32),
        "b2": jnp.zeros((1, n_embd), jnp.float32),
    }


if __name__ == "__main__":
    # Small but lane-dense demo shapes: C multiple of 128, tiles multiples of 8.
    B, T, C = 2, 32, 128
    N_HEAD, BLOCK_EXP = 4, 4

    key = jax.random.PRNGKey(0)
    kx, kp = jax.random.split(key)
    x = jax.random.normal(kx, (B, T, C), dtype=jnp.float32)
    params = init_params(kp, C, N_HEAD, BLOCK_EXP)

    ref = block_reference(x, params, N_HEAD)

    # (a) default: single q-tile per batch (fused-QKV, one grid step per batch)
    out1 = jax.block_until_ready(block_forward(x, params, N_HEAD))
    # (b) multi-tile path: per-batch QKV scratch reused across 2 query tiles
    out2 = jax.block_until_ready(block_forward(x, params, N_HEAD, q_tile=16))

    for out in (out1, out2):
        assert out.shape == (B, T, C)
        err = float(jnp.max(jnp.abs(out - ref)))
        # bf16 matmul operands + approx reciprocal -> looser tolerance than fp32
        assert jnp.allclose(out, ref, rtol=5e-2, atol=5e-2), (
            f"mismatch vs reference (max |err| = {err:.4e})")

    print("KERNEL_OK")
</pallas_src>

<mosaic_0001>
module attributes {stable_mosaic.version = 11 : i64} {
  func.func @_block_kernel(%arg0: i32, %arg1: i32, %arg2: memref<1x32x128xf32, #tpu.memory_space<vmem>>, %arg3: memref<1x128xf32, #tpu.memory_space<vmem>>, %arg4: memref<1x128xf32, #tpu.memory_space<vmem>>, %arg5: memref<128x384xbf16, #tpu.memory_space<vmem>>, %arg6: memref<1x384xf32, #tpu.memory_space<vmem>>, %arg7: memref<128x128xbf16, #tpu.memory_space<vmem>>, %arg8: memref<1x128xf32, #tpu.memory_space<vmem>>, %arg9: memref<1x128xf32, #tpu.memory_space<vmem>>, %arg10: memref<1x128xf32, #tpu.memory_space<vmem>>, %arg11: memref<128x512xbf16, #tpu.memory_space<vmem>>, %arg12: memref<1x512xf32, #tpu.memory_space<vmem>>, %arg13: memref<512x128xbf16, #tpu.memory_space<vmem>>, %arg14: memref<1x128xf32, #tpu.memory_space<vmem>>, %arg15: memref<1x32x128xf32, #tpu.memory_space<vmem>>, %arg16: memref<4x32x32xbf16, #tpu.memory_space<vmem>>, %arg17: memref<4x32x32xbf16, #tpu.memory_space<vmem>>, %arg18: memref<4x32x32xbf16, #tpu.memory_space<vmem>>) attributes {dimension_semantics = [#tpu.dimension_semantics<parallel>, #tpu.dimension_semantics<arbitrary>], iteration_bounds = array<i64: 2, 1>, scalar_prefetch = 0 : i64, scratch_operands = 3 : i64, tpu.core_type = #tpu.core_type<tc>, window_params = [{transform_indices = @transform_0, window_bounds = array<i64: 1, 32, 128>}, {pipeline_mode = #tpu.pipeline_mode<synchronous>, transform_indices = @transform_1, window_bounds = array<i64: 1, 128>}, {pipeline_mode = #tpu.pipeline_mode<synchronous>, transform_indices = @transform_2, window_bounds = array<i64: 1, 128>}, {pipeline_mode = #tpu.pipeline_mode<synchronous>, transform_indices = @transform_3, window_bounds = array<i64: 128, 384>}, {pipeline_mode = #tpu.pipeline_mode<synchronous>, transform_indices = @transform_4, window_bounds = array<i64: 1, 384>}, {pipeline_mode = #tpu.pipeline_mode<synchronous>, transform_indices = @transform_5, window_bounds = array<i64: 128, 128>}, {pipeline_mode = #tpu.pipeline_mode<synchronous>, transform_indices = @transform_6, window_bounds = array<i64: 1, 128>}, {pipeline_mode = #tpu.pipeline_mode<synchronous>, transform_indices = @transform_7, window_bounds = array<i64: 1, 128>}, {pipeline_mode = #tpu.pipeline_mode<synchronous>, transform_indices = @transform_8, window_bounds = array<i64: 1, 128>}, {pipeline_mode = #tpu.pipeline_mode<synchronous>, transform_indices = @transform_9, window_bounds = array<i64: 128, 512>}, {pipeline_mode = #tpu.pipeline_mode<synchronous>, transform_indices = @transform_10, window_bounds = array<i64: 1, 512>}, {pipeline_mode = #tpu.pipeline_mode<synchronous>, transform_indices = @transform_11, window_bounds = array<i64: 512, 128>}, {pipeline_mode = #tpu.pipeline_mode<synchronous>, transform_indices = @transform_12, window_bounds = array<i64: 1, 128>}, {transform_indices = @transform_13, window_bounds = array<i64: 1, 32, 128>}]} {
    %c0_i32 = arith.constant 0 : i32
    %0 = arith.cmpi eq, %arg1, %c0_i32 : i32
    %1 = arith.extui %0 : i1 to i32
    %c0_i32_0 = arith.constant 0 : i32
    %2 = arith.cmpi ne, %1, %c0_i32_0 : i32
    scf.if %2 {
      %c0_41 = arith.constant 0 : index
      %c0_42 = arith.constant 0 : index
      %c0_43 = arith.constant 0 : index
      %86 = vector.load %arg2[%c0_41, %c0_42, %c0_43] : memref<1x32x128xf32, #tpu.memory_space<vmem>>, vector<1x32x128xf32>
      %87 = vector.shape_cast %86 : vector<1x32x128xf32> to vector<32x128xf32>
      %c0_44 = arith.constant 0 : index
      %c0_45 = arith.constant 0 : index
      %88 = vector.load %arg3[%c0_44, %c0_45] : memref<1x128xf32, #tpu.memory_space<vmem>>, vector<1x128xf32>
      %89 = vector.shape_cast %88 : vector<1x128xf32> to vector<128xf32>
      %c0_46 = arith.constant 0 : index
      %c0_47 = arith.constant 0 : index
      %90 = vector.load %arg4[%c0_46, %c0_47] : memref<1x128xf32, #tpu.memory_space<vmem>>, vector<1x128xf32>
      %91 = vector.shape_cast %90 : vector<1x128xf32> to vector<128xf32>
      %cst_48 = arith.constant dense<0.000000e+00> : vector<32xf32>
      %92 = vector.multi_reduction <add>, %87, %cst_48 [1] : vector<32x128xf32> to vector<32xf32>
      %93 = vector.shape_cast %92 : vector<32xf32> to vector<32x1xf32>
      %cst_49 = arith.constant 1.280000e+02 : f32
      %94 = vector.broadcast %cst_49 : f32 to vector<32x1xf32>
      %95 = arith.divf %93, %94 : vector<32x1xf32>
      %96 = vector.broadcast %95 : vector<32x1xf32> to vector<32x128xf32>
      %97 = arith.subf %87, %96 : vector<32x128xf32>
      %98 = arith.mulf %97, %97 : vector<32x128xf32>
      %cst_50 = arith.constant dense<0.000000e+00> : vector<32xf32>
      %99 = vector.multi_reduction <add>, %98, %cst_50 [1] : vector<32x128xf32> to vector<32xf32>
      %100 = vector.shape_cast %99 : vector<32xf32> to vector<32x1xf32>
      %cst_51 = arith.constant 1.280000e+02 : f32
      %101 = vector.broadcast %cst_51 : f32 to vector<32x1xf32>
      %102 = arith.divf %100, %101 : vector<32x1xf32>
      %103 = vector.broadcast %95 : vector<32x1xf32> to vector<32x128xf32>
      %104 = arith.subf %87, %103 : vector<32x128xf32>
      %cst_52 = arith.constant 9.99999974E-6 : f32
      %105 = vector.broadcast %cst_52 : f32 to vector<32x1xf32>
      %106 = arith.addf %102, %105 : vector<32x1xf32>
      %107 = math.rsqrt %106 : vector<32x1xf32>
      %108 = vector.broadcast %107 : vector<32x1xf32> to vector<32x128xf32>
      %109 = arith.mulf %104, %108 : vector<32x128xf32>
      %110 = vector.shape_cast %89 : vector<128xf32> to vector<1x128xf32>
      %111 = vector.broadcast %110 : vector<1x128xf32> to vector<32x128xf32>
      %112 = arith.mulf %109, %111 : vector<32x128xf32>
      %113 = vector.shape_cast %91 : vector<128xf32> to vector<1x128xf32>
      %114 = vector.broadcast %113 : vector<1x128xf32> to vector<32x128xf32>
      %115 = arith.addf %112, %114 : vector<32x128xf32>
      %116 = arith.truncf %115 : vector<32x128xf32> to vector<32x128xbf16>
      %c0_53 = arith.constant 0 : index
      %c0_54 = arith.constant 0 : index
      %117 = vector.load %arg5[%c0_53, %c0_54] : memref<128x384xbf16, #tpu.memory_space<vmem>>, vector<128x384xbf16>
      %cst_55 = arith.constant dense<0.000000e+00> : vector<32x384xf32>
      %118 = tpu.matmul %116, %117, %cst_55 {dimension_numbers = #tpu.dot_dimension_numbers<[1], [0], [0], [1], [0, 0, 1, 1], [], []>} : vector<32x128xbf16>, vector<128x384xbf16>, vector<32x384xf32> -> vector<32x384xf32>
      %c0_56 = arith.constant 0 : index
      %c0_57 = arith.constant 0 : index
      %119 = vector.load %arg6[%c0_56, %c0_57] : memref<1x384xf32, #tpu.memory_space<vmem>>, vector<1x384xf32>
      %120 = vector.shape_cast %119 : vector<1x384xf32> to vector<384xf32>
      %121 = vector.shape_cast %120 : vector<384xf32> to vector<1x384xf32>
      %122 = vector.broadcast %121 : vector<1x384xf32> to vector<32x384xf32>
      %123 = arith.addf %118, %122 : vector<32x384xf32>
      %124 = vector.extract_strided_slice %123 {offsets = [0, 0], sizes = [32, 128], strides = [1, 1]} : vector<32x384xf32> to vector<32x128xf32>
      %125 = vector.shape_cast %124 : vector<32x128xf32> to vector<32x4x32xf32>
      %126 = vector.extract_strided_slice %123 {offsets = [0, 128], sizes = [32, 128], strides = [1, 1]} : vector<32x384xf32> to vector<32x128xf32>
      %127 = vector.shape_cast %126 : vector<32x128xf32> to vector<32x4x32xf32>
      %128 = vector.extract_strided_slice %123 {offsets = [0, 256], sizes = [32, 128], strides = [1, 1]} : vector<32x384xf32> to vector<32x128xf32>
      %129 = vector.shape_cast %128 : vector<32x128xf32> to vector<32x4x32xf32>
      %130 = tpu.transpose %125, [1, 0, 2] : vector<32x4x32xf32> -> vector<4x32x32xf32>
      %131 = arith.truncf %130 : vector<4x32x32xf32> to vector<4x32x32xbf16>
      %c0_58 = arith.constant 0 : index
      %c0_59 = arith.constant 0 : index
      %c0_60 = arith.constant 0 : index
      %132 = vector.load %arg16[%c0_58, %c0_59, %c0_60] : memref<4x32x32xbf16, #tpu.memory_space<vmem>>, vector<4x32x32xbf16>
      tpu.vector_store %arg16[%c0_58, %c0_59, %c0_60], %131 {strides = array<i32>} : memref<4x32x32xbf16, #tpu.memory_space<vmem>>, vector<4x32x32xbf16>,
      %133 = tpu.transpose %127, [1, 0, 2] : vector<32x4x32xf32> -> vector<4x32x32xf32>
      %134 = arith.truncf %133 : vector<4x32x32xf32> to vector<4x32x32xbf16>
      %c0_61 = arith.constant 0 : index
      %c0_62 = arith.constant 0 : index
      %c0_63 = arith.constant 0 : index
      %135 = vector.load %arg17[%c0_61, %c0_62, %c0_63] : memref<4x32x32xbf16, #tpu.memory_space<vmem>>, vector<4x32x32xbf16>
      tpu.vector_store %arg17[%c0_61, %c0_62, %c0_63], %134 {strides = array<i32>} : memref<4x32x32xbf16, #tpu.memory_space<vmem>>, vector<4x32x32xbf16>,
      %136 = tpu.transpose %129, [1, 0, 2] : vector<32x4x32xf32> -> vector<4x32x32xf32>
      %137 = arith.truncf %136 : vector<4x32x32xf32> to vector<4x32x32xbf16>
      %c0_64 = arith.constant 0 : index
      %c0_65 = arith.constant 0 : index
      %c0_66 = arith.constant 0 : index
      %138 = vector.load %arg18[%c0_64, %c0_65, %c0_66] : memref<4x32x32xbf16, #tpu.memory_space<vmem>>, vector<4x32x32xbf16>
      tpu.vector_store %arg18[%c0_64, %c0_65, %c0_66], %137 {strides = array<i32>} : memref<4x32x32xbf16, #tpu.memory_space<vmem>>, vector<4x32x32xbf16>,
    } else {
    }
    %c32_i32 = arith.constant 32 : i32
    %3 = arith.muli %arg1, %c32_i32 : i32
    %4 = tpu.assume_multiple %3, 32 : i32
    %c0 = arith.constant 0 : index
    %5 = arith.index_cast %4 : i32 to index
    %c0_1 = arith.constant 0 : index
    %6 = vector.load %arg2[%c0, %5, %c0_1] : memref<1x32x128xf32, #tpu.memory_space<vmem>>, vector<1x32x128xf32>
    %7 = vector.shape_cast %6 : vector<1x32x128xf32> to vector<32x128xf32>
    %c0_2 = arith.constant 0 : index
    %8 = arith.index_cast %4 : i32 to index
    %c0_3 = arith.constant 0 : index
    %9 = vector.load %arg16[%c0_2, %8, %c0_3] : memref<4x32x32xbf16, #tpu.memory_space<vmem>>, vector<4x32x32xbf16>
    %c0_4 = arith.constant 0 : index
    %c0_5 = arith.constant 0 : index
    %c0_6 = arith.constant 0 : index
    %10 = vector.load %arg17[%c0_4, %c0_5, %c0_6] : memref<4x32x32xbf16, #tpu.memory_space<vmem>>, vector<4x32x32xbf16>
    "tpu.trace_start"() <{level = 10 : i32, message = "hqd,hkd->hqk"}> : () -> ()
    %cst = arith.constant dense<0.000000e+00> : vector<4x32x32xf32>
    %11 = tpu.matmul %9, %10, %cst {dimension_numbers = #tpu.dot_dimension_numbers<[2], [2], [1], [1], [0, 0, 0, 1, 1, 1], [0], [0]>} : vector<4x32x32xbf16>, vector<4x32x32xbf16>, vector<4x32x32xf32> -> vector<4x32x32xf32>
    "tpu.trace_stop"() : () -> ()
    %cst_7 = arith.constant dense<0xFF800000> : vector<4x32xf32>
    %12 = vector.multi_reduction <maximumf>, %11, %cst_7 [2] : vector<4x32x32xf32> to vector<4x32xf32>
    %13 = vector.shape_cast %12 : vector<4x32xf32> to vector<4x32x1xf32>
    %14 = vector.broadcast %13 : vector<4x32x1xf32> to vector<4x32x32xf32>
    %15 = arith.subf %11, %14 : vector<4x32x32xf32>
    %16 = math.exp %15 : vector<4x32x32xf32>
    %cst_8 = arith.constant dense<0.000000e+00> : vector<4x32xf32>
    %17 = vector.multi_reduction <add>, %16, %cst_8 [2] : vector<4x32x32xf32> to vector<4x32xf32>
    %18 = vector.shape_cast %17 : vector<4x32xf32> to vector<4x32x1xf32>
    %19 = arith.truncf %16 : vector<4x32x32xf32> to vector<4x32x32xbf16>
    %c0_9 = arith.constant 0 : index
    %c0_10 = arith.constant 0 : index
    %c0_11 = arith.constant 0 : index
    %20 = vector.load %arg18[%c0_9, %c0_10, %c0_11] : memref<4x32x32xbf16, #tpu.memory_space<vmem>>, vector<4x32x32xbf16>
    "tpu.trace_start"() <{level = 10 : i32, message = "hqk,hkd->hqd"}> : () -> ()
    %cst_12 = arith.constant dense<0.000000e+00> : vector<4x32x32xf32>
    %21 = tpu.matmul %19, %20, %cst_12 {dimension_numbers = #tpu.dot_dimension_numbers<[2], [1], [1], [2], [0, 0, 0, 1, 1, 2], [0], [0]>} : vector<4x32x32xbf16>, vector<4x32x32xbf16>, vector<4x32x32xf32> -> vector<4x32x32xf32>
    "tpu.trace_stop"() : () -> ()
    %22 = tpu.reciprocal %18 {approx = true} : vector<4x32x1xf32> -> vector<4x32x1xf32>
    %23 = vector.broadcast %22 : vector<4x32x1xf32> to vector<4x32x32xf32>
    %24 = arith.mulf %21, %23 : vector<4x32x32xf32>
    %25 = tpu.transpose %24, [1, 0, 2] : vector<4x32x32xf32> -> vector<32x4x32xf32>
    %26 = vector.shape_cast %25 : vector<32x4x32xf32> to vector<32x128xf32>
    %27 = arith.truncf %26 : vector<32x128xf32> to vector<32x128xbf16>
    %c0_13 = arith.constant 0 : index
    %c0_14 = arith.constant 0 : index
    %28 = vector.load %arg7[%c0_13, %c0_14] : memref<128x128xbf16, #tpu.memory_space<vmem>>, vector<128x128xbf16>
    %cst_15 = arith.constant dense<0.000000e+00> : vector<32x128xf32>
    %29 = tpu.matmul %27, %28, %cst_15 {dimension_numbers = #tpu.dot_dimension_numbers<[1], [0], [0], [1], [0, 0, 1, 1], [], []>} : vector<32x128xbf16>, vector<128x128xbf16>, vector<32x128xf32> -> vector<32x128xf32>
    %c0_16 = arith.constant 0 : index
    %c0_17 = arith.constant 0 : index
    %30 = vector.load %arg8[%c0_16, %c0_17] : memref<1x128xf32, #tpu.memory_space<vmem>>, vector<1x128xf32>
    %31 = vector.shape_cast %30 : vector<1x128xf32> to vector<128xf32>
    %32 = vector.shape_cast %31 : vector<128xf32> to vector<1x128xf32>
    %33 = vector.broadcast %32 : vector<1x128xf32> to vector<32x128xf32>
    %34 = arith.addf %29, %33 : vector<32x128xf32>
    %35 = arith.addf %7, %34 : vector<32x128xf32>
    %c0_18 = arith.constant 0 : index
    %c0_19 = arith.constant 0 : index
    %36 = vector.load %arg9[%c0_18, %c0_19] : memref<1x128xf32, #tpu.memory_space<vmem>>, vector<1x128xf32>
    %37 = vector.shape_cast %36 : vector<1x128xf32> to vector<128xf32>
    %c0_20 = arith.constant 0 : index
    %c0_21 = arith.constant 0 : index
    %38 = vector.load %arg10[%c0_20, %c0_21] : memref<1x128xf32, #tpu.memory_space<vmem>>, vector<1x128xf32>
    %39 = vector.shape_cast %38 : vector<1x128xf32> to vector<128xf32>
    %cst_22 = arith.constant dense<0.000000e+00> : vector<32xf32>
    %40 = vector.multi_reduction <add>, %35, %cst_22 [1] : vector<32x128xf32> to vector<32xf32>
    %41 = vector.shape_cast %40 : vector<32xf32> to vector<32x1xf32>
    %cst_23 = arith.constant 1.280000e+02 : f32
    %42 = vector.broadcast %cst_23 : f32 to vector<32x1xf32>
    %43 = arith.divf %41, %42 : vector<32x1xf32>
    %44 = vector.broadcast %43 : vector<32x1xf32> to vector<32x128xf32>
    %45 = arith.subf %35, %44 : vector<32x128xf32>
    %46 = arith.mulf %45, %45 : vector<32x128xf32>
    %cst_24 = arith.constant dense<0.000000e+00> : vector<32xf32>
    %47 = vector.multi_reduction <add>, %46, %cst_24 [1] : vector<32x128xf32> to vector<32xf32>
    %48 = vector.shape_cast %47 : vector<32xf32> to vector<32x1xf32>
    %cst_25 = arith.constant 1.280000e+02 : f32
    %49 = vector.broadcast %cst_25 : f32 to vector<32x1xf32>
    %50 = arith.divf %48, %49 : vector<32x1xf32>
    %51 = vector.broadcast %43 : vector<32x1xf32> to vector<32x128xf32>
    %52 = arith.subf %35, %51 : vector<32x128xf32>
    %cst_26 = arith.constant 9.99999974E-6 : f32
    %53 = vector.broadcast %cst_26 : f32 to vector<32x1xf32>
    %54 = arith.addf %50, %53 : vector<32x1xf32>
    %55 = math.rsqrt %54 : vector<32x1xf32>
    %56 = vector.broadcast %55 : vector<32x1xf32> to vector<32x128xf32>
    %57 = arith.mulf %52, %56 : vector<32x128xf32>
    %58 = vector.shape_cast %37 : vector<128xf32> to vector<1x128xf32>
    %59 = vector.broadcast %58 : vector<1x128xf32> to vector<32x128xf32>
    %60 = arith.mulf %57, %59 : vector<32x128xf32>
    %61 = vector.shape_cast %39 : vector<128xf32> to vector<1x128xf32>
    %62 = vector.broadcast %61 : vector<1x128xf32> to vector<32x128xf32>
    %63 = arith.addf %60, %62 : vector<32x128xf32>
    %64 = arith.truncf %63 : vector<32x128xf32> to vector<32x128xbf16>
    %c0_27 = arith.constant 0 : index
    %c0_28 = arith.constant 0 : index
    %65 = vector.load %arg11[%c0_27, %c0_28] : memref<128x512xbf16, #tpu.memory_space<vmem>>, vector<128x512xbf16>
    %cst_29 = arith.constant dense<0.000000e+00> : vector<32x512xf32>
    %66 = tpu.matmul %64, %65, %cst_29 {dimension_numbers = #tpu.dot_dimension_numbers<[1], [0], [0], [1], [0, 0, 1, 1], [], []>} : vector<32x128xbf16>, vector<128x512xbf16>, vector<32x512xf32> -> vector<32x512xf32>
    %c0_30 = arith.constant 0 : index
    %c0_31 = arith.constant 0 : index
    %67 = vector.load %arg12[%c0_30, %c0_31] : memref<1x512xf32, #tpu.memory_space<vmem>>, vector<1x512xf32>
    %68 = vector.shape_cast %67 : vector<1x512xf32> to vector<512xf32>
    %69 = vector.shape_cast %68 : vector<512xf32> to vector<1x512xf32>
    %70 = vector.broadcast %69 : vector<1x512xf32> to vector<32x512xf32>
    %71 = arith.addf %66, %70 : vector<32x512xf32>
    %cst_32 = arith.constant 0.000000e+00 : f32
    %72 = vector.broadcast %cst_32 : f32 to vector<32x512xf32>
    %73 = arith.maximumf %71, %72 : vector<32x512xf32>
    %74 = arith.truncf %73 : vector<32x512xf32> to vector<32x512xbf16>
    %c0_33 = arith.constant 0 : index
    %c0_34 = arith.constant 0 : index
    %75 = vector.load %arg13[%c0_33, %c0_34] : memref<512x128xbf16, #tpu.memory_space<vmem>>, vector<512x128xbf16>
    %cst_35 = arith.constant dense<0.000000e+00> : vector<32x128xf32>
    %76 = tpu.matmul %74, %75, %cst_35 {dimension_numbers = #tpu.dot_dimension_numbers<[1], [0], [0], [1], [0, 0, 1, 1], [], []>} : vector<32x512xbf16>, vector<512x128xbf16>, vector<32x128xf32> -> vector<32x128xf32>
    %c0_36 = arith.constant 0 : index
    %c0_37 = arith.constant 0 : index
    %77 = vector.load %arg14[%c0_36, %c0_37] : memref<1x128xf32, #tpu.memory_space<vmem>>, vector<1x128xf32>
    %78 = vector.shape_cast %77 : vector<1x128xf32> to vector<128xf32>
    %79 = vector.shape_cast %78 : vector<128xf32> to vector<1x128xf32>
    %80 = vector.broadcast %79 : vector<1x128xf32> to vector<32x128xf32>
    %81 = arith.addf %76, %80 : vector<32x128xf32>
    %82 = arith.addf %35, %81 : vector<32x128xf32>
    %c0_38 = arith.constant 0 : index
    %c0_39 = arith.constant 0 : index
    %c0_40 = arith.constant 0 : index
    %83 = vector.load %arg15[%c0_38, %c0_39, %c0_40] : memref<1x32x128xf32, #tpu.memory_space<vmem>>, vector<1x32x128xf32>
    %84 = vector.shape_cast %83 : vector<1x32x128xf32> to vector<32x128xf32>
    %85 = vector.shape_cast %82 : vector<32x128xf32> to vector<1x32x128xf32>
    tpu.vector_store %arg15[%c0_38, %c0_39, %c0_40], %85 {strides = array<i32>} : memref<1x32x128xf32, #tpu.memory_space<vmem>>, vector<1x32x128xf32>,
    return
  }
  func.func @transform_0(%arg0: i32, %arg1: i32) -> (i32, i32, i32) {
    %c0_i32 = arith.constant 0 : i32
    %c0_i32_0 = arith.constant 0 : i32
    %c0_i32_1 = arith.constant 0 : i32
    return %arg0, %c0_i32, %c0_i32_0 : i32, i32, i32
  }
  func.func @transform_1(%arg0: i32, %arg1: i32) -> (i32, i32) {
    %c0_i32 = arith.constant 0 : i32
    %c0_i32_0 = arith.constant 0 : i32
    %c0_i32_1 = arith.constant 0 : i32
    return %c0_i32, %c0_i32_0 : i32, i32
  }
  func.func @transform_2(%arg0: i32, %arg1: i32) -> (i32, i32) {
    %c0_i32 = arith.constant 0 : i32
    %c0_i32_0 = arith.constant 0 : i32
    %c0_i32_1 = arith.constant 0 : i32
    return %c0_i32, %c0_i32_0 : i32, i32
  }
  func.func @transform_3(%arg0: i32, %arg1: i32) -> (i32, i32) {
    %c0_i32 = arith.constant 0 : i32
    %c0_i32_0 = arith.constant 0 : i32
    %c0_i32_1 = arith.constant 0 : i32
    return %c0_i32, %c0_i32_0 : i32, i32
  }
  func.func @transform_4(%arg0: i32, %arg1: i32) -> (i32, i32) {
    %c0_i32 = arith.constant 0 : i32
    %c0_i32_0 = arith.constant 0 : i32
    %c0_i32_1 = arith.constant 0 : i32
    return %c0_i32, %c0_i32_0 : i32, i32
  }
  func.func @transform_5(%arg0: i32, %arg1: i32) -> (i32, i32) {
    %c0_i32 = arith.constant 0 : i32
    %c0_i32_0 = arith.constant 0 : i32
    %c0_i32_1 = arith.constant 0 : i32
    return %c0_i32, %c0_i32_0 : i32, i32
  }
  func.func @transform_6(%arg0: i32, %arg1: i32) -> (i32, i32) {
    %c0_i32 = arith.constant 0 : i32
    %c0_i32_0 = arith.constant 0 : i32
    %c0_i32_1 = arith.constant 0 : i32
    return %c0_i32, %c0_i32_0 : i32, i32
  }
  func.func @transform_7(%arg0: i32, %arg1: i32) -> (i32, i32) {
    %c0_i32 = arith.constant 0 : i32
    %c0_i32_0 = arith.constant 0 : i32
    %c0_i32_1 = arith.constant 0 : i32
    return %c0_i32, %c0_i32_0 : i32, i32
  }
  func.func @transform_8(%arg0: i32, %arg1: i32) -> (i32, i32) {
    %c0_i32 = arith.constant 0 : i32
    %c0_i32_0 = arith.constant 0 : i32
    %c0_i32_1 = arith.constant 0 : i32
    return %c0_i32, %c0_i32_0 : i32, i32
  }
  func.func @transform_9(%arg0: i32, %arg1: i32) -> (i32, i32) {
    %c0_i32 = arith.constant 0 : i32
    %c0_i32_0 = arith.constant 0 : i32
    %c0_i32_1 = arith.constant 0 : i32
    return %c0_i32, %c0_i32_0 : i32, i32
  }
  func.func @transform_10(%arg0: i32, %arg1: i32) -> (i32, i32) {
    %c0_i32 = arith.constant 0 : i32
    %c0_i32_0 = arith.constant 0 : i32
    %c0_i32_1 = arith.constant 0 : i32
    return %c0_i32, %c0_i32_0 : i32, i32
  }
  func.func @transform_11(%arg0: i32, %arg1: i32) -> (i32, i32) {
    %c0_i32 = arith.constant 0 : i32
    %c0_i32_0 = arith.constant 0 : i32
    %c0_i32_1 = arith.constant 0 : i32
    return %c0_i32, %c0_i32_0 : i32, i32
  }
  func.func @transform_12(%arg0: i32, %arg1: i32) -> (i32, i32) {
    %c0_i32 = arith.constant 0 : i32
    %c0_i32_0 = arith.constant 0 : i32
    %c0_i32_1 = arith.constant 0 : i32
    return %c0_i32, %c0_i32_0 : i32, i32
  }
  func.func @transform_13(%arg0: i32, %arg1: i32) -> (i32, i32, i32) {
    %c0_i32 = arith.constant 0 : i32
    %c0_i32_0 = arith.constant 0 : i32
    return %arg0, %arg1, %c0_i32 : i32, i32, i32
  }
}

</mosaic_0001>

<bundles_post_ra>
// kernel: tpu_custom_call.1
= control target key start
LH: loop header
LB: loop body
LE: loop exit
PB: predicated region body
PF: predicated region fallthrough
CT: control target
= control target key end

     0   :  { %s7360_s0 = inlined_call_operand.hbm [shape: f32[2,32,128], index: 0, kind: input, shape index: {}]   ;;  %s7361_s1 = inlined_call_operand.hbm [shape: f32[1,128], index: 1, kind: input, shape index: {}]   ;;  %s7362_s2 = inlined_call_operand.hbm [shape: f32[1,128], index: 2, kind: input, shape index: {}]   ;;  %s7363_s3 = inlined_call_operand.hbm [shape: bf16[128,384], index: 3, kind: input, shape index: {}]   ;;  %s7364_s4 = inlined_call_operand.vmem [shape: f32[1,384], index: 4, kind: input, shape index: {}]   ;;  %s7365_s5 = inlined_call_operand.hbm [shape: bf16[128,128], index: 5, kind: input, shape index: {}]   ;;  %s7366_s6 = inlined_call_operand.vmem [shape: f32[1,128], index: 6, kind: input, shape index: {}]   ;;  %s7367_s7 = inlined_call_operand.vmem [shape: f32[1,128], index: 7, kind: input, shape index: {}]   ;;  %s7368_s8 = inlined_call_operand.vmem [shape: f32[1,128], index: 8, kind: input, shape index: {}]   ;;  %s7369_s9 = inlined_call_operand.hbm [shape: bf16[128,512], index: 9, kind: input, shape index: {}]   ;;  %s7370_s10 = inlined_call_operand.vmem [shape: f32[1,512], index: 10, kind: input, shape index: {}]   ;;  %s7371_s11 = inlined_call_operand.hbm [shape: bf16[512,128], index: 11, kind: input, shape index: {}]   ;;  %s7372_s12 = inlined_call_operand.vmem [shape: f32[1,128], index: 12, kind: input, shape index: {}]   ;;  %s7373_s13 = inlined_call_operand.hbm [shape: f32[2,32,128], index: 13, kind: output, shape index: {}]  }
   0x1   :  { %7380 = sst [smem:[#allocation24_spill]] %s7361_s1 }
   0x2   :  { %7381 = sst [smem:[#allocation25_spill]] %s7363_s3 }
   0x3   :  { %7382 = sst [smem:[#allocation26_spill]] %s7366_s6 }
   0x4   :  { %7383 = sst [smem:[#allocation27_spill]] %s7367_s7 }
   0x5   :  { %7384 = sst [smem:[#allocation28_spill]] %s7368_s8 }
   0x6   :  { %7385 = sst [smem:[#allocation29_spill]] %s7370_s10 }
   0x7   :  { %7386 = sst [smem:[#allocation30_spill]] %s7372_s12 }
   0x8   :  { %7387 = sst [smem:[#allocation31_spill]] %s7373_s13 }
   0x9   :  { %18 = vsyncpa [#allocation6], 0 }
   0xa   :  { %20 = vsyncpa [#allocation6 + $0x1], 0 }
   0xb   :  { %21 = vsyncpa [#allocation9], 0 }
   0xc   :  { %22 = vsyncpa [#allocation12], 0 }
   0xd   :  { %23 = vsyncpa [#allocation15], 0 }
   0xe   :  { %24 = vsyncpa [#allocation7], 0 }
   0xf   :  { %26 = vsyncpa [#allocation7 + $0x1], 0  ;;  %s6229_s25 = smov 0   ;;  %s6231_s26 = smov 0  }
  0x10   :  { %s6233_s27 = smov 0   ;;  %s6235_s28 = smov 0  }
  0x11   :  { %s6237_s29 = smov 0   ;;  %s6239_s30 = smov 0  }
  0x12 LB: > { %7388 = sst [smem:[#allocation23_spill]] %s6125_s28  ;;  %s7374_s14 = sadd.s32 4294967295, %s6133_s30   ;;  %s6133_s30 = sphi %s6239_s30, %s32_s30   ;;  %s6129_s29 = sphi %s6237_s29, %s7419_s29   ;;  %s6125_s28 = sphi %s6235_s28, %s7418_s28   ;;  %s6121_s27 = sphi %s6233_s27, %s7417_s27   ;;  %s6117_s26 = sphi %s6231_s26, %s7416_s26   ;;  %s6113_s25 = sphi %s6229_s25, %s7415_s25  }
  0x13   : > { %p5075_p0 = scmp.ge.s32.totalorder %s6133_s30, 1  ;;  %p6263_p1 = scmp.eq.s32.totalorder %s7374_s14, 0 }
  0x14   : > { %p355_p2 = scmp.lt.s32.totalorder %s6133_s30, 3  ;;  %s6135_s17 = smov [#allocation8]  }
  0x15   : > { %s7389_s15 = scalar_select %p6263_p1, 1, 0 }
  0x16   : > { %p6268_p3 = pnand %p5075_p0, %p355_p2  ;;  %s368_s18 = sshll.u32 %s6135_s17, 4  ;;  %s369_s18 = int_to_ptr.vmem [resolvable:$true] %s368_s18 }
  0x17   : > { %s6136_s19 = smov [#allocation11]   ;;  %s6137_s22 = smov [#allocation14]  }
  0x18   : > { %s7390_s16 = scalar_select %p6268_p3, 1, 0 }
  0x19   : > { %p5500_p5 = pneg %p6268_p3  ;;  %s389_s20 = sshll.u32 %s6136_s19, 4  ;;  %s6281_s20 = int_to_ptr.vmem [resolvable:$true] %s389_s20 }
  0x1a   : > { %s6283_s23 = sshll.u32 %s6137_s22, 4  ;;  %s7392_s1 = sld [smem:[#allocation24_spill]]  ;;  %s428_s23 = int_to_ptr.vmem [resolvable:$true] %s6283_s23 }
  0x1b   : > { %p6277_p6 = pnand %p5500_p5, %p6263_p1 }
  0x1d   : > { %p6293_p8 = pneg %p6277_p6 }
  0x20   : > { %s5841_s17 = scalar_lea.hbm %s7392_s1, 16 }
  0x21   : > { %p5842_p7 = scmp.ne.s32.totalorder %s7392_s1, %s5841_s17  ;;  %p5848_p11 = scmp.lt.u32.totalorder %s5841_s17, %s7392_s1 }
  0x23   : > { %p5844_p9 = pnand %p6293_p8, %p5842_p7 }
  0x25   : > { %p5845_p10 = pneg %p5844_p9 }
  0x27   : > { %p5850_p12 = pnand %p5848_p11, %p5845_p10 }
  0x29   : > { %5853 = shalt.err (!%p5850_p12)
}
  0x2a   : > { %s5854_s14 = scalar_lea.vmem %s369_s18, 16  ;;  %s5861_s13 = scalar_lea.vmem %s369_s18, 32 }
  0x2b   : > { %p5855_p13 = scmp.ne.s32.totalorder %s369_s18, %s5854_s14  ;;  %p5862_p5 = scmp.lt.s32.totalorder %s369_s18, %s369_s18 }
  0x2c   : > { %p5863_p4 = scmp.lt.s32.totalorder %s5861_s13, %s5854_s14 }
  0x2d   : > { %p5857_p0 = pnand %p5855_p13, %p6293_p8 }
  0x2e   : > { %p5864_p3 = por %p5863_p4, %p5862_p5 }
  0x2f   : > { %p5858_p2 = pneg %p5857_p0 }
  0x31   : > { %p5865_p1 = pnand %p5864_p3, %p5858_p2 }
  0x33   : > { %5868 = shalt.err (!%p5865_p1)
}
  0x34   : > { %5503 = dma.hbm_to_vmem [thread:$0]  (!%p6277_p6), %s7392_s1, 16, %s369_s18, [#allocation9]  }
  0x35   : > { %s7394_s3 = sld [smem:[#allocation25_spill]] }
  0x3b   : > { %s5869_s22 = scalar_lea.hbm %s7394_s3, 3072 }
  0x3c   : > { %p5870_p7 = scmp.ne.s32.totalorder %s7394_s3, %s5869_s22  ;;  %p5876_p1 = scmp.lt.u32.totalorder %s5869_s22, %s7394_s3 }
  0x3e   : > { %p5872_p9 = pnand %p5870_p7, %p6293_p8 }
  0x40   : > { %p5873_p4 = pneg %p5872_p9 }
  0x42   : > { %p5878_p3 = pnand %p5876_p1, %p5873_p4 }
  0x44   : > { %5881 = shalt.err (!%p5878_p3)
}
  0x45   : > { %s5882_s18 = scalar_lea.vmem %s6281_s20, 3072  ;;  %p5890_p13 = scmp.lt.s32.totalorder %s6281_s20, %s6281_s20 }
  0x46   : > { %p5883_p10 = scmp.ne.s32.totalorder %s6281_s20, %s5882_s18  ;;  %p5891_p0 = scmp.lt.s32.totalorder %s5882_s18, %s5882_s18 }
  0x48   : > { %p5885_p11 = pnand %p5883_p10, %p6293_p8  ;;  %p5892_p2 = por %p5891_p0, %p5890_p13 }
  0x4a   : > { %p5886_p12 = pneg %p5885_p11 }
  0x4c   : > { %p5893_p5 = pnand %p5892_p2, %p5886_p12 }
  0x4e   : > { %5896 = shalt.err (!%p5893_p5)
}
  0x4f   : > { %s6138_s8 = smov 192   ;;  %s6139_s10 = smov 12  }
  0x50   : > { %5509 = dma.hbm_to_vmem [thread:$0]  (!%p6277_p6), %s7394_s3, 3072, %s6281_s20, [#allocation12], %s6138_s8, %s6138_s8, %s6139_s10  }
  0x51   : > { %s5897_s22 = scalar_lea.hbm %s7369_s9, 4096 }
  0x52   : > { %p5898_p7 = scmp.ne.s32.totalorder %s7369_s9, %s5897_s22  ;;  %p5904_p1 = scmp.lt.u32.totalorder %s5897_s22, %s7369_s9 }
  0x54   : > { %p5900_p9 = pnand %p5898_p7, %p6293_p8 }
  0x56   : > { %p5901_p4 = pneg %p5900_p9 }
  0x58   : > { %p5906_p3 = pnand %p5904_p1, %p5901_p4 }
  0x5a   : > { %5909 = shalt.err (!%p5906_p3)
}
  0x5b   : > { %s5910_s28 = scalar_lea.vmem %s428_s23, 4096  ;;  %p5918_p13 = scmp.lt.s32.totalorder %s428_s23, %s428_s23 }
  0x5c   : > { %p5911_p10 = scmp.ne.s32.totalorder %s428_s23, %s5910_s28  ;;  %p5919_p0 = scmp.lt.s32.totalorder %s5910_s28, %s5910_s28 }
  0x5e   : > { %p5913_p11 = pnand %p5911_p10, %p6293_p8  ;;  %p5920_p2 = por %p5919_p0, %p5918_p13 }
  0x60   : > { %p5914_p12 = pneg %p5913_p11 }
  0x62   : > { %p5921_p5 = pnand %p5920_p2, %p5914_p12 }
  0x64   : > { %5924 = shalt.err (!%p5921_p5)
}
  0x65   : > { %s6140_s20 = smov 256   ;;  %s6141_s8 = smov 16  }
  0x66   : > { %5515 = dma.hbm_to_vmem [thread:$0]  (!%p6277_p6), %s7369_s9, 4096, %s428_s23, [#allocation15], %s6140_s20, %s6140_s20, %s6141_s8  }
  0x67   : > { %s6142_s24 = smov [#allocation10]   ;;  %s6143_s17 = smov [#allocation13]  }
  0x68   : > { %s379_s12 = sshll.u32 %s6142_s24, 4  ;;  %s405_s22 = sshll.u32 %s6143_s17, 4  ;;  %s380_s12 = int_to_ptr.vmem [resolvable:$true] %s379_s12  ;;  %s406_s22 = int_to_ptr.vmem [resolvable:$true] %s405_s22 }
  0x69   : > { %s5925_s18 = scalar_lea.hbm %s7362_s2, 16 }
  0x6a   : > { %p5926_p7 = scmp.ne.s32.totalorder %s7362_s2, %s5925_s18  ;;  %p5932_p1 = scmp.lt.u32.totalorder %s5925_s18, %s7362_s2 }
  0x6c   : > { %p5928_p9 = pnand %p5926_p7, %p6293_p8 }
  0x6e   : > { %p5929_p4 = pneg %p5928_p9 }
  0x70   : > { %p5934_p3 = pnand %p5932_p1, %p5929_p4 }
  0x72   : > { %5937 = shalt.err (!%p5934_p3)
}
  0x73   : > { %s5938_s23 = scalar_lea.vmem %s380_s12, 16  ;;  %s5945_s20 = scalar_lea.vmem %s380_s12, 32 }
  0x74   : > { %p5939_p10 = scmp.ne.s32.totalorder %s380_s12, %s5938_s23  ;;  %p5946_p13 = scmp.lt.s32.totalorder %s380_s12, %s380_s12 }
  0x75   : > { %p5947_p0 = scmp.lt.s32.totalorder %s5945_s20, %s5938_s23 }
  0x76   : > { %p5941_p11 = pnand %p5939_p10, %p6293_p8 }
  0x77   : > { %p5948_p2 = por %p5947_p0, %p5946_p13 }
  0x78   : > { %p5942_p12 = pneg %p5941_p11 }
  0x7a   : > { %p5949_p5 = pnand %p5948_p2, %p5942_p12 }
  0x7c   : > { %5952 = shalt.err (!%p5949_p5)
}
  0x7d   : > { %5506 = dma.hbm_to_vmem [thread:$0]  (!%p6277_p6), %s7362_s2, 16, %s380_s12, [#allocation9]  }
  0x7e   : > { %s5953_s1 = scalar_lea.hbm %s7365_s5, 1024 }
  0x7f   : > { %p5954_p7 = scmp.ne.s32.totalorder %s7365_s5, %s5953_s1  ;;  %p5960_p1 = scmp.lt.u32.totalorder %s5953_s1, %s7365_s5 }
  0x81   : > { %p5956_p9 = pnand %p5954_p7, %p6293_p8 }
  0x83   : > { %p5957_p4 = pneg %p5956_p9 }
  0x85   : > { %p5962_p3 = pnand %p5960_p1, %p5957_p4 }
  0x87   : > { %5965 = shalt.err (!%p5962_p3)
}
  0x88   : > { %s5966_s13 = scalar_lea.vmem %s406_s22, 1024  ;;  %p5974_p13 = scmp.lt.s32.totalorder %s406_s22, %s406_s22 }
  0x89   : > { %p5967_p10 = scmp.ne.s32.totalorder %s406_s22, %s5966_s13  ;;  %p5975_p0 = scmp.lt.s32.totalorder %s5966_s13, %s5966_s13 }
  0x8b   : > { %p5969_p11 = pnand %p5967_p10, %p6293_p8  ;;  %p5976_p2 = por %p5975_p0, %p5974_p13 }
  0x8d   : > { %p5970_p12 = pneg %p5969_p11 }
  0x8f   : > { %p5977_p5 = pnand %p5976_p2, %p5970_p12 }
  0x91   : > { %5980 = shalt.err (!%p5977_p5)
}
  0x92   : > { %s6144_s12 = smov 64   ;;  %s6145_s18 = smov 4  }
  0x93   : > { %5512 = dma.hbm_to_vmem [thread:$0]  (!%p6277_p6), %s7365_s5, 1024, %s406_s22, [#allocation12], %s6144_s12, %s6144_s12, %s6145_s18  }
  0x94   : > { %s6146_s20 = smov [#allocation16]   ;;  %s5981_s7 = scalar_lea.hbm %s7371_s11, 4096 }
  0x95   : > { %s443_s3 = sshll.u32 %s6146_s20, 4  ;;  %p5982_p7 = scmp.ne.s32.totalorder %s7371_s11, %s5981_s7  ;;  %s444_s3 = int_to_ptr.vmem [resolvable:$true] %s443_s3 }
  0x96   : > { %p5988_p1 = scmp.lt.u32.totalorder %s5981_s7, %s7371_s11 }
  0x97   : > { %p5984_p9 = pnand %p5982_p7, %p6293_p8 }
  0x99   : > { %p5985_p4 = pneg %p5984_p9 }
  0x9b   : > { %p5990_p3 = pnand %p5988_p1, %p5985_p4 }
  0x9d   : > { %5993 = shalt.err (!%p5990_p3)
}
  0x9e   : > { %s5994_s22 = scalar_lea.vmem %s444_s3, 4096  ;;  %p6002_p13 = scmp.lt.s32.totalorder %s444_s3, %s444_s3 }
  0x9f   : > { %p5995_p10 = scmp.ne.s32.totalorder %s444_s3, %s5994_s22  ;;  %p6003_p0 = scmp.lt.s32.totalorder %s5994_s22, %s5994_s22 }
  0xa1   : > { %p5997_p11 = pnand %p5995_p10, %p6293_p8  ;;  %p6004_p2 = por %p6003_p0, %p6002_p13 }
  0xa3   : > { %p5998_p12 = pneg %p5997_p11 }
  0xa5   : > { %p6005_p5 = pnand %p6004_p2, %p5998_p12 }
  0xa7   : > { %6008 = shalt.err (!%p6005_p5)
}
  0xa8   : > { %5518 = dma.hbm_to_vmem [thread:$0]  (!%p6277_p6), %s7371_s11, 4096, %s444_s3, [#allocation15], %s6144_s12, %s6144_s12, %s6145_s18  }
  0xa9   : > { %s5074_s19 = sadd.s32 4294967294, %s6133_s30   ;;  %s44_s28 = sadd.s32 1, %s6129_s29 }
  0xaa   : > { %p46_p8 = scmp.ge.s32.totalorder %s44_s28, 2  ;;  %s51_s21 = sadd.s32 1, %s6121_s27 }
  0xab   : > { %p58_p7 = scmp.ne.s32.totalorder %s6121_s27, %s6117_s26  ;;  %p59_p9 = scmp.eq.s32.totalorder %s6133_s30, 0 }
  0xac   : > { %s7421_s28 = smov (%p46_p8, %s44_s28), 0  ;;  %p64_p1 = scmp.ne.s32.totalorder %s6117_s26, %s6113_s25 }
  0xad   : > { %p6413_p4 = por %p59_p9, %p58_p7  ;;  %s48_s12 = ssub.s32 %s6129_s29, %s7421_s28 }
  0xae   : > { %s7396_s18 = sadd.s32 4294967295, %s6133_s30   ;;  %p49_p3 = scmp.eq.s32.totalorder %s48_s12, 0 }
  0xaf   : > { %p342_p6 = scmp.eq.s32.totalorder %s7396_s18, 1  ;;  %p7397_p10 = scmp.ne.s32.totalorder %s7389_s15, 0 }
  0xb0   : > { %p348_p13 = scmp.eq.s32.totalorder %s5074_s19, 1  ;;  %p5533_p2 = scmp.lt.s32.totalorder %s6133_s30, 2 }
  0xb1   : > { %p6425_p11 = por %p7397_p10, %p64_p1  ;;  %p6429_p12 = por %p342_p6, %p58_p7 }
  0xb2   : > { %s6434_s8 = scalar_select %p49_p3, %s6121_s27, %s51_s21  }
  0xb3   : > { %s7399_s3 = scalar_select %p6429_p12, 1, 0 }
  0xb4   : > { %p6436_p0 = por %p348_p13, %p64_p1  ;;  %s460_s7 = sand.u32 1, %s6121_s27  }
  0xb5   : > { %s5250_s1 = sshll.u32 %s6129_s29, 9  ;;  %s5083_s10 = sshll.u32 %s460_s7, 5 }
  0xb6   : > { %s7400_s6 = scalar_select %p6436_p0, 1, 0 }
  0xb7   : > { %s6446_s22 = scalar_lea.hbm %s7360_s0, %s5250_s1  ;;  %s464_s14 = scalar_lea.vmem [#allocation5], %s5083_s10 }
  0xb8   : > { %s471_s13 = sshll.u32 %s464_s14, 4  ;;  %p6450_p5 = pnand %p5533_p2, %p6413_p4  ;;  %s6454_s13 = int_to_ptr.vmem [resolvable:$true] %s471_s13 }
  0xb9   : > { %s6456_s21 = scalar_lea.sflag [#allocation6], %s460_s7  ;;  %s6009_s12 = scalar_lea.hbm %s6446_s22, 512 }
  0xba   : > { %p6010_p8 = scmp.ne.s32.totalorder %s6446_s22, %s6009_s12  ;;  %p6011_p7 = pneg %p6450_p5 }
  0xbb   : > { %s6014_s1 = scalar_lea.hbm %s7360_s0, 1024  ;;  %p6015_p4 = scmp.lt.u32.totalorder %s6446_s22, %s7360_s0 }
  0xbc   : > { %p6012_p9 = pnand %p6011_p7, %p6010_p8  ;;  %p6016_p6 = scmp.lt.u32.totalorder %s6014_s1, %s6009_s12 }
  0xbd   : > { %p6018_p10 = scmp.lt.u32.totalorder %s6009_s12, %s6446_s22 }
  0xbe   : > { %p6013_p1 = pneg %p6012_p9  ;;  %p6017_p3 = por %p6016_p6, %p6015_p4 }
  0xc0   : > { %p6019_p13 = por %p6018_p10, %p6017_p3 }
  0xc2   : > { %p6020_p2 = pnand %p6019_p13, %p6013_p1 }
  0xc4   : > { %6023 = shalt.err (!%p6020_p2)
}
  0xc5   : > { %s6024_s7 = scalar_lea.vmem %s6454_s13, 512  ;;  %s6147_s17 = smov [#allocation5]  }
  0xc6   : > { %p6025_p8 = scmp.ne.s32.totalorder %s6454_s13, %s6024_s7  ;;  %s6029_s14 = sshll.u32 %s6147_s17, 4  ;;  %s6030_s14 = int_to_ptr.vmem [resolvable:$false] %s6029_s14 }
  0xc7   : > { %s6031_s18 = scalar_lea.vmem %s6030_s14, 1024  ;;  %p6032_p12 = scmp.lt.s32.totalorder %s6454_s13, %s6030_s14 }
  0xc8   : > { %p6027_p9 = pnand %p6025_p8, %p6011_p7  ;;  %p6033_p4 = scmp.lt.s32.totalorder %s6031_s18, %s6024_s7 }
  0xca   : > { %p6028_p0 = pneg %p6027_p9  ;;  %p6034_p6 = por %p6033_p4, %p6032_p12 }
  0xcc   : > { %p6035_p3 = pnand %p6034_p6, %p6028_p0 }
  0xce   : > { %6038 = shalt.err (!%p6035_p3)
}
  0xcf   : > { %s6148_s12 = smov 128   ;;  %s6149_s23 = smov 8  }
  0xd0   : > { %5522 = dma.hbm_to_vmem [thread:$0]  (!%p6450_p5), %s6446_s22, 512, %s6454_s13, %s6456_s21, %s6148_s12, %s6148_s12, %s6149_s23  }
  0xd1   : > { %p7402_p7 = scmp.ne.s32.totalorder %s7390_s16, 0 }
  0xd2   : > { %s6487_s1 = sand.u32 (!%p7402_p7), 1, %s6117_s26  }
  0xd3   : > { %483 = sbr.rel (%p7402_p7) target bundleno = 2766 (0xace), region = 72  ;;  %s5087_s10 = sshll.u32 (!%p7402_p7), %s6487_s1, 5 }
  0xd4   : > { %s486_s24 = scalar_lea.sflag (!%p7402_p7), [#allocation6], %s6487_s1  ;;  %s6493_s7 = scalar_lea.vmem (!%p7402_p7), [#allocation5], %s5087_s10 }
  0xda   : > { %6092 = dma.done.wait (%p6425_p11), %s486_s24, 512  }
  0xdb   : > { %6094 = vsyncadd (%p6425_p11), %s486_s24, 4294966784  ;;  %p7403_p12 = scmp.ne.s32.totalorder %s7389_s15, 0 }
  0xdd   : > { %6096 = dma.done.wait (%p7403_p12), [#allocation9], 32  }
  0xde   : > { %6098 = vsyncadd (%p7403_p12), [#allocation9], 4294967264 }
  0xdf   : > { %6100 = dma.done.wait (%p7403_p12), [#allocation12], 4096  }
  0xe0   : > { %6102 = vsyncadd (%p7403_p12), [#allocation12], 4294963200 }
  0xe1   : > { %6104 = dma.done.wait (%p7403_p12), [#allocation15], 8192  }
  0xe2   : > { %6106 = vsyncadd (%p7403_p12), [#allocation15], 4294959104  ;;  %v562_v0 = vld [vmem:[%s6493_s7] sm:$0xff]  ;;  %v564_v1 = vld [vmem:[%s6493_s7 + $0x10] sm:$0xff]  ;;  %v6150_v39 = vmov 0   ;;  %s6151_s20 = smov 96  }
  0xe3   : > { %v563_v2 = vld [vmem:[%s6493_s7 + $0x8] sm:$0xff]  ;;  %568 = vadd.xlane.f32.xlu0 %v562_v0  ;;  %572 = vadd.xlane.f32.xlu1 %v564_v1  ;;  %v565_v3 = vld [vmem:[%s6493_s7 + $0x18] sm:$0xff]  ;;  %v5643_v5 = vld [vmem:[#allocation11] ss:$12 sps:$4 sm:$0xff]   ;;  %s6152_s22 = smov 64   ;;  %s6153_s13 = smov 32  }
  0xe4   : > { %v5641_v4 = vld [vmem:[#allocation11 + $0x4] ss:$12 sps:$4 sm:$0xff]   ;;  %v5644_v6 = vld [vmem:[#allocation11 + $0x1c] ss:$12 sps:$4 sm:$0xff]   ;;  %v5648_v25 = vld [vmem:[#allocation11 + $0x34] ss:$12 sps:$4 sm:$0xff]   ;;  %844 = vmatprep.mubr.bf16.mxu0 %v6150_v39 }
  0xe5   : > { %v5646_v7 = vld [vmem:[#allocation11 + $0x8] ss:$12 sps:$4 sm:$0xff]   ;;  %812 = vmatprep.subr.bf16.mxu0 %v5641_v4  ;;  %v5647_v24 = vld [vmem:[#allocation11 + $0x18] ss:$12 sps:$4 sm:$0xff]   ;;  %v5650_v26 = vld [vmem:[#allocation11 + $0x20] ss:$12 sps:$4 sm:$0xff]  }
  0xe6   : > { %813 = vmatpush1.bf16.msra.mxu0 %v5643_v5  ;;  %5360 = vmatprep.subr.bf16.mxu1 %v5646_v7  ;;  %v5651_v27 = vld [vmem:[#allocation11 + $0x30] ss:$12 sps:$4 sm:$0xff]   ;;  %v5652_v28 = vld [vmem:[#allocation11 + $0x4c] ss:$12 sps:$4 sm:$0xff]   ;;  %v5655_v30 = vld [vmem:[#allocation11 + $0x48] ss:$12 sps:$4 sm:$0xff]  }
  0xe7   : > { %570 = vadd.xlane.f32.xlu0 %v563_v2  ;;  %574 = vadd.xlane.f32.xlu1 %v565_v3  ;;  %v5654_v29 = vld [vmem:[#allocation11 + $0x38] ss:$12 sps:$4 sm:$0xff]   ;;  %v5658_v32 = vld [vmem:[#allocation11 + $0x50] ss:$12 sps:$4 sm:$0xff]   ;;  %v5659_v33 = vld [vmem:[#allocation11 + $0x60] ss:$12 sps:$4 sm:$0xff]  }
  0xe8   : > { %814 = vmatprep.subr.bf16.mxu0 %v5644_v6  ;;  %5361 = vmatpush3.bf16.msra.mxu1 %v5646_v7  ;;  %v5656_v31 = vld [vmem:[#allocation11 + $0x64] ss:$12 sps:$4 sm:$0xff]   ;;  %v5660_v34 = vld [vmem:[#allocation11 + $0x7c] ss:$12 sps:$4 sm:$0xff]   ;;  %v5664_v37 = vld [vmem:[#allocation11 + $0x94] ss:$12 sps:$4 sm:$0xff]  }
  0xe9   : > { %5362 = vmatprep.subr.bf16.mxu1 %v5650_v26  ;;  %v5662_v35 = vld [vmem:[#allocation11 + $0x68] ss:$12 sps:$4 sm:$0xff]   ;;  %v5663_v36 = vld [vmem:[#allocation11 + $0x78] ss:$12 sps:$4 sm:$0xff]   ;;  %v5666_v38 = vld [vmem:[#allocation11 + $0x80] ss:$12 sps:$4 sm:$0xff]  }
  0xea   : > { %815 = vmatpush1.bf16.msra.mxu0 %v5647_v24  ;;  %v5667_v40 = vld [vmem:[#allocation11 + $0x90] ss:$12 sps:$4 sm:$0xff]   ;;  %v5668_v41 = vld [vmem:[#allocation11 + $0xac] ss:$12 sps:$4 sm:$0xff]   ;;  %v5671_v43 = vld [vmem:[#allocation11 + $0xa8] ss:$12 sps:$4 sm:$0xff]  }
  0xeb   : > { %816 = vmatprep.subr.bf16.mxu0 %v5648_v25  ;;  %v5670_v42 = vld [vmem:[#allocation11 + $0x98] ss:$12 sps:$4 sm:$0xff]   ;;  %v5672_v44 = vld [vmem:[#allocation11 + $0xb0] ss:$12 sps:$4 sm:$0xff]   ;;  %vm2130_vm0 = vcmask 261120   ;;  %vm3994_vm1 = vcmask 523264  }
  0xec   : > { %5363 = vmatpush3.bf16.msra.mxu1 %v5650_v26  ;;  %v5095_v59 = vld [vmem:[#allocation8] ss:$0 sm:$0xff]  ;;  %vm3999_vm2 = vcmask 785408   ;;  %s7404_s17 = sld [smem:[#allocation26_spill]]  ;;  %s7405_s12 = sld [smem:[#allocation27_spill]] }
  0xed   : > { %5364 = vmatprep.subr.bf16.mxu1 %v5654_v29  ;;  %s7408_s19 = sld [smem:[#allocation30_spill]]  ;;  %s555_s21 = scalar_lea.vmem [#allocation17], %s5087_s10 }
  0xee   : > { %817 = vmatpush1.bf16.msra.mxu0 %v5651_v27  ;;  %s4928_s14 = sshll.u32 %s555_s21, 4  ;;  %s7410_s23 = sld [smem:[#allocation31_spill]]  ;;  %s7304_s14 = int_to_ptr.vmem [resolvable:$true] %s4928_s14 }
  0xef   : > { %818 = vmatprep.subr.bf16.mxu0 %v5652_v28  ;;  %s6039_s15 = scalar_lea.vmem %s7304_s14, 512  ;;  %p7411_p0 = scmp.ne.s32.totalorder %s7399_s3, 0 }
  0xf0   : > { %5365 = vmatpush3.bf16.msra.mxu1 %v5654_v29  ;;  %p6040_p11 = scmp.ne.s32.totalorder %s7304_s14, %s6039_s15  ;;  %s6156_s16 = smov [#allocation17]  }
  0xf1   : > { %5366 = vmatprep.subr.bf16.mxu1 %v5658_v32 }
  0xf2   : > { %819 = vmatpush1.bf16.msra.mxu0 %v5655_v30  ;;  %p6041_p5 = pnand %p6040_p11, %p7411_p0 }
  0xf3   : > { %820 = vmatprep.subr.bf16.mxu0 %v5656_v31 }
  0xf4   : > { %5367 = vmatpush3.bf16.msra.mxu1 %v5658_v32  ;;  %p6042_p1 = pneg %p6041_p5 }
  0xf5   : > { %5368 = vmatprep.subr.bf16.mxu1 %v5662_v35 }
  0xf6   : > { %821 = vmatpush1.bf16.msra.mxu0 %v5659_v33 }
  0xf7   : > { %822 = vmatprep.subr.bf16.mxu0 %v5660_v34 }
  0xf8   : > { %5369 = vmatpush3.bf16.msra.mxu1 %v5662_v35 }
  0xf9   : > { %5370 = vmatprep.subr.bf16.mxu1 %v5666_v38 }
  0xfa   : > { %823 = vmatpush1.bf16.msra.mxu0 %v5663_v36 }
  0xfb   : > { %824 = vmatprep.subr.bf16.mxu0 %v5664_v37 }
  0xfc   : > { %5371 = vmatpush3.bf16.msra.mxu1 %v5666_v38 }
  0xfd   : > { %5372 = vmatprep.subr.bf16.mxu1 %v5670_v42 }
  0xfe   : > { %825 = vmatpush1.bf16.msra.mxu0 %v5667_v40 }
  0xff   : > { %826 = vmatprep.subr.bf16.mxu0 %v5668_v41 }
 0x100   : > { %5373 = vmatpush3.bf16.msra.mxu1 %v5670_v42 }
 0x101   : > { %5374 = vmatprep.subr.bf16.mxu1 %v5672_v44 }
 0x102   : > { %827 = vmatpush1.bf16.msra.mxu0 %v5671_v43 }
 0x104   : > { %5375 = vmatpush3.bf16.msra.mxu1 %v5672_v44 }
 0x170   : > { %v569_v8 = vpop.xlane.xlu0 %568  ;;  %v573_v9 = vpop.xlane.xlu1 %572 }
 0x171   : > { %v577_v10 = vmul.f32 0.0078125, %v569_v8  ;;  %v579_v11 = vmul.f32 0.0078125, %v573_v9 }
 0x173   : > { %v6515_v12 = vsub.f32 %v562_v0, %v577_v10  ;;  %v6517_v13 = vsub.f32 %v564_v1, %v579_v11  ;;  %v5096_v0 = vld [vmem:[#allocation10] ss:$0 sm:$0xff] }
 0x174   : > { %v571_v14 = vpop.xlane.xlu0 %570  ;;  %v575_v15 = vpop.xlane.xlu1 %574 }
 0x175   : > { %v578_v16 = vmul.f32 0.0078125, %v571_v14  ;;  %v585_v17 = vmul.f32 %v6515_v12, %v6515_v12  ;;  %v580_v18 = vmul.f32 0.0078125, %v575_v15  ;;  %v587_v21 = vmul.f32 %v6517_v13, %v6517_v13 }
 0x176   : > { %v669_v14 = vlaneseq }
 0x177   : > { %v6521_v19 = vsub.f32 %v563_v2, %v578_v16  ;;  %589 = vadd.xlane.f32.xlu0 %v585_v17  ;;  %v6523_v20 = vsub.f32 %v565_v3, %v580_v18  ;;  %v667_v16 = vld [vmem:[%s7364_s4] sm:$0x7] }
 0x179   : > { %v586_v22 = vmul.f32 %v6521_v19, %v6521_v19  ;;  %v588_v23 = vmul.f32 %v6523_v20, %v6523_v20 }
 0x17b   : > { %593 = vadd.xlane.f32.xlu0 %v587_v21  ;;  %591 = vadd.xlane.f32.xlu1 %v586_v22 }
 0x17f   : > { %595 = vadd.xlane.f32.xlu1 %v588_v23 }
 0x204   : > { %v590_v45 = vpop.xlane.xlu0 %589 }
 0x205   : > { %v597_v46 = vmul.f32 0.0078125, %v590_v45 }
 0x207   : > { %v601_v47 = vadd.f32 1e-05, %v597_v46 }
 0x208   : > { %v592_v48 = vpop.xlane.xlu1 %591  ;;  %v594_v49 = vpop.xlane.xlu0 %593 }
 0x209   : > { %5761 = vrsqrt.f32 %v601_v47  ;;  %v598_v50 = vmul.f32 0.0078125, %v592_v48  ;;  %v599_v51 = vmul.f32 0.0078125, %v594_v49  ;;  %v6154_v48 = vmov 1983009808  }
 0x20a   : > { %v957_v49 = vunpack.c.l.s4 %v6154_v48 }
 0x20b   : > { %v602_v52 = vadd.f32 1e-05, %v598_v50  ;;  %v603_v53 = vadd.f32 1e-05, %v599_v51  ;;  %v6155_v51 = vmov 1934713408  }
 0x20c   : > { %v596_v54 = vpop.xlane.xlu1 %595 }
 0x20d   : > { %5763 = vrsqrt.f32 %v602_v52  ;;  %v600_v55 = vmul.f32 0.0078125, %v596_v54  ;;  %v989_v52 = vunpack.c.l.s4 %v6155_v51  ;;  %v958_v54 = vunpack.c.0.s8 %v957_v49 }
 0x20e   : > { %5765 = vrsqrt.f32 %v603_v53 }
 0x20f   : > { %v604_v56 = vadd.f32 1e-05, %v600_v55 }
 0x211   : > { %5767 = vrsqrt.f32 %v604_v56  ;;  %v990_v56 = vunpack.c.0.s8 %v989_v52 }
 0x213   : > { %v5762_v57 = vpop.eup %5761 }
 0x214   : > { %v609_v58 = vmul.f32 %v5762_v57, %v6515_v12 }
 0x216   : > { %v619_v63 = vmul.f32 %v5095_v59, %v609_v58 }
 0x217   : > { %v5764_v60 = vpop.eup %5763 }
 0x218   : > { %v5766_v61 = vpop.eup %5765  ;;  %v610_v62 = vmul.f32 %v5764_v60, %v6521_v19  ;;  %v629_v4 = vadd.f32 %v5096_v0, %v619_v63 }
 0x219   : > { %v611_v1 = vmul.f32 %v5766_v61, %v6517_v13  ;;  %v6537_v13 = vshrl.u32 %v669_v14, 7 }
 0x21a   : > { %v620_v2 = vmul.f32 %v5095_v59, %v610_v62 }
 0x21b   : > { %v5768_v3 = vpop.eup %5767  ;;  %v621_v7 = vmul.f32 %v5095_v59, %v611_v1  ;;  %v671_v15 = vsub.s32 0, %v6537_v13  ;;  %v675_v17 = vsub.s32 1, %v6537_v13  ;;  %v679_v40 = vsub.s32 2, %v6537_v13 }
 0x21c   : > { %v630_v5 = vadd.f32 %v5096_v0, %v620_v2  ;;  %v612_v6 = vmul.f32 %v5768_v3, %v6523_v20  ;;  %v6652_v60 = vsub.s32 %v958_v54, %v6537_v13 }
 0x21d   : > { %v631_v10 = vadd.f32 %v5096_v0, %v621_v7  ;;  %v672_v18 = vrot.slane %v667_v16, %v671_v15  ;;  %v676_v19 = vrot.slane %v667_v16, %v675_v17  ;;  %v680_v41 = vrot.slane %v667_v16, %v679_v40 }
 0x21e   : > { %v633_v8 = vpack.c.bf16 %v630_v5, %v629_v4  ;;  %v622_v9 = vmul.f32 %v5095_v59, %v612_v6 }
 0x220   : > { %845 = vmatmul.mubr.bf16.vlgmr.msra.gmra.mrb[0].mxu0 %v633_v8  ;;  %5376 = vmatprep.mubr.bf16.mxu1 %v633_v8  ;;  %v632_v11 = vadd.f32 %v5096_v0, %v622_v9  ;;  %v6655_v0 = vsub.s32 %v990_v56, %v6537_v13 }
 0x221   : > { %854 = vmatprep.mubr.bf16.mxu0 %v6150_v39 }
 0x222   : > { %v634_v12 = vpack.c.bf16 %v632_v11, %v631_v10 }
 0x224   : > { %5377 = vmatmul.mubr.bf16.vlgmr.msra.gmra.mrb[0].mxu1 %v634_v12 }
 0x228   : > { %855 = vmatmul.mubr.bf16.gmra.mrb[4].mxu0 %v634_v12 }
 0x2f3   : > { %v846_v20 = vpop.f32.mrb[0].mxu0 }
 0x2f4   : > { %v6548_v21 = vadd.f32 %v846_v20, %v672_v18  ;;  %v848_v22 = vpop.f32.mrb[1].mxu0 }
 0x2f5   : > { %v6550_v23 = vadd.f32 %v848_v22, %v676_v19  ;;  %v850_v24 = vpop.f32.mrb[2].mxu0 }
 0x2f6   : > { %v852_v25 = vpop.f32.mrb[3].mxu0  ;;  %918 = vrot.lane.b32.xlu0 %v6548_v21, %s6151_s20  ;;  %v6556_v28 = vadd.f32 %v850_v24, %v672_v18 }
 0x2f7   : > { %1242 = vrot.lane.b32.xlu1 %v6550_v23, %s6152_s22  ;;  %v5378_v26 = vpop.f32.mrb[0].mxu1  ;;  %v6570_v35 = vadd.f32 %v852_v25, %v676_v19 }
 0x2f8   : > { %v899_v27 = vpop.f32.mrb[1].mxu1  ;;  %v6627_v45 = vadd.f32 %v5378_v26, %v680_v41 }
 0x2f9   : > { %v5379_v29 = vpop.f32.mrb[2].mxu1  ;;  %v6611_v43 = vadd.f32 %v899_v27, %v680_v41 }
 0x2fa   : > { %930 = vrot.lane.b32.xlu0 %v6548_v21, %s6152_s22  ;;  %v902_v30 = vpop.f32.mrb[3].mxu1  ;;  %v6637_v46 = vadd.f32 %v5379_v29, %v680_v41 }
 0x2fb   : > { %920 = vrot.lane.b32.xlu1 %v6556_v28, %s6151_s20  ;;  %v856_v31 = vpop.f32.mrb[4].mxu0  ;;  %v6621_v44 = vadd.f32 %v902_v30, %v680_v41 }
 0x2fc   : > { %v858_v32 = vpop.f32.mrb[5].mxu0  ;;  %v6592_v38 = vadd.f32 %v856_v31, %v672_v18 }
 0x2fd   : > { %v860_v33 = vpop.f32.mrb[6].mxu0  ;;  %v6576_v36 = vadd.f32 %v858_v32, %v676_v19 }
 0x2fe   : > { %942 = vrot.lane.b32.xlu0 %v6548_v21, %s6153_s13  ;;  %v862_v34 = vpop.f32.mrb[7].mxu0  ;;  %v6605_v42 = vadd.f32 %v860_v33, %v672_v18 }
 0x2ff   : > { %932 = vrot.lane.b32.xlu1 %v6556_v28, %s6152_s22  ;;  %v6586_v37 = vadd.f32 %v862_v34, %v676_v19 }
 0x302   : > { %1230 = vrot.lane.b32.xlu0 %v6550_v23, %s6151_s20 }
 0x303   : > { %944 = vrot.lane.b32.xlu1 %v6556_v28, %s6153_s13 }
 0x306   : > { %1254 = vrot.lane.b32.xlu0 %v6550_v23, %s6153_s13 }
 0x307   : > { %1232 = vrot.lane.b32.xlu1 %v6570_v35, %s6151_s20 }
 0x30a   : > { %1234 = vrot.lane.b32.xlu0 %v6576_v36, %s6151_s20 }
 0x30b   : > { %1244 = vrot.lane.b32.xlu1 %v6570_v35, %s6152_s22 }
 0x30e   : > { %1246 = vrot.lane.b32.xlu0 %v6576_v36, %s6152_s22 }
 0x30f   : > { %1256 = vrot.lane.b32.xlu1 %v6570_v35, %s6153_s13 }
 0x312   : > { %1258 = vrot.lane.b32.xlu0 %v6576_v36, %s6153_s13 }
 0x313   : > { %1236 = vrot.lane.b32.xlu1 %v6586_v37, %s6151_s20 }
 0x316   : > { %922 = vrot.lane.b32.xlu0 %v6592_v38, %s6151_s20 }
 0x317   : > { %1248 = vrot.lane.b32.xlu1 %v6586_v37, %s6152_s22 }
 0x31a   : > { %934 = vrot.lane.b32.xlu0 %v6592_v38, %s6152_s22 }
 0x31b   : > { %1260 = vrot.lane.b32.xlu1 %v6586_v37, %s6153_s13 }
 0x31e   : > { %946 = vrot.lane.b32.xlu0 %v6592_v38, %s6153_s13 }
 0x31f   : > { %924 = vrot.lane.b32.xlu1 %v6605_v42, %s6151_s20 }
 0x322   : > { %1542 = vrot.lane.b32.xlu0 %v6611_v43, %s6151_s20 }
 0x323   : > { %936 = vrot.lane.b32.xlu1 %v6605_v42, %s6152_s22 }
 0x326   : > { %1554 = vrot.lane.b32.xlu0 %v6611_v43, %s6152_s22 }
 0x327   : > { %948 = vrot.lane.b32.xlu1 %v6605_v42, %s6153_s13 }
 0x32a   : > { %1566 = vrot.lane.b32.xlu0 %v6611_v43, %s6153_s13 }
 0x32b   : > { %1544 = vrot.lane.b32.xlu1 %v6621_v44, %s6151_s20 }
 0x32e   : > { %1546 = vrot.lane.b32.xlu0 %v6627_v45, %s6151_s20 }
 0x32f   : > { %1556 = vrot.lane.b32.xlu1 %v6621_v44, %s6152_s22 }
 0x332   : > { %1558 = vrot.lane.b32.xlu0 %v6627_v45, %s6152_s22 }
 0x333   : > { %1568 = vrot.lane.b32.xlu1 %v6621_v44, %s6153_s13 }
 0x336   : > { %1570 = vrot.lane.b32.xlu0 %v6627_v45, %s6153_s13 }
 0x337   : > { %1548 = vrot.lane.b32.xlu1 %v6637_v46, %s6151_s20 }
 0x33b   : > { %1560 = vrot.lane.b32.xlu1 %v6637_v46, %s6152_s22 }
 0x33f   : > { %1572 = vrot.lane.b32.xlu1 %v6637_v46, %s6153_s13 }
 0x368   : > { %v919_v47 = vpop.permute.xlu0 %918 }
 0x369   : > { %v6647_v50 = vpop.permute.xlu1 %1242 }
 0x36a   : > { %v1266_v12 = vcombine.low %v6550_v23, %v6647_v50  ;;  %v1267_v14 = vcombine.high %v6550_v23, %v6647_v50 }
 0x36c   : > { %v931_v53 = vpop.permute.xlu0 %930 }
 0x36d   : > { %v921_v55 = vpop.permute.xlu1 %920  ;;  %v954_v57 = vcombine.low %v6548_v21, %v931_v53  ;;  %v955_v58 = vcombine.high %v6548_v21, %v931_v53 }
 0x36f   : > { %v962_v1 = vrot.slane %v954_v57, %v6652_v60  ;;  %v969_v2 = vrot.slane %v955_v58, %v6652_v60 }
 0x370   : > { %v943_v59 = vpop.permute.xlu0 %942 }
 0x371   : > { %v970_v61 = vcombine.low %v919_v47, %v943_v59  ;;  %v971_v62 = vcombine.high %v919_v47, %v943_v59  ;;  %v933_v63 = vpop.permute.xlu1 %932 }
 0x372   : > { %v1022_v5 = vcombine.low %v6556_v28, %v933_v63  ;;  %v1023_v6 = vcombine.high %v6556_v28, %v933_v63 }
 0x373   : > { %v978_v3 = vrot.slane %v970_v61, %v6652_v60  ;;  %v985_v4 = vrot.slane %v971_v62, %v6652_v60 }
 0x374   : > { %v1231_v24 = vpop.permute.xlu0 %1230  ;;  %v1030_v25 = vrot.slane %v1022_v5, %v6652_v60  ;;  %v1037_v26 = vrot.slane %v1023_v6, %v6652_v60 }
 0x375   : > { %v986_v7 = vcombine.low %v962_v1, %v978_v3  ;;  %v987_v8 = vcombine.high %v962_v1, %v978_v3  ;;  %v1002_v9 = vcombine.low %v969_v2, %v985_v4  ;;  %v1003_v10 = vcombine.high %v969_v2, %v985_v4  ;;  %v945_v11 = vpop.permute.xlu1 %944 }
 0x376   : > { %v1038_v16 = vcombine.low %v921_v55, %v945_v11  ;;  %v1039_v18 = vcombine.high %v921_v55, %v945_v11  ;;  %v1274_v11 = vrot.slane %v1266_v12, %v6652_v60 }
 0x377   : > { %v994_v19 = vrot.slane %v986_v7, %v6655_v0  ;;  %v1001_v20 = vrot.slane %v987_v8, %v6655_v0  ;;  %v1010_v21 = vrot.slane %v1002_v9, %v6655_v0  ;;  %v1017_v22 = vrot.slane %v1003_v10, %v6655_v0 }
 0x378   : > { %v1046_v27 = vrot.slane %v1038_v16, %v6652_v60  ;;  %v1053_v28 = vrot.slane %v1039_v18, %v6652_v60  ;;  %v1255_v61 = vpop.permute.xlu0 %1254  ;;  %v1281_v16 = vrot.slane %v1267_v14, %v6652_v60 }
 0x379   : > { %v1850_v23 = vcombine.low %v994_v19, %v1001_v20  ;;  %v5121_v29 = vcombine.high %v994_v19, %v1001_v20  ;;  %v1866_v30 = vcombine.low %v1010_v21, %v1017_v22  ;;  %v5122_v31 = vcombine.high %v1010_v21, %v1017_v22  ;;  %v6679_v51 = vpop.permute.xlu1 %1232 }
 0x37a   : > { %v1054_v32 = vcombine.low %v1030_v25, %v1046_v27  ;;  %v1055_v33 = vcombine.high %v1030_v25, %v1046_v27  ;;  %v1070_v34 = vcombine.low %v1037_v26, %v1053_v28  ;;  %v1071_v41 = vcombine.high %v1037_v26, %v1053_v28 }
 0x37b   : > { %v1857_v47 = vrot.slane %v1850_v23, %v6652_v60  ;;  %v1865_v48 = vrot.slane %v5121_v29, %v6652_v60  ;;  %v1873_v49 = vrot.slane %v1866_v30, %v6652_v60  ;;  %v1881_v50 = vrot.slane %v5122_v31, %v6652_v60 }
 0x37c   : > { %v1062_v52 = vrot.slane %v1054_v32, %v6655_v0  ;;  %v1069_v53 = vrot.slane %v1055_v33, %v6655_v0  ;;  %v1078_v54 = vrot.slane %v1070_v34, %v6655_v0  ;;  %v1085_v55 = vrot.slane %v1071_v41, %v6655_v0  ;;  %v6695_v30 = vpop.permute.xlu0 %1234 }
 0x37d   : > { %v1882_v56 = vcombine.low %v1857_v47, %v1865_v48  ;;  %v1883_v57 = vcombine.high %v1857_v47, %v1865_v48  ;;  %v1898_v58 = vcombine.low %v1873_v49, %v1881_v50  ;;  %v1899_v59 = vcombine.high %v1873_v49, %v1881_v50  ;;  %v1245_v20 = vpop.permute.xlu1 %1244 }
 0x37e   : > { %v1918_v62 = vcombine.low %v1062_v52, %v1069_v53  ;;  %v5123_v63 = vcombine.high %v1062_v52, %v1069_v53  ;;  %v1934_v1 = vcombine.low %v1078_v54, %v1085_v55  ;;  %v5124_v2 = vcombine.high %v1078_v54, %v1085_v55 }
 0x37f   : > { %v1890_v3 = vrot.slane %v1882_v56, %v6655_v0  ;;  %v1897_v4 = vrot.slane %v1883_v57, %v6655_v0  ;;  %v1906_v5 = vrot.slane %v1898_v58, %v6655_v0  ;;  %v1913_v6 = vrot.slane %v1899_v59, %v6655_v0 }
 0x380   : > { %v1925_v7 = vrot.slane %v1918_v62, %v6652_v60  ;;  %v1933_v8 = vrot.slane %v5123_v63, %v6652_v60  ;;  %v1941_v9 = vrot.slane %v1934_v1, %v6652_v60  ;;  %v1949_v10 = vrot.slane %v5124_v2, %v6652_v60  ;;  %v1247_v2 = vpop.permute.xlu0 %1246 }
 0x381   : > { %v1914_v18 = vcombine.low %v1890_v3, %v1906_v5  ;;  %v1915_v19 = vcombine.high %v1890_v3, %v1906_v5  ;;  %v1916_v27 = vcombine.low %v1897_v4, %v1913_v6  ;;  %v1917_v28 = vcombine.high %v1897_v4, %v1913_v6  ;;  %v1257_v56 = vpop.permute.xlu1 %1256 }
 0x382   : > { %v1950_v21 = vcombine.low %v1925_v7, %v1933_v8  ;;  %v1951_v22 = vcombine.high %v1925_v7, %v1933_v8  ;;  %v1966_v25 = vcombine.low %v1941_v9, %v1949_v10  ;;  %v1967_v26 = vcombine.high %v1941_v9, %v1949_v10 }
 0x383   : > { %v1282_v23 = vcombine.low %v1231_v24, %v1255_v61  ;;  %v1283_v29 = vcombine.high %v1231_v24, %v1255_v61  ;;  %v1334_v41 = vcombine.low %v6570_v35, %v1245_v20  ;;  %v1335_v47 = vcombine.high %v6570_v35, %v1245_v20 }
 0x384   : > { %v1958_v31 = vrot.slane %v1950_v21, %v6655_v0  ;;  %v1965_v32 = vrot.slane %v1951_v22, %v6655_v0  ;;  %v1974_v12 = vrot.slane %v1966_v25, %v6655_v0  ;;  %v1981_v14 = vrot.slane %v1967_v26, %v6655_v0 }
 0x385   : > { %v1290_v33 = vrot.slane %v1282_v23, %v6652_v60  ;;  %v1297_v34 = vrot.slane %v1283_v29, %v6652_v60  ;;  %v1342_v3 = vrot.slane %v1334_v41, %v6652_v60  ;;  %v1349_v4 = vrot.slane %v1335_v47, %v6652_v60  ;;  %v6725_v23 = vpop.permute.xlu1 %1236 }
 0x386   : > { %v1982_v48 = vcombine.low %v1958_v31, %v1974_v12  ;;  %v1983_v24 = vcombine.high %v1958_v31, %v1974_v12  ;;  %v1984_v49 = vcombine.low %v1965_v32, %v1981_v14  ;;  %v1985_v50 = vcombine.high %v1965_v32, %v1981_v14 }
 0x387   : > { %v1298_v52 = vcombine.low %v1274_v11, %v1290_v33  ;;  %v1299_v53 = vcombine.high %v1274_v11, %v1290_v33  ;;  %v1314_v54 = vcombine.low %v1281_v16, %v1297_v34  ;;  %v1315_v55 = vcombine.high %v1281_v16, %v1297_v34 }
 0x388   : > { %v2122_v57 = vpack.c.bf16 %v1982_v48, %v1914_v18  ;;  %v2124_v58 = vpack.c.bf16 %v1983_v24, %v1915_v19  ;;  %v2126_v59 = vpack.c.bf16 %v1984_v49, %v1916_v27  ;;  %v2128_v61 = vpack.c.bf16 %v1985_v50, %v1917_v28  ;;  %v1259_v49 = vpop.permute.xlu0 %1258 }
 0x389   : > { %v1306_v62 = vrot.slane %v1298_v52, %v6655_v0  ;;  %v1313_v63 = vrot.slane %v1299_v53, %v6655_v0  ;;  %v1322_v1 = vrot.slane %v1314_v54, %v6655_v0  ;;  %v1329_v35 = vrot.slane %v1315_v55, %v6655_v0 }
 0x38a   : > { %2131 = vst.msk [vmem:[#allocation2] sm:$0xff] %vm2130_vm0, %v2122_v57  ;;  %2133 = vst.msk [vmem:[#allocation2 + $0x10] sm:$0xff] %vm2130_vm0, %v2124_v58  ;;  %v1350_v5 = vcombine.low %v6679_v51, %v1257_v56  ;;  %v1351_v6 = vcombine.high %v6679_v51, %v1257_v56  ;;  %v1402_v11 = vcombine.low %v6576_v36, %v1247_v2 }
 0x38b   : > { %2135 = vst.msk [vmem:[#allocation2 + $0x20] sm:$0xff] %vm2130_vm0, %v2126_v59  ;;  %2137 = vst.msk [vmem:[#allocation2 + $0x30] sm:$0xff] %vm2130_vm0, %v2128_v61  ;;  %v2139_v7 = vcombine.low %v1306_v62, %v1313_v63  ;;  %v5129_v8 = vcombine.high %v1306_v62, %v1313_v63  ;;  %v2155_v9 = vcombine.low %v1322_v1, %v1329_v35 }
 0x38c   : > { %v5130_v10 = vcombine.high %v1322_v1, %v1329_v35  ;;  %v1403_v16 = vcombine.high %v6576_v36, %v1247_v2  ;;  %v1358_v18 = vrot.slane %v1350_v5, %v6652_v60  ;;  %v1365_v19 = vrot.slane %v1351_v6, %v6652_v60  ;;  %v1249_v2 = vpop.permute.xlu1 %1248 }
 0x38d   : > { %v2146_v20 = vrot.slane %v2139_v7, %v6652_v60  ;;  %v2154_v21 = vrot.slane %v5129_v8, %v6652_v60  ;;  %v2162_v22 = vrot.slane %v2155_v9, %v6652_v60  ;;  %v1410_v59 = vrot.slane %v1402_v11, %v6652_v60 }
 0x38e   : > { %v2170_v51 = vrot.slane %v5130_v10, %v6652_v60  ;;  %v1366_v25 = vcombine.low %v1342_v3, %v1358_v18  ;;  %v1367_v26 = vcombine.high %v1342_v3, %v1358_v18  ;;  %v1382_v27 = vcombine.low %v1349_v4, %v1365_v19  ;;  %v6747_v18 = vpop.permute.xlu0 %922 }
 0x38f   : > { %v1383_v28 = vcombine.high %v1349_v4, %v1365_v19  ;;  %v2171_v29 = vcombine.low %v2146_v20, %v2154_v21  ;;  %v2172_v36 = vcombine.high %v2146_v20, %v2154_v21  ;;  %v1417_v61 = vrot.slane %v1403_v16, %v6652_v60 }
 0x390   : > { %v2187_v31 = vcombine.low %v2162_v22, %v2170_v51  ;;  %v2188_v32 = vcombine.high %v2162_v22, %v2170_v51  ;;  %v1374_v12 = vrot.slane %v1366_v25, %v6655_v0  ;;  %v1381_v14 = vrot.slane %v1367_v26, %v6655_v0 }
 0x391   : > { %v1390_v33 = vrot.slane %v1382_v27, %v6655_v0  ;;  %v1397_v34 = vrot.slane %v1383_v28, %v6655_v0  ;;  %v2179_v41 = vrot.slane %v2171_v29, %v6655_v0  ;;  %v2186_v47 = vrot.slane %v2172_v36, %v6655_v0  ;;  %v2725_v50 = vld [vmem:[#allocation2] sm:$0xff] }
 0x392   : > { %v2195_v48 = vrot.slane %v2187_v31, %v6655_v0  ;;  %v2202_v24 = vrot.slane %v2188_v32, %v6655_v0  ;;  %v2729_v52 = vld [vmem:[#allocation2 + $0x20] sm:$0xff]  ;;  %v2207_v53 = vcombine.low %v1374_v12, %v1381_v14  ;;  %v5131_v54 = vcombine.high %v1374_v12, %v1381_v14  ;;  %5384 = vmatprep.mubr.msk.bf16.mxu1 %vm2130_vm0, %v2725_v50  ;;  %v1261_v12 = vpop.permute.xlu1 %1260 }
 0x393   : > { %v2223_v55 = vcombine.low %v1390_v33, %v1397_v34  ;;  %v5132_v56 = vcombine.high %v1390_v33, %v1397_v34  ;;  %5400 = vmatprep.mubr.msk.bf16.mxu0 %vm2130_vm0, %v2729_v52  ;;  %v1418_v5 = vcombine.low %v6695_v30, %v1259_v49  ;;  %v1419_v6 = vcombine.high %v6695_v30, %v1259_v49 }
 0x394   : > { %v2203_v57 = vcombine.low %v2179_v41, %v2195_v48  ;;  %v2204_v58 = vcombine.high %v2179_v41, %v2195_v48  ;;  %v2214_v62 = vrot.slane %v2207_v53, %v6652_v60  ;;  %v2222_v63 = vrot.slane %v5131_v54, %v6652_v60  ;;  %v935_v54 = vpop.permute.xlu0 %934 }
 0x395   : > { %v2230_v1 = vrot.slane %v2223_v55, %v6652_v60  ;;  %v2238_v35 = vrot.slane %v5132_v56, %v6652_v60  ;;  %v2205_v3 = vcombine.low %v2186_v47, %v2202_v24  ;;  %v2206_v4 = vcombine.high %v2186_v47, %v2202_v24 }
 0x396   : > { %v2239_v7 = vcombine.low %v2214_v62, %v2222_v63  ;;  %v2240_v8 = vcombine.high %v2214_v62, %v2222_v63  ;;  %v1426_v11 = vrot.slane %v1418_v5, %v6652_v60  ;;  %v1433_v16 = vrot.slane %v1419_v6, %v6652_v60 }
 0x397   : > { %v2255_v9 = vcombine.low %v2230_v1, %v2238_v35  ;;  %v2256_v10 = vcombine.high %v2230_v1, %v2238_v35  ;;  %v1470_v19 = vcombine.low %v6586_v37, %v1249_v2  ;;  %v1471_v20 = vcombine.high %v6586_v37, %v1249_v2 }
 0x398   : > { %v2247_v21 = vrot.slane %v2239_v7, %v6655_v0  ;;  %v2254_v22 = vrot.slane %v2240_v8, %v6655_v0  ;;  %v1434_v25 = vcombine.low %v1410_v59, %v1426_v11  ;;  %v1435_v26 = vcombine.high %v1410_v59, %v1426_v11 }
 0x399   : > { %v2263_v30 = vrot.slane %v2255_v9, %v6655_v0  ;;  %v2270_v51 = vrot.slane %v2256_v10, %v6655_v0  ;;  %v1450_v27 = vcombine.low %v1417_v61, %v1433_v16  ;;  %v1451_v28 = vcombine.high %v1417_v61, %v1433_v16 }
 0x39a   : > { %v1442_v14 = vrot.slane %v1434_v25, %v6655_v0  ;;  %v1449_v37 = vrot.slane %v1435_v26, %v6655_v0  ;;  %v1478_v55 = vrot.slane %v1470_v19, %v6652_v60  ;;  %v1485_v56 = vrot.slane %v1471_v20, %v6652_v60 }
 0x39b   : > { %v2271_v29 = vcombine.low %v2247_v21, %v2263_v30  ;;  %v2272_v36 = vcombine.high %v2247_v21, %v2263_v30  ;;  %v2273_v31 = vcombine.low %v2254_v22, %v2270_v51  ;;  %v2274_v32 = vcombine.high %v2254_v22, %v2270_v51  ;;  %v947_v21 = vpop.permute.xlu0 %946 }
 0x39c   : > { %v1458_v33 = vrot.slane %v1450_v27, %v6655_v0  ;;  %v1465_v34 = vrot.slane %v1451_v28, %v6655_v0  ;;  %v2275_v49 = vcombine.low %v1442_v14, %v1449_v37  ;;  %v5133_v50 = vcombine.high %v1442_v14, %v1449_v37 }
 0x39d   : > { %v2411_v41 = vpack.c.bf16 %v2271_v29, %v2203_v57  ;;  %v2413_v47 = vpack.c.bf16 %v2272_v36, %v2204_v58  ;;  %v2415_v48 = vpack.c.bf16 %v2273_v31, %v2205_v3  ;;  %v2417_v24 = vpack.c.bf16 %v2274_v32, %v2206_v4  ;;  %v6775_v4 = vpop.permute.xlu1 %924 }
 0x39e   : > { %v2291_v52 = vcombine.low %v1458_v33, %v1465_v34  ;;  %v5134_v53 = vcombine.high %v1458_v33, %v1465_v34  ;;  %v1486_v57 = vcombine.low %v6725_v23, %v1261_v12  ;;  %v1487_v58 = vcombine.high %v6725_v23, %v1261_v12 }
 0x39f   : > { %2419 = vst.msk [vmem:[#allocation3] sm:$0xff] %vm2130_vm0, %v2411_v41  ;;  %2421 = vst.msk [vmem:[#allocation3 + $0x10] sm:$0xff] %vm2130_vm0, %v2413_v47  ;;  %v2282_v59 = vrot.slane %v2275_v49, %v6652_v60  ;;  %v2290_v61 = vrot.slane %v5133_v50, %v6652_v60  ;;  %v1090_v1 = vcombine.low %v6592_v38, %v935_v54 }
 0x3a0   : > { %2423 = vst.msk [vmem:[#allocation3 + $0x20] sm:$0xff] %vm2130_vm0, %v2415_v48  ;;  %2425 = vst.msk [vmem:[#allocation3 + $0x30] sm:$0xff] %vm2130_vm0, %v2417_v24  ;;  %v2298_v62 = vrot.slane %v2291_v52, %v6652_v60  ;;  %v2306_v63 = vrot.slane %v5134_v53, %v6652_v60  ;;  %v1091_v35 = vcombine.high %v6592_v38, %v935_v54 }
 0x3a1   : > { %v1494_v2 = vrot.slane %v1486_v57, %v6652_v60  ;;  %v1501_v3 = vrot.slane %v1487_v58, %v6652_v60  ;;  %v2307_v5 = vcombine.low %v2282_v59, %v2290_v61  ;;  %v2308_v23 = vcombine.high %v2282_v59, %v2290_v61  ;;  %v6797_v33 = vpop.permute.xlu1 %936 }
 0x3a2   : > { %v2323_v6 = vcombine.low %v2298_v62, %v2306_v63  ;;  %v2324_v7 = vcombine.high %v2298_v62, %v2306_v63  ;;  %v1098_v28 = vrot.slane %v1090_v1, %v6652_v60  ;;  %v1105_v29 = vrot.slane %v1091_v35, %v6652_v60 }
 0x3a3   : > { %v1502_v8 = vcombine.low %v1478_v55, %v1494_v2  ;;  %v1503_v9 = vcombine.high %v1478_v55, %v1494_v2  ;;  %v1518_v10 = vcombine.low %v1485_v56, %v1501_v3  ;;  %v1519_v11 = vcombine.high %v1485_v56, %v1501_v3  ;;  %v6813_v55 = vpop.permute.xlu0 %1542 }
 0x3a4   : > { %v6778_v16 = vrot.slane %v2307_v5, %v6655_v0  ;;  %v6781_v19 = vrot.slane %v2308_v23, %v6655_v0  ;;  %v2331_v38 = vrot.slane %v2323_v6, %v6655_v0  ;;  %v2338_v20 = vrot.slane %v2324_v7, %v6655_v0 }
 0x3a5   : > { %v1510_v22 = vrot.slane %v1502_v8, %v6655_v0  ;;  %v1517_v30 = vrot.slane %v1503_v9, %v6655_v0  ;;  %v1526_v51 = vrot.slane %v1518_v10, %v6655_v0  ;;  %v1533_v25 = vrot.slane %v1519_v11, %v6655_v0 }
 0x3a6   : > { %v2339_v26 = vcombine.low %v6778_v16, %v2331_v38  ;;  %v2340_v27 = vcombine.high %v6778_v16, %v2331_v38  ;;  %v6793_v36 = vld [vmem:[#allocation3] sm:$0xff]  ;;  %v2341_v34 = vcombine.low %v6781_v19, %v2338_v20  ;;  %v2342_v41 = vcombine.high %v6781_v19, %v2338_v20 }
 0x3a7   : > { %v6795_v31 = vld [vmem:[#allocation3 + $0x20] sm:$0xff]  ;;  %v2343_v32 = vcombine.low %v1510_v22, %v1517_v30  ;;  %v5135_v12 = vcombine.high %v1510_v22, %v1517_v30  ;;  %v2359_v14 = vcombine.low %v1526_v51, %v1533_v25  ;;  %v5136_v37 = vcombine.high %v1526_v51, %v1533_v25  ;;  %5464 = vmatprep.subr.msk.bf16.mxu1 %vm2130_vm0, %v6793_v36  ;;  %v1555_v22 = vpop.permute.xlu0 %1554  ;;  %v949_v30 = vpop.permute.xlu1 %948 }
 0x3a8   : > { %v1106_v47 = vcombine.low %v6747_v18, %v947_v21  ;;  %v1107_v48 = vcombine.high %v6747_v18, %v947_v21  ;;  %5468 = vmatprep.subr.msk.bf16.mxu0 %vm2130_vm0, %v6795_v31  ;;  %v1158_v18 = vcombine.low %v6605_v42, %v6797_v33  ;;  %v1159_v56 = vcombine.high %v6605_v42, %v6797_v33 }
 0x3a9   : > { %v2350_v24 = vrot.slane %v2343_v32, %v6652_v60  ;;  %v2358_v49 = vrot.slane %v5135_v12, %v6652_v60  ;;  %v2366_v50 = vrot.slane %v2359_v14, %v6652_v60  ;;  %v2374_v52 = vrot.slane %v5136_v37, %v6652_v60 }
 0x3aa   : > { %v1114_v53 = vrot.slane %v1106_v47, %v6652_v60  ;;  %v1121_v54 = vrot.slane %v1107_v48, %v6652_v60  ;;  %v1174_v33 = vcombine.low %v6775_v4, %v949_v30 }
 0x3ab   : > { %v2375_v57 = vcombine.low %v2350_v24, %v2358_v49  ;;  %v2376_v58 = vcombine.high %v2350_v24, %v2358_v49  ;;  %v2391_v59 = vcombine.low %v2366_v50, %v2374_v52  ;;  %v2392_v61 = vcombine.high %v2366_v50, %v2374_v52 }
 0x3ac   : > { %v1122_v62 = vcombine.low %v1098_v28, %v1114_v53  ;;  %v1123_v63 = vcombine.high %v1098_v28, %v1114_v53  ;;  %v1138_v1 = vcombine.low %v1105_v29, %v1121_v54  ;;  %v1139_v35 = vcombine.high %v1105_v29, %v1121_v54 }
 0x3ad   : > { %v2383_v2 = vrot.slane %v2375_v57, %v6655_v0  ;;  %v2390_v3 = vrot.slane %v2376_v58, %v6655_v0  ;;  %v2399_v5 = vrot.slane %v2391_v59, %v6655_v0  ;;  %v2406_v23 = vrot.slane %v2392_v61, %v6655_v0  ;;  %v1567_v58 = vpop.permute.xlu0 %1566 }
 0x3ae   : > { %v1130_v6 = vrot.slane %v1122_v62, %v6655_v0  ;;  %v1137_v42 = vrot.slane %v1123_v63, %v6655_v0  ;;  %v1146_v7 = vrot.slane %v1138_v1, %v6655_v0  ;;  %v1153_v8 = vrot.slane %v1139_v35, %v6655_v0 }
 0x3af   : > { %v2407_v9 = vcombine.low %v2383_v2, %v2399_v5  ;;  %v2408_v10 = vcombine.high %v2383_v2, %v2399_v5  ;;  %v2409_v11 = vcombine.low %v2390_v3, %v2406_v23  ;;  %v2410_v16 = vcombine.high %v2390_v3, %v2406_v23 }
 0x3b0   : > { %v1986_v19 = vcombine.low %v1130_v6, %v1137_v42  ;;  %v5125_v38 = vcombine.high %v1130_v6, %v1137_v42  ;;  %v2002_v20 = vcombine.low %v1146_v7, %v1153_v8  ;;  %v5126_v21 = vcombine.high %v1146_v7, %v1153_v8  ;;  %v6865_v7 = vpop.permute.xlu1 %1544 }
 0x3b1   : > { %v2412_v51 = vpack.c.bf16 %v2407_v9, %v2339_v26  ;;  %v2414_v25 = vpack.c.bf16 %v2408_v10, %v2340_v27  ;;  %v2416_v28 = vpack.c.bf16 %v2409_v11, %v2341_v34  ;;  %v2418_v29 = vpack.c.bf16 %v2410_v16, %v2342_v41 }
 0x3b2   : > { %v1993_v32 = vrot.slane %v1986_v19, %v6652_v60  ;;  %v2001_v12 = vrot.slane %v5125_v38, %v6652_v60  ;;  %v2009_v14 = vrot.slane %v2002_v20, %v6652_v60  ;;  %v2017_v37 = vrot.slane %v5126_v21, %v6652_v60 }
 0x3b3   : > { %2420 = vst.msk [vmem:[#allocation3 + $0x8] sm:$0xff] %vm2130_vm0, %v2412_v51  ;;  %2422 = vst.msk [vmem:[#allocation3 + $0x18] sm:$0xff] %vm2130_vm0, %v2414_v25  ;;  %v1578_v26 = vcombine.low %v6611_v43, %v1555_v22  ;;  %v1579_v27 = vcombine.high %v6611_v43, %v1555_v22  ;;  %v1175_v34 = vcombine.high %v6775_v4, %v949_v30  ;;  %v2749_v8 = vsel %vm2130_vm0, %v6793_v36, 0  ;;  %v6879_v30 = vpop.permute.xlu0 %1546 }
 0x3b4   : > { %2424 = vst.msk [vmem:[#allocation3 + $0x28] sm:$0xff] %vm2130_vm0, %v2416_v28  ;;  %2426 = vst.msk [vmem:[#allocation3 + $0x38] sm:$0xff] %vm2130_vm0, %v2418_v29  ;;  %v2018_v41 = vcombine.low %v1993_v32, %v2001_v12  ;;  %v2019_v47 = vcombine.high %v1993_v32, %v2001_v12  ;;  %v2034_v48 = vcombine.low %v2009_v14, %v2017_v37  ;;  %v2871_v9 = vsel %vm2130_vm0, %v6795_v31, 0 }
 0x3b5   : > { %v2035_v24 = vcombine.high %v2009_v14, %v2017_v37  ;;  %v1166_v49 = vrot.slane %v1158_v18, %v6652_v60  ;;  %v1173_v50 = vrot.slane %v1159_v56, %v6652_v60  ;;  %v1182_v52 = vrot.slane %v1174_v33, %v6652_v60  ;;  %5381 = vmatpush3.bf16.xpose.msra.mxu1 %v2749_v8 }
 0x3b6   : > { %v1189_v53 = vrot.slane %v1175_v34, %v6652_v60  ;;  %v6844_v54 = vrot.slane %v2018_v41, %v6655_v0  ;;  %v6847_v43 = vrot.slane %v2034_v48, %v6655_v0  ;;  %v1586_v4 = vrot.slane %v1578_v26, %v6652_v60  ;;  %5397 = vmatpush3.bf16.xpose.msra.mxu0 %v2871_v9 }
 0x3b7   : > { %v1593_v57 = vrot.slane %v1579_v27, %v6652_v60  ;;  %v1190_v59 = vcombine.low %v1166_v49, %v1182_v52  ;;  %v1191_v61 = vcombine.high %v1166_v49, %v1182_v52  ;;  %v6852_v56 = vrot.slane %v2019_v47, %v6655_v0 }
 0x3b8   : > { %v1206_v18 = vcombine.low %v1173_v50, %v1189_v53  ;;  %v1207_v62 = vcombine.high %v1173_v50, %v1189_v53  ;;  %v2049_v63 = vrot.slane %v2035_v24, %v6655_v0  ;;  %v2050_v1 = vcombine.low %v6844_v54, %v6847_v43  ;;  %v1557_v24 = vpop.permute.xlu1 %1556 }
 0x3b9   : > { %v2051_v35 = vcombine.high %v6844_v54, %v6847_v43  ;;  %v1198_v2 = vrot.slane %v1190_v59, %v6655_v0  ;;  %v1205_v3 = vrot.slane %v1191_v61, %v6655_v0  ;;  %v1594_v6 = vcombine.low %v6813_v55, %v1567_v58 }
 0x3ba   : > { %v1214_v5 = vrot.slane %v1206_v18, %v6655_v0  ;;  %v1221_v23 = vrot.slane %v1207_v62, %v6655_v0  ;;  %v1595_v42 = vcombine.high %v6813_v55, %v1567_v58  ;;  %v6871_v10 = vld [vmem:[#allocation3 + $0x8] sm:$0xff]  ;;  %v2052_v21 = vcombine.low %v6852_v56, %v2049_v63  ;;  %v1559_v58 = vpop.permute.xlu0 %1558 }
 0x3bb   : > { %v2054_v11 = vcombine.low %v1198_v2, %v1205_v3  ;;  %v5127_v16 = vcombine.high %v1198_v2, %v1205_v3  ;;  %v6873_v20 = vld [vmem:[#allocation3 + $0x28] sm:$0xff]  ;;  %v2053_v55 = vcombine.high %v6852_v56, %v2049_v63  ;;  %v1602_v22 = vrot.slane %v1594_v6, %v6652_v60  ;;  %5465 = vmatprep.subr.msk.bf16.mxu1 %vm2130_vm0, %v6871_v10 }
 0x3bc   : > { %v2070_v19 = vcombine.low %v1214_v5, %v1221_v23  ;;  %v5128_v38 = vcombine.high %v1214_v5, %v1221_v23  ;;  %v1609_v36 = vrot.slane %v1595_v42, %v6652_v60  ;;  %5469 = vmatprep.subr.msk.bf16.mxu0 %vm2130_vm0, %v6873_v20  ;;  %v1646_v56 = vcombine.low %v6621_v44, %v1557_v24  ;;  %v1569_v9 = vpop.permute.xlu1 %1568 }
 0x3bd   : > { %v2061_v31 = vrot.slane %v2054_v11, %v6652_v60  ;;  %v2069_v51 = vrot.slane %v5127_v16, %v6652_v60  ;;  %v1610_v29 = vcombine.low %v1586_v4, %v1602_v22  ;;  %v1611_v32 = vcombine.high %v1586_v4, %v1602_v22 }
 0x3be   : > { %v2077_v25 = vrot.slane %v2070_v19, %v6652_v60  ;;  %v2085_v28 = vrot.slane %v5128_v38, %v6652_v60  ;;  %v1626_v12 = vcombine.low %v1593_v57, %v1609_v36  ;;  %v1627_v14 = vcombine.high %v1593_v57, %v1609_v36 }
 0x3bf   : > { %v2086_v37 = vcombine.low %v2061_v31, %v2069_v51  ;;  %v2087_v26 = vcombine.high %v2061_v31, %v2069_v51  ;;  %v1618_v34 = vrot.slane %v1610_v29, %v6655_v0  ;;  %v1625_v41 = vrot.slane %v1611_v32, %v6655_v0 }
 0x3c0   : > { %v2102_v27 = vcombine.low %v2077_v25, %v2085_v28  ;;  %v2103_v33 = vcombine.high %v2077_v25, %v2085_v28  ;;  %v1634_v47 = vrot.slane %v1626_v12, %v6655_v0  ;;  %v1641_v48 = vrot.slane %v1627_v14, %v6655_v0 }
 0x3c1   : > { %v2094_v49 = vrot.slane %v2086_v37, %v6655_v0  ;;  %v2101_v50 = vrot.slane %v2087_v26, %v6655_v0  ;;  %v2427_v54 = vcombine.low %v1618_v34, %v1625_v41  ;;  %v5137_v43 = vcombine.high %v1618_v34, %v1625_v41  ;;  %v2735_v37 = vld [vmem:[#allocation3 + $0x10] sm:$0xff]  ;;  %v6922_v34 = vpop.permute.xlu1 %1548 }
 0x3c2   : > { %v2110_v52 = vrot.slane %v2102_v27, %v6655_v0  ;;  %v2117_v53 = vrot.slane %v2103_v33, %v6655_v0  ;;  %v2443_v4 = vcombine.low %v1634_v47, %v1641_v48  ;;  %v5138_v57 = vcombine.high %v1634_v47, %v1641_v48 }
 0x3c3   : > { %v2434_v23 = vrot.slane %v2427_v54, %v6652_v60  ;;  %v2442_v6 = vrot.slane %v5137_v43, %v6652_v60  ;;  %v1662_v11 = vcombine.low %v6865_v7, %v1569_v9  ;;  %v1663_v16 = vcombine.high %v6865_v7, %v1569_v9 }
 0x3c4   : > { %v2118_v59 = vcombine.low %v2094_v49, %v2110_v52  ;;  %v2119_v61 = vcombine.high %v2094_v49, %v2110_v52  ;;  %v2120_v18 = vcombine.low %v2101_v50, %v2117_v53  ;;  %v2121_v62 = vcombine.high %v2101_v50, %v2117_v53 }
 0x3c5   : > { %v2450_v42 = vrot.slane %v2443_v4, %v6652_v60  ;;  %v2458_v8 = vrot.slane %v5138_v57, %v6652_v60  ;;  %v2459_v19 = vcombine.low %v2434_v23, %v2442_v6  ;;  %v2460_v38 = vcombine.high %v2434_v23, %v2442_v6 }
 0x3c6   : > { %v2123_v63 = vpack.c.bf16 %v2118_v59, %v2050_v1  ;;  %v2125_v2 = vpack.c.bf16 %v2119_v61, %v2051_v35  ;;  %v2127_v3 = vpack.c.bf16 %v2120_v18, %v2052_v21  ;;  %v2129_v5 = vpack.c.bf16 %v2121_v62, %v2053_v55  ;;  %v1571_v35 = vpop.permute.xlu0 %1570 }
 0x3c7   : > { %v1647_v1 = vcombine.high %v6621_v44, %v1557_v24  ;;  %v2475_v21 = vcombine.low %v2450_v42, %v2458_v8  ;;  %v1654_v55 = vrot.slane %v1646_v56, %v6652_v60  ;;  %v1670_v36 = vrot.slane %v1662_v11, %v6652_v60 }
 0x3c8   : > { %2132 = vst.msk [vmem:[#allocation2 + $0x8] sm:$0xff] %vm2130_vm0, %v2123_v63  ;;  %2134 = vst.msk [vmem:[#allocation2 + $0x18] sm:$0xff] %vm2130_vm0, %v2125_v2  ;;  %v1677_v31 = vrot.slane %v1663_v16, %v6652_v60  ;;  %v1730_v51 = vcombine.low %v6879_v30, %v1571_v35  ;;  %v1714_v44 = vcombine.low %v6627_v45, %v1559_v58  ;;  %v2752_v7 = vsel %vm2130_vm0, %v6871_v10, 0 }
 0x3c9   : > { %2136 = vst.msk [vmem:[#allocation2 + $0x28] sm:$0xff] %vm2130_vm0, %v2127_v3  ;;  %2138 = vst.msk [vmem:[#allocation2 + $0x38] sm:$0xff] %vm2130_vm0, %v2129_v5  ;;  %v1661_v22 = vrot.slane %v1647_v1, %v6652_v60  ;;  %v1731_v25 = vcombine.high %v6879_v30, %v1571_v35  ;;  %v2874_v28 = vsel %vm2130_vm0, %v6873_v20, 0  ;;  %v1678_v29 = vcombine.low %v1654_v55, %v1670_v36  ;;  %v1561_v5 = vpop.permute.xlu1 %1560 }
 0x3ca   : > { %v1679_v32 = vcombine.high %v1654_v55, %v1670_v36  ;;  %5383 = vmatpush3.bf16.xpose.msra.mxu1 %v2752_v7  ;;  %v2476_v26 = vcombine.high %v2450_v42, %v2458_v8  ;;  %v1715_v27 = vcombine.high %v6627_v45, %v1559_v58  ;;  %v1738_v33 = vrot.slane %v1730_v51, %v6652_v60  ;;  %v2727_v36 = vld [vmem:[#allocation2 + $0x10] sm:$0xff] }
 0x3cb   : > { %v1694_v12 = vcombine.low %v1661_v22, %v1677_v31  ;;  %v1695_v14 = vcombine.high %v1661_v22, %v1677_v31  ;;  %5399 = vmatpush3.bf16.xpose.msra.mxu0 %v2874_v28  ;;  %5466 = vmatprep.subr.msk.bf16.mxu1 %vm2130_vm0, %v2735_v37  ;;  %v1686_v10 = vrot.slane %v1678_v29, %v6655_v0  ;;  %v2810_v23 = vsel %vm2130_vm0, %v2735_v37, 0 }
 0x3cc   : > { %v1693_v20 = vrot.slane %v1679_v32, %v6655_v0  ;;  %v2467_v47 = vrot.slane %v2459_v19, %v6655_v0  ;;  %v2474_v48 = vrot.slane %v2460_v38, %v6655_v0  ;;  %v1722_v45 = vrot.slane %v1714_v44, %v6652_v60  ;;  %v2736_v19 = vld [vmem:[#allocation3 + $0x18] sm:$0xff] }
 0x3cd   : > { %v1702_v30 = vrot.slane %v1694_v12, %v6655_v0  ;;  %v1709_v41 = vrot.slane %v1695_v14, %v6655_v0  ;;  %v1745_v24 = vrot.slane %v1731_v25, %v6652_v60  ;;  %v2483_v43 = vrot.slane %v2475_v21, %v6655_v0 }
 0x3ce   : > { %v2495_v49 = vcombine.low %v1686_v10, %v1693_v20  ;;  %v5139_v50 = vcombine.high %v1686_v10, %v1693_v20  ;;  %v1729_v4 = vrot.slane %v1715_v27, %v6652_v60  ;;  %v1746_v57 = vcombine.low %v1722_v45, %v1738_v33  ;;  %v1573_v27 = vpop.permute.xlu1 %1572 }
 0x3cf   : > { %v2511_v52 = vcombine.low %v1702_v30, %v1709_v41  ;;  %v5140_v53 = vcombine.high %v1702_v30, %v1709_v41  ;;  %v2726_v54 = vld [vmem:[#allocation2 + $0x8] sm:$0xff]  ;;  %v1747_v58 = vcombine.high %v1722_v45, %v1738_v33  ;;  %v2490_v63 = vrot.slane %v2476_v26, %v6655_v0 }
 0x3d0   : > { %v2502_v59 = vrot.slane %v2495_v49, %v6652_v60  ;;  %v2510_v61 = vrot.slane %v5139_v50, %v6652_v60  ;;  %v2730_v56 = vld [vmem:[#allocation2 + $0x28] sm:$0xff]  ;;  %v1762_v2 = vcombine.low %v1729_v4, %v1745_v24  ;;  %v1763_v3 = vcombine.high %v1729_v4, %v1745_v24  ;;  %v2739_v50 = vld [vmem:[#allocation3 + $0x30] sm:$0xff] }
 0x3d1   : > { %v2518_v18 = vrot.slane %v2511_v52, %v6652_v60  ;;  %v2526_v62 = vrot.slane %v5140_v53, %v6652_v60  ;;  %5385 = vmatmul.mubr.msk.bf16.vlgmr.msra.gmra.mrb[4].mxu1 %vm2130_vm0, %v2726_v54  ;;  %v2491_v1 = vcombine.low %v2467_v47, %v2483_v43  ;;  %v2492_v35 = vcombine.high %v2467_v47, %v2483_v43 }
 0x3d2   : > { %v2527_v6 = vcombine.low %v2502_v59, %v2510_v61  ;;  %v2528_v42 = vcombine.high %v2502_v59, %v2510_v61  ;;  %5389 = vmatpush3.bf16.xpose.msra.mxu1 %v2810_v23  ;;  %v1754_v11 = vrot.slane %v1746_v57, %v6655_v0  ;;  %v1761_v16 = vrot.slane %v1747_v58, %v6655_v0 }
 0x3d3   : > { %v2543_v8 = vcombine.low %v2518_v18, %v2526_v62  ;;  %v2544_v9 = vcombine.high %v2518_v18, %v2526_v62  ;;  %5401 = vmatmul.mubr.msk.bf16.vlgmr.msra.gmra.mrb[8].mxu0 %vm2130_vm0, %v2730_v56  ;;  %5467 = vmatprep.subr.msk.bf16.mxu1 %vm2130_vm0, %v2736_v19  ;;  %v2493_v31 = vcombine.low %v2474_v48, %v2490_v63 }
 0x3d4   : > { %v2535_v38 = vrot.slane %v2527_v6, %v6655_v0  ;;  %v2542_v21 = vrot.slane %v2528_v42, %v6655_v0  ;;  %v2494_v51 = vcombine.high %v2474_v48, %v2490_v63  ;;  %v1770_v44 = vrot.slane %v1762_v2, %v6655_v0  ;;  %5392 = vmatprep.mubr.msk.bf16.mxu1 %vm2130_vm0, %v2727_v36  ;;  %v2740_v36 = vld [vmem:[#allocation3 + $0x38] sm:$0xff] }
 0x3d5   : > { %v2551_v55 = vrot.slane %v2543_v8, %v6655_v0  ;;  %v2558_v22 = vrot.slane %v2544_v9, %v6655_v0  ;;  %v1777_v25 = vrot.slane %v1763_v3, %v6655_v0  ;;  %v2563_v12 = vcombine.low %v1754_v11, %v1761_v16 }
 0x3d6   : > { %v5141_v14 = vcombine.high %v1754_v11, %v1761_v16  ;;  %v1782_v37 = vcombine.low %v6637_v46, %v1561_v5  ;;  %v1783_v26 = vcombine.high %v6637_v46, %v1561_v5  ;;  %v1798_v48 = vcombine.low %v6922_v34, %v1573_v27 }
 0x3d7   : > { %v2559_v7 = vcombine.low %v2535_v38, %v2551_v55  ;;  %v2560_v28 = vcombine.high %v2535_v38, %v2551_v55  ;;  %v2561_v29 = vcombine.low %v2542_v21, %v2558_v22  ;;  %v2562_v32 = vcombine.high %v2542_v21, %v2558_v22  ;;  %v2731_v22 = vld [vmem:[#allocation2 + $0x30] sm:$0xff] }
 0x3d8   : > { %v2579_v41 = vcombine.low %v1770_v44, %v1777_v25  ;;  %v5142_v47 = vcombine.high %v1770_v44, %v1777_v25  ;;  %v1799_v45 = vcombine.high %v6922_v34, %v1573_v27  ;;  %v2813_v46 = vsel %vm2130_vm0, %v2736_v19, 0 }
 0x3d9   : > { %v2699_v33 = vpack.c.bf16 %v2559_v7, %v2491_v1  ;;  %v2701_v10 = vpack.c.bf16 %v2560_v28, %v2492_v35  ;;  %v2703_v20 = vpack.c.bf16 %v2561_v29, %v2493_v31  ;;  %v2705_v30 = vpack.c.bf16 %v2562_v32, %v2494_v51  ;;  %v2728_v35 = vld [vmem:[#allocation2 + $0x18] sm:$0xff] }
 0x3da   : > { %v2570_v24 = vrot.slane %v2563_v12, %v6652_v60  ;;  %v2578_v49 = vrot.slane %v5141_v14, %v6652_v60  ;;  %5391 = vmatpush3.bf16.xpose.msra.mxu1 %v2813_v46  ;;  %v1790_v52 = vrot.slane %v1782_v37, %v6652_v60  ;;  %v1797_v53 = vrot.slane %v1783_v26, %v6652_v60 }
 0x3db   : > { %2707 = vst.msk [vmem:[#allocation4] sm:$0xff] %vm2130_vm0, %v2699_v33  ;;  %2709 = vst.msk [vmem:[#allocation4 + $0x10] sm:$0xff] %vm2130_vm0, %v2701_v10  ;;  %v1806_v54 = vrot.slane %v1798_v48, %v6652_v60  ;;  %v1813_v43 = vrot.slane %v1799_v45, %v6652_v60  ;;  %5470 = vmatprep.subr.msk.bf16.mxu1 %vm2130_vm0, %v2739_v50  ;;  %v2586_v34 = vrot.slane %v2579_v41, %v6652_v60 }
 0x3dc   : > { %2711 = vst.msk [vmem:[#allocation4 + $0x20] sm:$0xff] %vm2130_vm0, %v2703_v20  ;;  %2713 = vst.msk [vmem:[#allocation4 + $0x30] sm:$0xff] %vm2130_vm0, %v2705_v30  ;;  %v2594_v4 = vrot.slane %v5142_v47, %v6652_v60  ;;  %v2595_v18 = vcombine.low %v2570_v24, %v2578_v49  ;;  %v2596_v3 = vcombine.high %v2570_v24, %v2578_v49  ;;  %v2932_v16 = vsel %vm2130_vm0, %v2739_v50, 0 }
 0x3dd   : > { %v1814_v57 = vcombine.low %v1790_v52, %v1806_v54  ;;  %v1815_v58 = vcombine.high %v1790_v52, %v1806_v54  ;;  %v1830_v59 = vcombine.low %v1797_v53, %v1813_v43  ;;  %v1831_v61 = vcombine.high %v1797_v53, %v1813_v43  ;;  %v2732_v52 = vld [vmem:[#allocation2 + $0x38] sm:$0xff] }
 0x3de   : > { %v2611_v5 = vcombine.low %v2586_v34, %v2594_v4  ;;  %v2612_v23 = vcombine.high %v2586_v34, %v2594_v4  ;;  %v2603_v11 = vrot.slane %v2595_v18, %v6655_v0  ;;  %v2610_v31 = vrot.slane %v2596_v3, %v6655_v0 }
 0x3df   : > { %v1822_v62 = vrot.slane %v1814_v57, %v6655_v0  ;;  %v1829_v56 = vrot.slane %v1815_v58, %v6655_v0  ;;  %v1838_v63 = vrot.slane %v1830_v59, %v6655_v0  ;;  %v1845_v2 = vrot.slane %v1831_v61, %v6655_v0 }
 0x3e0   : > { %v2619_v51 = vrot.slane %v2611_v5, %v6655_v0  ;;  %v2626_v44 = vrot.slane %v2612_v23, %v6655_v0  ;;  %v2935_v48 = vsel %vm2130_vm0, %v2740_v36, 0 }
 0x3e1   : > { %v2631_v42 = vcombine.low %v1822_v62, %v1829_v56  ;;  %v5143_v8 = vcombine.high %v1822_v62, %v1829_v56  ;;  %v2647_v9 = vcombine.low %v1838_v63, %v1845_v2  ;;  %v5144_v1 = vcombine.high %v1838_v63, %v1845_v2  ;;  %5393 = vmatmul.mubr.msk.bf16.vlgmr.msra.gmra.mrb[8].mxu1 %vm2130_vm0, %v2728_v35 }
 0x3e2   : > { %v3138_v6 = vld [vmem:[#allocation4] sm:$0xff]  ;;  %5405 = vmatpush3.bf16.xpose.msra.mxu1 %v2932_v16  ;;  %5408 = vmatprep.mubr.msk.bf16.mxu1 %vm2130_vm0, %v2731_v22  ;;  %v2627_v26 = vcombine.low %v2603_v11, %v2619_v51  ;;  %v2628_v27 = vcombine.high %v2603_v11, %v2619_v51  ;;  %v2629_v33 = vcombine.low %v2610_v31, %v2626_v44  ;;  %v3140_v50 = vld [vmem:[#allocation4 + $0x10] sm:$0xff] }
 0x3e3   : > { %5412 = vmatprep.subr.bf16.mxu0 %v3138_v6  ;;  %v2638_v19 = vrot.slane %v2631_v42, %v6652_v60  ;;  %v2646_v38 = vrot.slane %v5143_v8, %v6652_v60  ;;  %v2654_v21 = vrot.slane %v2647_v9, %v6652_v60  ;;  %v2662_v55 = vrot.slane %v5144_v1, %v6652_v60  ;;  %v6997_v43 = vld [vmem:[#allocation4 + $0x20] sm:$0xff]  ;;  %v7000_v34 = vld [vmem:[#allocation4 + $0x30] sm:$0xff] }
 0x3e4   : > { %5413 = vmatpush3.bf16.msra.mxu0 %v3138_v6  ;;  %5471 = vmatprep.subr.msk.bf16.mxu1 %vm2130_vm0, %v2740_v36  ;;  %v2630_v10 = vcombine.high %v2610_v31, %v2626_v44 }
 0x3e5   : > { %v2663_v25 = vcombine.low %v2638_v19, %v2646_v38  ;;  %v2664_v7 = vcombine.high %v2638_v19, %v2646_v38  ;;  %v2679_v28 = vcombine.low %v2654_v21, %v2662_v55  ;;  %v2680_v29 = vcombine.high %v2654_v21, %v2662_v55 }
 0x3e7   : > { %v2671_v32 = vrot.slane %v2663_v25, %v6655_v0  ;;  %v2678_v12 = vrot.slane %v2664_v7, %v6655_v0  ;;  %v2687_v14 = vrot.slane %v2679_v28, %v6655_v0  ;;  %v2694_v37 = vrot.slane %v2680_v29, %v6655_v0 }
 0x3e9   : > { %v2695_v20 = vcombine.low %v2671_v32, %v2687_v14  ;;  %v2696_v30 = vcombine.high %v2671_v32, %v2687_v14  ;;  %v2697_v41 = vcombine.low %v2678_v12, %v2694_v37  ;;  %v2698_v47 = vcombine.high %v2678_v12, %v2694_v37 }
 0x3ea   : > { %5407 = vmatpush3.bf16.xpose.msra.mxu1 %v2935_v48 }
 0x3eb   : > { %v2700_v45 = vpack.c.bf16 %v2695_v20, %v2627_v26  ;;  %v2702_v46 = vpack.c.bf16 %v2696_v30, %v2628_v27  ;;  %v2704_v24 = vpack.c.bf16 %v2697_v41, %v2629_v33  ;;  %v2706_v49 = vpack.c.bf16 %v2698_v47, %v2630_v10  ;;  %5420 = vmatprep.subr.bf16.mxu1 %v3140_v50 }
 0x3ed   : > { %2708 = vst.msk [vmem:[#allocation4 + $0x8] sm:$0xff] %vm2130_vm0, %v2700_v45  ;;  %2710 = vst.msk [vmem:[#allocation4 + $0x18] sm:$0xff] %vm2130_vm0, %v2702_v46 }
 0x3ee   : > { %2712 = vst.msk [vmem:[#allocation4 + $0x28] sm:$0xff] %vm2130_vm0, %v2704_v24  ;;  %2714 = vst.msk [vmem:[#allocation4 + $0x38] sm:$0xff] %vm2130_vm0, %v2706_v49 }
 0x3f1   : > { %5409 = vmatmul.mubr.msk.bf16.vlgmr.msra.gmra.mrb[12].mxu1 %vm2130_vm0, %v2732_v52 }
 0x3f2   : > { %5421 = vmatpush3.bf16.msra.mxu1 %v3140_v50 }
 0x3f4   : > { %v3139_v53 = vld [vmem:[#allocation4 + $0x8] sm:$0xff]  ;;  %v3141_v54 = vld [vmem:[#allocation4 + $0x18] sm:$0xff] }
 0x3f5   : > { %5414 = vmatprep.subr.bf16.mxu0 %v3139_v53  ;;  %5422 = vmatprep.subr.bf16.mxu1 %v3141_v54 }
 0x3f6   : > { %5415 = vmatpush3.bf16.msra.mxu0 %v3139_v53  ;;  %5423 = vmatpush3.bf16.msra.mxu1 %v3141_v54 }
 0x3f7   : > { %5428 = vmatprep.subr.bf16.mxu0 %v6997_v43  ;;  %5436 = vmatprep.subr.bf16.mxu1 %v7000_v34 }
 0x4a4   : > { %v5386_v4 = vpop.f32.mrb[4].mxu1 }
 0x4a5   : > { %v2788_v57 = vpop.f32.mrb[5].mxu1  ;;  %v2992_v58 = vsel %vm2130_vm0, %v5386_v4, -inf }
 0x4a6   : > { %v7004_v59 = vpop.f32.mrb[8].mxu0  ;;  %2993 = vmax.xlane.f32.xlu0 %v2992_v58  ;;  %v5387_v61 = vpop.f32.mrb[6].mxu1  ;;  %v2986_v3 = vsel %vm2130_vm0, %v2788_v57, -inf }
 0x4a7   : > { %v2910_v18 = vpop.f32.mrb[9].mxu0  ;;  %v2791_v62 = vpop.f32.mrb[7].mxu1  ;;  %v2995_v56 = vsel %vm2130_vm0, %v5387_v61, -inf  ;;  %v3016_v21 = vsel %vm2130_vm0, %v7004_v59, -inf }
 0x4a8   : > { %v7007_v63 = vpop.f32.mrb[10].mxu0  ;;  %2996 = vmax.xlane.f32.xlu1 %v2995_v56  ;;  %v2989_v5 = vsel %vm2130_vm0, %v2791_v62, -inf  ;;  %v3010_v23 = vsel %vm2130_vm0, %v2910_v18, -inf }
 0x4a9   : > { %v2913_v2 = vpop.f32.mrb[11].mxu0  ;;  %v3019_v19 = vsel %vm2130_vm0, %v7007_v63, -inf }
 0x4aa   : > { %2987 = vmax.xlane.f32.xlu0 %v2986_v3  ;;  %v3013_v6 = vsel %vm2130_vm0, %v2913_v2, -inf }
 0x4ac   : > { %2990 = vmax.xlane.f32.xlu1 %v2989_v5 }
 0x4ae   : > { %3011 = vmax.xlane.f32.xlu0 %v3010_v23 }
 0x4b0   : > { %3014 = vmax.xlane.f32.xlu1 %v3013_v6 }
 0x4b4   : > { %v7013_v42 = vpop.f32.mrb[8].mxu1 }
 0x4b5   : > { %v7015_v8 = vpop.f32.mrb[9].mxu1  ;;  %v3004_v9 = vsel %vm2130_vm0, %v7013_v42, -inf }
 0x4b6   : > { %3005 = vmax.xlane.f32.xlu0 %v3004_v9  ;;  %v7019_v1 = vpop.f32.mrb[10].mxu1  ;;  %v2998_v16 = vsel %vm2130_vm0, %v7015_v8, -inf }
 0x4b7   : > { %v7021_v35 = vpop.f32.mrb[11].mxu1  ;;  %v3007_v11 = vsel %vm2130_vm0, %v7019_v1, -inf }
 0x4b8   : > { %3008 = vmax.xlane.f32.xlu1 %v3007_v11  ;;  %v3001_v38 = vsel %vm2130_vm0, %v7021_v35, -inf }
 0x4ba   : > { %2999 = vmax.xlane.f32.xlu0 %v2998_v16 }
 0x4bc   : > { %3020 = vmax.xlane.f32.xlu1 %v3019_v19  ;;  %v3143_v19 = vld [vmem:[#allocation4 + $0x28] sm:$0xff] }
 0x4be   : > { %3002 = vmax.xlane.f32.xlu0 %v3001_v38 }
 0x4c2   : > { %3017 = vmax.xlane.f32.xlu0 %v3016_v21 }
 0x4c4   : > { %v7033_v55 = vpop.f32.mrb[12].mxu1 }
 0x4c5   : > { %v7035_v22 = vpop.f32.mrb[13].mxu1  ;;  %v3028_v25 = vsel %vm2130_vm0, %v7033_v55, -inf }
 0x4c6   : > { %v7037_v36 = vpop.f32.mrb[14].mxu1  ;;  %v3022_v31 = vsel %vm2130_vm0, %v7035_v22, -inf }
 0x4c7   : > { %3023 = vmax.xlane.f32.xlu0 %v3022_v31  ;;  %v7041_v51 = vpop.f32.mrb[15].mxu1  ;;  %v3031_v7 = vsel %vm2130_vm0, %v7037_v36, -inf }
 0x4c8   : > { %v3025_v44 = vsel %vm2130_vm0, %v7041_v51, -inf }
 0x4c9   : > { %3026 = vmax.xlane.f32.xlu1 %v3025_v44 }
 0x4cb   : > { %3029 = vmax.xlane.f32.xlu0 %v3028_v25 }
 0x4cd   : > { %3032 = vmax.xlane.f32.xlu1 %v3031_v7 }
 0x533   : > { %v2994_v28 = vpop.xlane.xlu0 %2993 }
 0x534   : > { %v3036_v29 = vsub.f32 %v5386_v4, %v2994_v28 }
 0x535   : > { %v2997_v32 = vpop.xlane.xlu1 %2996 }
 0x536   : > { %v3054_v12 = vmul.f32 1.442695, %v3036_v29  ;;  %v3037_v14 = vsub.f32 %v5387_v61, %v2997_v32 }
 0x537   : > { %v2988_v37 = vpop.xlane.xlu0 %2987 }
 0x538   : > { %5769 = vpow2.f32 %v3054_v12  ;;  %v3056_v26 = vmul.f32 1.442695, %v3037_v14  ;;  %v3034_v27 = vsub.f32 %v2788_v57, %v2988_v37 }
 0x539   : > { %v2991_v33 = vpop.xlane.xlu1 %2990 }
 0x53a   : > { %5771 = vpow2.f32 %v3056_v26  ;;  %v3050_v10 = vmul.f32 1.442695, %v3034_v27  ;;  %v3035_v20 = vsub.f32 %v2791_v62, %v2991_v33 }
 0x53b   : > { %v3012_v30 = vpop.xlane.xlu0 %3011 }
 0x53c   : > { %v3052_v41 = vmul.f32 1.442695, %v3035_v20  ;;  %v3042_v47 = vsub.f32 %v2910_v18, %v3012_v30  ;;  %5773 = vpow2.f32 %v3050_v10 }
 0x53d   : > { %v3015_v48 = vpop.xlane.xlu1 %3014 }
 0x53e   : > { %5775 = vpow2.f32 %v3052_v41  ;;  %v3066_v45 = vmul.f32 1.442695, %v3042_v47  ;;  %v3043_v46 = vsub.f32 %v2913_v2, %v3015_v48 }
 0x540   : > { %v3068_v24 = vmul.f32 1.442695, %v3043_v46  ;;  %5777 = vpow2.f32 %v3066_v45 }
 0x542   : > { %v5770_v49 = vpop.eup %5769  ;;  %5779 = vpow2.f32 %v3068_v24 }
 0x543   : > { %v3088_v50 = vsel %vm2130_vm0, %v5770_v49, 0.0  ;;  %v3006_v53 = vpop.xlane.xlu0 %3005 }
 0x544   : > { %v5772_v52 = vpop.eup %5771  ;;  %3089 = vadd.xlane.f32.xlu0 %v3088_v50  ;;  %v3040_v57 = vsub.f32 %v7013_v42, %v3006_v53 }
 0x545   : > { %v3091_v54 = vsel %vm2130_vm0, %v5772_v52, 0.0  ;;  %v3131_v4 = vpack.c.bf16 %v5772_v52, %v5770_v49  ;;  %v3009_v61 = vpop.xlane.xlu1 %3008 }
 0x546   : > { %3092 = vadd.xlane.f32.xlu1 %v3091_v54  ;;  %v7052_v58 = vpop.eup %5773  ;;  %v3062_v62 = vmul.f32 1.442695, %v3040_v57  ;;  %v3041_v56 = vsub.f32 %v7019_v1, %v3009_v61 }
 0x547   : > { %v3000_v2 = vpop.xlane.xlu0 %2999  ;;  %v3082_v49 = vsel %vm2130_vm0, %v7052_v58, 0.0 }
 0x548   : > { %v5776_v18 = vpop.eup %5775  ;;  %v3064_v5 = vmul.f32 1.442695, %v3041_v56  ;;  %v3038_v23 = vsub.f32 %v7015_v8, %v3000_v2  ;;  %5781 = vpow2.f32 %v3062_v62 }
 0x549   : > { %v3130_v3 = vpack.c.bf16 %v5776_v18, %v7052_v58  ;;  %v3021_v9 = vpop.xlane.xlu1 %3020 }
 0x54a   : > { %v7057_v6 = vpop.eup %5777  ;;  %5783 = vpow2.f32 %v3064_v5  ;;  %v3045_v11 = vsub.f32 %v7007_v63, %v3021_v9  ;;  %v3058_v16 = vmul.f32 1.442695, %v3038_v23  ;;  %v5673_v23 = vld [vmem:[#allocation13] sm:$0xff]   ;;  %v5675_v9 = vld [vmem:[#allocation13 + $0x10] sm:$0xff]  }
 0x54b   : > { %5416 = vmatprep.mubr.msk.bf16.mxu0 %vm2130_vm0, %v3130_v3  ;;  %v3003_v1 = vpop.xlane.xlu0 %3002  ;;  %v3106_v54 = vsel %vm2130_vm0, %v7057_v6, 0.0 }
 0x54c   : > { %v5780_v42 = vpop.eup %5779  ;;  %5417 = vmatmul.mubr.msk.bf16.vlgmr.msra.gmra.mrb[12].mxu0 %vm2130_vm0, %v3131_v4  ;;  %v3072_v8 = vmul.f32 1.442695, %v3045_v11  ;;  %v3039_v21 = vsub.f32 %v7021_v35, %v3003_v1 }
 0x54d   : > { %5429 = vmatpush3.bf16.msra.mxu0 %v6997_v43  ;;  %v3134_v38 = vpack.c.bf16 %v5780_v42, %v7057_v6  ;;  %v5674_v6 = vld [vmem:[#allocation13 + $0x8] sm:$0xff]  }
 0x54e   : > { %5430 = vmatprep.subr.bf16.mxu0 %v3143_v19  ;;  %5785 = vpow2.f32 %v3072_v8  ;;  %v3060_v31 = vmul.f32 1.442695, %v3039_v21 }
 0x54f   : > { %5432 = vmatprep.mubr.msk.bf16.mxu0 %vm2130_vm0, %v3134_v38  ;;  %5787 = vpow2.f32 %v3058_v16  ;;  %v3018_v44 = vpop.xlane.xlu0 %3017 }
 0x550   : > { %5789 = vpow2.f32 %v3060_v31  ;;  %v3044_v63 = vsub.f32 %v7004_v59, %v3018_v44 }
 0x551   : > { %5431 = vmatpush3.bf16.msra.mxu0 %v3143_v19 }
 0x552   : > { %v3070_v25 = vmul.f32 1.442695, %v3044_v63  ;;  %v5782_v7 = vpop.eup %5781  ;;  %5444 = vmatprep.subr.bf16.mxu0 %v5673_v23 }
 0x553   : > { %v3100_v58 = vsel %vm2130_vm0, %v5782_v7, 0.0 }
 0x554   : > { %v5784_v43 = vpop.eup %5783  ;;  %5791 = vpow2.f32 %v3070_v25  ;;  %v3024_v28 = vpop.xlane.xlu0 %3023 }
 0x555   : > { %v3046_v29 = vsub.f32 %v7035_v22, %v3024_v28  ;;  %v3133_v32 = vpack.c.bf16 %v5784_v43, %v5782_v7 }
 0x556   : > { %v3027_v35 = vpop.xlane.xlu1 %3026 }
 0x557   : > { %v3074_v12 = vmul.f32 1.442695, %v3046_v29  ;;  %v3047_v14 = vsub.f32 %v7041_v51, %v3027_v35  ;;  %v3085_v51 = vsel %vm2130_vm0, %v5776_v18, 0.0 }
 0x558   : > { %v5786_v37 = vpop.eup %5785  ;;  %v3030_v26 = vpop.xlane.xlu0 %3029 }
 0x559   : > { %v5788_v27 = vpop.eup %5787  ;;  %v3076_v33 = vmul.f32 1.442695, %v3047_v14  ;;  %v3048_v10 = vsub.f32 %v7033_v55, %v3030_v26  ;;  %v3115_v59 = vsel %vm2130_vm0, %v5786_v37, 0.0  ;;  %5793 = vpow2.f32 %v3074_v12  ;;  %v3145_v55 = vld [vmem:[#allocation4 + $0x38] sm:$0xff] }
 0x55a   : > { %v5790_v20 = vpop.eup %5789  ;;  %3116 = vadd.xlane.f32.xlu1 %v3115_v59  ;;  %v3033_v30 = vpop.xlane.xlu1 %3032  ;;  %v3094_v56 = vsel %vm2130_vm0, %v5788_v27, 0.0 }
 0x55b   : > { %5795 = vpow2.f32 %v3076_v33  ;;  %v3078_v41 = vmul.f32 1.442695, %v3048_v10  ;;  %v3049_v22 = vsub.f32 %v7037_v36, %v3033_v30  ;;  %v3132_v47 = vpack.c.bf16 %v5790_v20, %v5788_v27 }
 0x55c   : > { %v3109_v36 = vsel %vm2130_vm0, %v5780_v42, 0.0  ;;  %v3097_v61 = vsel %vm2130_vm0, %v5790_v20, 0.0  ;;  %v5676_v42 = vld [vmem:[#allocation13 + $0x18] sm:$0xff]  }
 0x55d   : > { %v3080_v48 = vmul.f32 1.442695, %v3049_v22  ;;  %5424 = vmatprep.mubr.msk.bf16.mxu1 %vm2130_vm0, %v3132_v47  ;;  %5797 = vpow2.f32 %v3078_v41 }
 0x55e   : > { %v5792_v45 = vpop.eup %5791  ;;  %3086 = vadd.xlane.f32.xlu1 %v3085_v51  ;;  %5425 = vmatmul.mubr.msk.bf16.vlgmr.msra.gmra.mrb[16].mxu1 %vm2130_vm0, %v3133_v32 }
 0x55f   : > { %5799 = vpow2.f32 %v3080_v48  ;;  %5437 = vmatpush3.bf16.msra.mxu1 %v7000_v34  ;;  %v3112_v46 = vsel %vm2130_vm0, %v5792_v45, 0.0  ;;  %v3135_v24 = vpack.c.bf16 %v5786_v37, %v5792_v45  ;;  %v3103_v34 = vsel %vm2130_vm0, %v5784_v43, 0.0 }
 0x560   : > { %5438 = vmatprep.subr.bf16.mxu1 %v3145_v55  ;;  %3113 = vadd.xlane.f32.xlu0 %v3112_v46 }
 0x561   : > { %5433 = vmatmul.mubr.msk.bf16.vlgmr.msra.gmra.mrb[16].mxu0 %vm2130_vm0, %v3135_v24 }
 0x562   : > { %3110 = vadd.xlane.f32.xlu1 %v3109_v36  ;;  %5445 = vmatpush3.bf16.msra.mxu0 %v5673_v23 }
 0x563   : > { %5439 = vmatpush3.bf16.msra.mxu1 %v3145_v55  ;;  %v5794_v50 = vpop.eup %5793  ;;  %5446 = vmatprep.subr.bf16.mxu0 %v5674_v6 }
 0x564   : > { %3083 = vadd.xlane.f32.xlu0 %v3082_v49  ;;  %v3118_v3 = vsel %vm2130_vm0, %v5794_v50, 0.0 }
 0x565   : > { %v5796_v52 = vpop.eup %5795 }
 0x566   : > { %3104 = vadd.xlane.f32.xlu1 %v3103_v34  ;;  %v3136_v53 = vpack.c.bf16 %v5796_v52, %v5794_v50  ;;  %v3121_v62 = vsel %vm2130_vm0, %v5796_v52, 0.0  ;;  %5447 = vmatpush3.bf16.msra.mxu0 %v5674_v6 }
 0x567   : > { %v5798_v4 = vpop.eup %5797  ;;  %5448 = vmatprep.subr.bf16.mxu0 %v5675_v9 }
 0x568   : > { %3107 = vadd.xlane.f32.xlu0 %v3106_v54  ;;  %5440 = vmatprep.mubr.msk.bf16.mxu1 %vm2130_vm0, %v3136_v53  ;;  %v3124_v5 = vsel %vm2130_vm0, %v5798_v4, 0.0 }
 0x569   : > { %v5800_v57 = vpop.eup %5799 }
 0x56a   : > { %3098 = vadd.xlane.f32.xlu1 %v3097_v61  ;;  %v3137_v18 = vpack.c.bf16 %v5800_v57, %v5798_v4  ;;  %v3127_v2 = vsel %vm2130_vm0, %v5800_v57, 0.0  ;;  %5449 = vmatpush3.bf16.msra.mxu0 %v5675_v9 }
 0x56b   : > { %5450 = vmatprep.subr.bf16.mxu0 %v5676_v42 }
 0x56c   : > { %3101 = vadd.xlane.f32.xlu0 %v3100_v58  ;;  %5441 = vmatmul.mubr.msk.bf16.vlgmr.msra.gmra.mrb[20].mxu1 %vm2130_vm0, %v3137_v18 }
 0x56d   : > { %4445 = vmatprep.mubr.bf16.mxu1 %v6150_v39 }
 0x56e   : > { %3122 = vadd.xlane.f32.xlu1 %v3121_v62  ;;  %5451 = vmatpush3.bf16.msra.mxu0 %v5676_v42 }
 0x570   : > { %3095 = vadd.xlane.f32.xlu0 %v3094_v56 }
 0x572   : > { %3128 = vadd.xlane.f32.xlu1 %v3127_v2 }
 0x574   : > { %3119 = vadd.xlane.f32.xlu0 %v3118_v3 }
 0x578   : > { %3125 = vadd.xlane.f32.xlu0 %v3124_v5 }
 0x5d1   : > { %v3090_v16 = vpop.xlane.xlu0 %3089 }
 0x5d2   : > { %5801 = vrcp.f32 %v3090_v16 }
 0x5d3   : > { %v3093_v11 = vpop.xlane.xlu1 %3092 }
 0x5d4   : > { %5803 = vrcp.f32 %v3093_v11 }
 0x5dc   : > { %v5802_v14 = vpop.eup %5801 }
 0x5de   : > { %v5804_v37 = vpop.eup %5803 }
 0x5e7   : > { %v3117_v1 = vpop.xlane.xlu1 %3116 }
 0x5e8   : > { %5805 = vrcp.f32 %v3117_v1 }
 0x5eb   : > { %v3087_v38 = vpop.xlane.xlu1 %3086 }
 0x5ed   : > { %v3114_v19 = vpop.xlane.xlu0 %3113 }
 0x5ee   : > { %5807 = vrcp.f32 %v3114_v19 }
 0x5ef   : > { %v3111_v21 = vpop.xlane.xlu1 %3110 }
 0x5f1   : > { %v3084_v8 = vpop.xlane.xlu0 %3083 }
 0x5f2   : > { %5809 = vrcp.f32 %v3084_v8  ;;  %v5806_v33 = vpop.eup %5805 }
 0x5f3   : > { %v3105_v25 = vpop.xlane.xlu1 %3104 }
 0x5f5   : > { %v3108_v31 = vpop.xlane.xlu0 %3107 }
 0x5f6   : > { %5811 = vrcp.f32 %v3108_v31 }
 0x5f7   : > { %v3099_v29 = vpop.xlane.xlu1 %3098  ;;  %5813 = vrcp.f32 %v3087_v38 }
 0x5f8   : > { %5815 = vrcp.f32 %v3111_v21  ;;  %v5808_v20 = vpop.eup %5807 }
 0x5f9   : > { %v3102_v43 = vpop.xlane.xlu0 %3101  ;;  %5817 = vrcp.f32 %v3105_v25 }
 0x5fa   : > { %5819 = vrcp.f32 %v3099_v29 }
 0x5fb   : > { %v3123_v35 = vpop.xlane.xlu1 %3122  ;;  %5821 = vrcp.f32 %v3102_v43 }
 0x5fc   : > { %5823 = vrcp.f32 %v3123_v35  ;;  %v5810_v41 = vpop.eup %5809 }
 0x5fd   : > { %v3096_v32 = vpop.xlane.xlu0 %3095 }
 0x5fe   : > { %5825 = vrcp.f32 %v3096_v32 }
 0x5ff   : > { %v3129_v26 = vpop.xlane.xlu1 %3128 }
 0x600   : > { %5827 = vrcp.f32 %v3129_v26  ;;  %v5812_v48 = vpop.eup %5811 }
 0x601   : > { %v3120_v12 = vpop.xlane.xlu0 %3119  ;;  %v5814_v46 = vpop.eup %5813 }
 0x602   : > { %v5816_v50 = vpop.eup %5815 }
 0x603   : > { %v5818_v62 = vpop.eup %5817 }
 0x604   : > { %v5820_v3 = vpop.eup %5819 }
 0x605   : > { %v3126_v10 = vpop.xlane.xlu0 %3125  ;;  %v5822_v6 = vpop.eup %5821 }
 0x606   : > { %5829 = vrcp.f32 %v3126_v10  ;;  %v5824_v9 = vpop.eup %5823 }
 0x607   : > { %5831 = vrcp.f32 %v3120_v12 }
 0x608   : > { %v5826_v42 = vpop.eup %5825 }
 0x60a   : > { %v5828_v11 = vpop.eup %5827 }
 0x610   : > { %v5830_v16 = vpop.eup %5829 }
 0x611   : > { %v5832_v31 = vpop.eup %5831 }
 0x61f   : > { %v5418_v44 = vpop.f32.mrb[12].mxu0 }
 0x620   : > { %v3186_v63 = vpop.f32.mrb[13].mxu0  ;;  %v3384_v51 = vmul.f32 %v5802_v14, %v5418_v44 }
 0x621   : > { %v5419_v7 = vpop.f32.mrb[14].mxu0  ;;  %v3382_v24 = vmul.f32 %v5810_v41, %v3186_v63 }
 0x622   : > { %v3189_v28 = vpop.f32.mrb[15].mxu0  ;;  %v3385_v52 = vmul.f32 %v5804_v37, %v5419_v7 }
 0x623   : > { %v3383_v57 = vmul.f32 %v5814_v46, %v3189_v28 }
 0x631   : > { %v5426_v27 = vpop.f32.mrb[16].mxu1 }
 0x632   : > { %v3241_v59 = vpop.f32.mrb[17].mxu1  ;;  %v3388_v1 = vmul.f32 %v5822_v6, %v5426_v27 }
 0x633   : > { %v5427_v30 = vpop.f32.mrb[18].mxu1  ;;  %v3386_v19 = vmul.f32 %v5826_v42, %v3241_v59 }
 0x634   : > { %v3244_v22 = vpop.f32.mrb[19].mxu1  ;;  %v5434_v47 = vpop.f32.mrb[16].mxu0  ;;  %v3389_v38 = vmul.f32 %v5818_v62, %v5427_v30 }
 0x635   : > { %v3392_v45 = vmul.f32 %v5808_v20, %v5434_v47  ;;  %v3296_v55 = vpop.f32.mrb[17].mxu0  ;;  %v3387_v8 = vmul.f32 %v5820_v3, %v3244_v22 }
 0x636   : > { %v3390_v36 = vmul.f32 %v5812_v48, %v3296_v55  ;;  %v5435_v49 = vpop.f32.mrb[18].mxu0 }
 0x637   : > { %v3534_v34 = vcombine.low %v3384_v51, %v3392_v45  ;;  %v3535_v53 = vcombine.high %v3384_v51, %v3392_v45  ;;  %v3393_v54 = vmul.f32 %v5806_v33, %v5435_v49  ;;  %v3299_v4 = vpop.f32.mrb[19].mxu0 }
 0x638   : > { %v3398_v61 = vcombine.low %v3382_v24, %v3390_v36  ;;  %v3399_v18 = vcombine.high %v3382_v24, %v3390_v36  ;;  %v3391_v58 = vmul.f32 %v5816_v50, %v3299_v4 }
 0x639   : > { %v3602_v56 = vcombine.low %v3385_v52, %v3393_v54  ;;  %v3603_v2 = vcombine.high %v3385_v52, %v3393_v54  ;;  %v3542_v44 = vrot.slane %v3534_v34, %v6652_v60  ;;  %v3549_v63 = vrot.slane %v3535_v53, %v6652_v60 }
 0x63a   : > { %v3466_v5 = vcombine.low %v3383_v57, %v3391_v58  ;;  %v3467_v23 = vcombine.high %v3383_v57, %v3391_v58  ;;  %v3406_v25 = vrot.slane %v3398_v61, %v6652_v60  ;;  %v3413_v28 = vrot.slane %v3399_v18, %v6652_v60 }
 0x63b   : > { %v7099_v29 = vrot.slane %v3602_v56, %v6652_v60  ;;  %v7102_v32 = vrot.slane %v3603_v2, %v6652_v60 }
 0x63c   : > { %v7105_v14 = vrot.slane %v3466_v5, %v6652_v60  ;;  %v3481_v10 = vrot.slane %v3467_v23, %v6652_v60 }
 0x63f   : > { %v5442_v21 = vpop.f32.mrb[20].mxu1 }
 0x640   : > { %v3396_v7 = vmul.f32 %v5830_v16, %v5442_v21  ;;  %v3351_v43 = vpop.f32.mrb[21].mxu1 }
 0x641   : > { %v3394_v35 = vmul.f32 %v5832_v31, %v3351_v43  ;;  %v5443_v12 = vpop.f32.mrb[22].mxu1 }
 0x642   : > { %v3550_v37 = vcombine.low %v3388_v1, %v3396_v7  ;;  %v3551_v26 = vcombine.high %v3388_v1, %v3396_v7  ;;  %v3397_v27 = vmul.f32 %v5828_v11, %v5443_v12  ;;  %v3354_v33 = vpop.f32.mrb[23].mxu1 }
 0x643   : > { %v3414_v59 = vcombine.low %v3386_v19, %v3394_v35  ;;  %v3415_v20 = vcombine.high %v3386_v19, %v3394_v35  ;;  %v3395_v30 = vmul.f32 %v5824_v9, %v3354_v33 }
 0x644   : > { %v3558_v41 = vrot.slane %v3550_v37, %v6652_v60  ;;  %v3565_v22 = vrot.slane %v3551_v26, %v6652_v60  ;;  %v3618_v47 = vcombine.low %v3389_v38, %v3397_v27  ;;  %v3619_v48 = vcombine.high %v3389_v38, %v3397_v27 }
 0x645   : > { %v3422_v51 = vrot.slane %v3414_v59, %v6652_v60  ;;  %v3429_v45 = vrot.slane %v3415_v20, %v6652_v60  ;;  %v3482_v55 = vcombine.low %v3387_v8, %v3395_v30  ;;  %v3483_v46 = vcombine.high %v3387_v8, %v3395_v30 }
 0x646   : > { %v3566_v24 = vcombine.low %v3542_v44, %v3558_v41  ;;  %v3567_v36 = vcombine.high %v3542_v44, %v3558_v41  ;;  %v3582_v49 = vcombine.low %v3549_v63, %v3565_v22  ;;  %v3583_v50 = vcombine.high %v3549_v63, %v3565_v22 }
 0x647   : > { %v3430_v52 = vcombine.low %v3406_v25, %v3422_v51  ;;  %v3431_v34 = vcombine.high %v3406_v25, %v3422_v51  ;;  %v3446_v53 = vcombine.low %v3413_v28, %v3429_v45  ;;  %v3447_v54 = vcombine.high %v3413_v28, %v3429_v45 }
 0x648   : > { %v3574_v4 = vrot.slane %v3566_v24, %v6655_v0  ;;  %v3581_v57 = vrot.slane %v3567_v36, %v6655_v0  ;;  %v3590_v61 = vrot.slane %v3582_v49, %v6655_v0  ;;  %v3597_v18 = vrot.slane %v3583_v50, %v6655_v0 }
 0x649   : > { %v3438_v58 = vrot.slane %v3430_v52, %v6655_v0  ;;  %v3445_v62 = vrot.slane %v3431_v34, %v6655_v0  ;;  %v3454_v56 = vrot.slane %v3446_v53, %v6655_v0  ;;  %v3461_v2 = vrot.slane %v3447_v54, %v6655_v0 }
 0x64a   : > { %v3806_v3 = vcombine.low %v3574_v4, %v3581_v57  ;;  %v5165_v5 = vcombine.high %v3574_v4, %v3581_v57  ;;  %v3822_v23 = vcombine.low %v3590_v61, %v3597_v18  ;;  %v5166_v6 = vcombine.high %v3590_v61, %v3597_v18 }
 0x64b   : > { %v3670_v9 = vcombine.low %v3438_v58, %v3445_v62  ;;  %v5161_v42 = vcombine.high %v3438_v58, %v3445_v62  ;;  %v3686_v11 = vcombine.low %v3454_v56, %v3461_v2  ;;  %v5162_v16 = vcombine.high %v3454_v56, %v3461_v2 }
 0x64c   : > { %v3626_v1 = vrot.slane %v3618_v47, %v6652_v60  ;;  %v3633_v19 = vrot.slane %v3619_v48, %v6652_v60  ;;  %v3490_v38 = vrot.slane %v3482_v55, %v6652_v60  ;;  %v3497_v8 = vrot.slane %v3483_v46, %v6652_v60 }
 0x64d   : > { %v7125_v21 = vrot.slane %v3806_v3, %v6652_v60  ;;  %v7128_v31 = vrot.slane %v5165_v5, %v6652_v60  ;;  %v7131_v44 = vrot.slane %v3822_v23, %v6652_v60  ;;  %v7134_v63 = vrot.slane %v5166_v6, %v6652_v60 }
 0x64e   : > { %v3634_v25 = vcombine.low %v7099_v29, %v3626_v1  ;;  %v3635_v7 = vcombine.high %v7099_v29, %v3626_v1  ;;  %v3650_v43 = vcombine.low %v7102_v32, %v3633_v19  ;;  %v3651_v28 = vcombine.high %v7102_v32, %v3633_v19 }
 0x64f   : > { %v3498_v35 = vcombine.low %v7105_v14, %v3490_v38  ;;  %v3499_v12 = vcombine.high %v7105_v14, %v3490_v38  ;;  %v3514_v37 = vcombine.low %v3481_v10, %v3497_v8  ;;  %v3515_v26 = vcombine.high %v3481_v10, %v3497_v8 }
 0x650   : > { %v3642_v27 = vrot.slane %v3634_v25, %v6655_v0  ;;  %v3649_v33 = vrot.slane %v3635_v7, %v6655_v0  ;;  %v3658_v59 = vrot.slane %v3650_v43, %v6655_v0  ;;  %v3665_v20 = vrot.slane %v3651_v28, %v6655_v0 }
 0x651   : > { %v3506_v29 = vrot.slane %v3498_v35, %v6655_v0  ;;  %v3513_v30 = vrot.slane %v3499_v12, %v6655_v0  ;;  %v3522_v32 = vrot.slane %v3514_v37, %v6655_v0  ;;  %v3529_v41 = vrot.slane %v3515_v26, %v6655_v0  ;;  %v5678_v35 = vld [vmem:[#allocation13 + $0x28] sm:$0xff]  }
 0x652   : > { %v3874_v22 = vcombine.low %v3642_v27, %v3649_v33  ;;  %v5167_v14 = vcombine.high %v3642_v27, %v3649_v33  ;;  %v3890_v47 = vcombine.low %v3658_v59, %v3665_v20  ;;  %v5168_v10 = vcombine.high %v3658_v59, %v3665_v20 }
 0x653   : > { %v3738_v48 = vcombine.low %v3506_v29, %v3513_v30  ;;  %v5163_v51 = vcombine.high %v3506_v29, %v3513_v30  ;;  %v3754_v45 = vcombine.low %v3522_v32, %v3529_v41  ;;  %v5164_v55 = vcombine.high %v3522_v32, %v3529_v41 }
 0x654   : > { %v3838_v46 = vcombine.low %v7125_v21, %v7128_v31  ;;  %v3854_v24 = vcombine.low %v7131_v44, %v7134_v63  ;;  %v3881_v36 = vrot.slane %v3874_v22, %v6652_v60  ;;  %v3889_v49 = vrot.slane %v5167_v14, %v6652_v60  ;;  %v5679_v22 = vld [vmem:[#allocation13 + $0x30] sm:$0xff]  }
 0x655   : > { %v3897_v50 = vrot.slane %v3890_v47, %v6652_v60  ;;  %v3905_v52 = vrot.slane %v5168_v10, %v6652_v60  ;;  %v3677_v34 = vrot.slane %v3670_v9, %v6652_v60  ;;  %v3685_v53 = vrot.slane %v5161_v42, %v6652_v60 }
 0x656   : > { %v7161_v54 = vrot.slane %v3838_v46, %v6655_v0  ;;  %v7164_v4 = vrot.slane %v3854_v24, %v6655_v0  ;;  %v3906_v57 = vcombine.low %v3881_v36, %v3889_v49  ;;  %v3693_v61 = vrot.slane %v3686_v11, %v6652_v60 }
 0x657   : > { %v3922_v18 = vcombine.low %v3897_v50, %v3905_v52  ;;  %v3701_v58 = vrot.slane %v5162_v16, %v6652_v60  ;;  %v3702_v62 = vcombine.low %v3677_v34, %v3685_v53  ;;  %v3745_v56 = vrot.slane %v3738_v48, %v6652_v60  ;;  %v5677_v16 = vld [vmem:[#allocation13 + $0x20] sm:$0xff]  }
 0x658   : > { %v3871_v2 = vcombine.high %v7161_v54, %v7164_v4  ;;  %v7172_v3 = vrot.slane %v3906_v57, %v6655_v0  ;;  %v3870_v5 = vcombine.low %v7161_v54, %v7164_v4  ;;  %v3753_v23 = vrot.slane %v5163_v51, %v6652_v60  ;;  %5452 = vmatprep.subr.bf16.mxu0 %v5677_v16  ;;  %v5169_v54 = vld [vmem:[%s7404_s17] ss:$0 sm:$0xff]  ;;  %s7409_s17 = sld [smem:[#allocation23_spill]] }
 0x659   : > { %v7178_v6 = vrot.slane %v3922_v18, %v6655_v0  ;;  %v7181_v9 = vrot.slane %v3702_v62, %v6655_v0  ;;  %v3718_v42 = vcombine.low %v3693_v61, %v3701_v58  ;;  %v3761_v11 = vrot.slane %v3754_v45, %v6652_v60  ;;  %5453 = vmatpush3.bf16.msra.mxu0 %v5677_v16 }
 0x65a   : > { %v3769_v1 = vrot.slane %v5164_v55, %v6652_v60  ;;  %v3770_v19 = vcombine.low %v3745_v56, %v3753_v23  ;;  %v3839_v38 = vcombine.high %v7125_v21, %v7128_v31  ;;  %v3855_v8 = vcombine.high %v7131_v44, %v7134_v63  ;;  %5454 = vmatprep.subr.bf16.mxu0 %v5678_v35 }
 0x65b   : > { %v3938_v25 = vcombine.low %v7172_v3, %v7178_v6  ;;  %v3939_v7 = vcombine.high %v7172_v3, %v7178_v6  ;;  %v7194_v43 = vrot.slane %v3718_v42, %v6655_v0  ;;  %v3907_v28 = vcombine.high %v3881_v36, %v3889_v49 }
 0x65c   : > { %v3778_v60 = vrot.slane %v3770_v19, %v6655_v0  ;;  %v3786_v12 = vcombine.low %v3761_v11, %v3769_v1  ;;  %v3853_v21 = vrot.slane %v3839_v38, %v6655_v0  ;;  %v3869_v31 = vrot.slane %v3855_v8, %v6655_v0 }
 0x65d   : > { %v5611_v44 = vpack.i.bf16 %v3939_v7, %v3871_v2  ;;  %v3735_v63 = vcombine.high %v7181_v9, %v7194_v43  ;;  %v3734_v37 = vcombine.low %v7181_v9, %v7194_v43  ;;  %v3921_v26 = vrot.slane %v3907_v28, %v6655_v0  ;;  %5455 = vmatpush3.bf16.msra.mxu0 %v5678_v35 }
 0x65e   : > { %v3794_v27 = vrot.slane %v3786_v12, %v6655_v0  ;;  %v3872_v33 = vcombine.low %v3853_v21, %v3869_v31  ;;  %v3923_v59 = vcombine.high %v3897_v50, %v3905_v52  ;;  %v3703_v20 = vcombine.high %v3677_v34, %v3685_v53  ;;  %5456 = vmatprep.subr.bf16.mxu0 %v5679_v22  ;;  %s5251_s10 = sshll.u32 %s7409_s17, 9 }
 0x65f   : > { %5612 = vrot.lane.b32.xlu1 %v5611_v44, %s6153_s13  ;;  %v3719_v29 = vcombine.high %v3693_v61, %v3701_v58  ;;  %v3771_v30 = vcombine.high %v3745_v56, %v3753_v23  ;;  %v3787_v32 = vcombine.high %v3761_v11, %v3769_v1  ;;  %v3873_v41 = vcombine.high %v3853_v21, %v3869_v31  ;;  %v5680_v61 = vld [vmem:[#allocation13 + $0x38] sm:$0xff]   ;;  %s7310_s24 = scalar_lea.hbm %s7410_s23, %s5251_s10 }
 0x660   : > { %v3802_v14 = vcombine.low %v3778_v60, %v3794_v27  ;;  %v3803_v47 = vcombine.high %v3778_v60, %v3794_v27  ;;  %v3937_v10 = vrot.slane %v3923_v59, %v6655_v0  ;;  %v3717_v48 = vrot.slane %v3703_v20, %v6655_v0 }
 0x661   : > { %v3733_v51 = vrot.slane %v3719_v29, %v6655_v0  ;;  %v3785_v45 = vrot.slane %v3771_v30, %v6655_v0  ;;  %v3801_v55 = vrot.slane %v3787_v32, %v6655_v0  ;;  %5457 = vmatpush3.bf16.msra.mxu0 %v5679_v22 }
 0x662   : > { %v5621_v46 = vpack.i.bf16 %v3803_v47, %v3735_v63  ;;  %v3940_v24 = vcombine.low %v3921_v26, %v3937_v10  ;;  %v3941_v36 = vcombine.high %v3921_v26, %v3937_v10  ;;  %5458 = vmatprep.subr.bf16.mxu0 %v5680_v61 }
 0x663   : > { %v3737_v49 = vcombine.high %v3717_v48, %v3733_v51  ;;  %v3805_v50 = vcombine.high %v3785_v45, %v3801_v55  ;;  %v3736_v52 = vcombine.low %v3717_v48, %v3733_v51  ;;  %v3804_v34 = vcombine.low %v3785_v45, %v3801_v55  ;;  %v2719_v48 = vld [vmem:[%s6493_s7 + $0x10] sm:$0xff] }
 0x664   : > { %5622 = vrot.lane.b32.xlu0 %v5621_v46, %s6153_s13  ;;  %v5616_v53 = vpack.i.bf16 %v3940_v24, %v3872_v33  ;;  %v5636_v57 = vpack.i.bf16 %v3941_v36, %v3873_v41  ;;  %v2718_v41 = vld [vmem:[%s6493_s7 + $0x8] sm:$0xff]  ;;  %v2720_v46 = vld [vmem:[%s6493_s7 + $0x18] sm:$0xff]  ;;  %v5681_v36 = vld [vmem:[#allocation14] ss:$16 sps:$4 sm:$0xff]  }
 0x665   : > { %v5631_v18 = vpack.i.bf16 %v3805_v50, %v3737_v49  ;;  %v5626_v58 = vpack.i.bf16 %v3804_v34, %v3736_v52  ;;  %5459 = vmatpush3.bf16.msra.mxu0 %v5680_v61  ;;  %v5683_v49 = vld [vmem:[#allocation14 + $0x4] ss:$16 sps:$4 sm:$0xff]   ;;  %v5684_v50 = vld [vmem:[#allocation14 + $0x8] ss:$16 sps:$4 sm:$0xff]   ;;  %v5686_v52 = vld [vmem:[#allocation14 + $0xc] ss:$16 sps:$4 sm:$0xff]  }
 0x666   : > { %5617 = vrot.lane.b32.xlu1 %v5616_v53, %s6152_s22  ;;  %v5689_v34 = vld [vmem:[#allocation14 + $0x24] ss:$16 sps:$4 sm:$0xff]   ;;  %4413 = vmatprep.subr.bf16.mxu1 %v5683_v49  ;;  %v5692_v53 = vld [vmem:[#allocation14 + $0x2c] ss:$16 sps:$4 sm:$0xff]   ;;  %v5690_v61 = vld [vmem:[#allocation14 + $0x28] ss:$16 sps:$4 sm:$0xff]  }
 0x667   : > { %4466 = vmatprep.subr.bf16.mxu0 %v5686_v52  ;;  %4414 = vmatpush1.bf16.msra.mxu1 %v5681_v36 }
 0x668   : > { %5632 = vrot.lane.b32.xlu0 %v5631_v18, %s6151_s20  ;;  %4415 = vmatprep.subr.bf16.mxu1 %v5689_v34 }
 0x66a   : > { %5627 = vrot.lane.b32.xlu1 %v5626_v58, %s6152_s22 }
 0x66e   : > { %5637 = vrot.lane.b32.xlu1 %v5636_v57, %s6151_s20  ;;  %v5687_v57 = vld [vmem:[#allocation14 + $0x20] ss:$16 sps:$4 sm:$0xff]   ;;  %s7407_s20 = sld [smem:[#allocation29_spill]] }
 0x66f   : > { %4416 = vmatpush1.bf16.msra.mxu1 %v5687_v57 }
 0x6d1   : > { %v5613_v0 = vpop.permute.xlu1 %5612 }
 0x6d2   : > { %v5615_v42 = vunpack.i.h.bf16 %v5613_v0  ;;  %v5614_v11 = vunpack.i.l.bf16 %v5613_v0 }
 0x6d4   : > { %v3993_v21 = vsel %vm2130_vm0, %v3938_v25, %v5615_v42 }
 0x6d6   : > { %v5623_v62 = vpop.permute.xlu0 %5622 }
 0x6d7   : > { %v5625_v2 = vunpack.i.h.bf16 %v5623_v62  ;;  %v5624_v23 = vunpack.i.l.bf16 %v5623_v62 }
 0x6d8   : > { %v5618_v56 = vpop.permute.xlu1 %5617 }
 0x6d9   : > { %v3991_v1 = vsel %vm2130_vm0, %v3802_v14, %v5625_v2  ;;  %v3990_v19 = vsel %vm2130_vm0, %v3734_v37, %v5624_v23  ;;  %v5620_v7 = vunpack.i.h.bf16 %v5618_v56  ;;  %v5619_v43 = vunpack.i.l.bf16 %v5618_v56 }
 0x6da   : > { %v5633_v9 = vpop.permute.xlu0 %5632  ;;  %v3992_v37 = vsel %vm2130_vm0, %v3870_v5, %v5614_v11  ;;  %v2717_v5 = vld [vmem:[%s6493_s7] sm:$0xff]  ;;  %s7406_s7 = sld [smem:[#allocation28_spill]] }
 0x6db   : > { %v5635_v28 = vunpack.i.h.bf16 %v5633_v9  ;;  %v5634_v35 = vunpack.i.l.bf16 %v5633_v9  ;;  %v3997_v59 = vsel %vm3994_vm1, %v3992_v37, %v5619_v43  ;;  %v3998_v3 = vsel %vm3994_vm1, %v3993_v21, %v5620_v7  ;;  %v5693_v43 = vld [vmem:[#allocation14 + $0x40] ss:$16 sps:$4 sm:$0xff]   ;;  %v5710_v37 = vld [vmem:[#allocation14 + $0x8c] ss:$16 sps:$4 sm:$0xff]  }
 0x6dc   : > { %v5628_v16 = vpop.permute.xlu1 %5627  ;;  %v5699_v21 = vld [vmem:[#allocation14 + $0x60] ss:$16 sps:$4 sm:$0xff]  }
 0x6dd   : > { %v5630_v38 = vunpack.i.h.bf16 %v5628_v16  ;;  %v5629_v8 = vunpack.i.l.bf16 %v5628_v16 }
 0x6df   : > { %v3995_v60 = vsel %vm3994_vm1, %v3990_v19, %v5629_v8  ;;  %v3996_v12 = vsel %vm3994_vm1, %v3991_v1, %v5630_v38 }
 0x6e0   : > { %v5638_v31 = vpop.permute.xlu1 %5637  ;;  %v4000_v44 = vsel %vm3999_vm2, %v3995_v60, %v5634_v35  ;;  %v4001_v63 = vsel %vm3999_vm2, %v3996_v12, %v5635_v28  ;;  %v5695_v28 = vld [vmem:[#allocation14 + $0x44] ss:$16 sps:$4 sm:$0xff]   ;;  %v5696_v35 = vld [vmem:[#allocation14 + $0x48] ss:$16 sps:$4 sm:$0xff]   ;;  %v5698_v60 = vld [vmem:[#allocation14 + $0x4c] ss:$16 sps:$4 sm:$0xff]  }
 0x6e1   : > { %v5640_v26 = vunpack.i.h.bf16 %v5638_v31  ;;  %v5639_v27 = vunpack.i.l.bf16 %v5638_v31  ;;  %v4004_v33 = vpack.c.bf16 %v4001_v63, %v4000_v44  ;;  %4417 = vmatprep.subr.bf16.mxu1 %v5695_v28  ;;  %v5701_v12 = vld [vmem:[#allocation14 + $0x64] ss:$16 sps:$4 sm:$0xff]   ;;  %v5704_v31 = vld [vmem:[#allocation14 + $0x6c] ss:$16 sps:$4 sm:$0xff]   ;;  %v5702_v44 = vld [vmem:[#allocation14 + $0x68] ss:$16 sps:$4 sm:$0xff]  }
 0x6e2   : > { %4418 = vmatpush1.bf16.msra.mxu1 %v5693_v43  ;;  %v5707_v63 = vld [vmem:[#allocation14 + $0x84] ss:$16 sps:$4 sm:$0xff]  }
 0x6e3   : > { %v4002_v6 = vsel %vm3999_vm2, %v3997_v59, %v5639_v27  ;;  %v4003_v25 = vsel %vm3999_vm2, %v3998_v3, %v5640_v26  ;;  %5460 = vmatprep.mubr.bf16.mxu0 %v4004_v33  ;;  %4419 = vmatprep.subr.bf16.mxu1 %v5701_v12  ;;  %v5705_v26 = vld [vmem:[#allocation14 + $0x80] ss:$16 sps:$4 sm:$0xff]   ;;  %v5708_v27 = vld [vmem:[#allocation14 + $0x88] ss:$16 sps:$4 sm:$0xff]   ;;  %v5713_v33 = vld [vmem:[#allocation14 + $0xa4] ss:$16 sps:$4 sm:$0xff]  }
 0x6e4   : > { %v4005_v20 = vpack.c.bf16 %v4003_v25, %v4002_v6  ;;  %v5716_v59 = vld [vmem:[#allocation14 + $0xac] ss:$16 sps:$4 sm:$0xff]   ;;  %v5711_v3 = vld [vmem:[#allocation14 + $0xa0] ss:$16 sps:$4 sm:$0xff]   ;;  %v5714_v6 = vld [vmem:[#allocation14 + $0xa8] ss:$16 sps:$4 sm:$0xff]  }
 0x6e5   : > { %v5719_v25 = vld [vmem:[#allocation14 + $0xc4] ss:$16 sps:$4 sm:$0xff]   ;;  %v5734_v12 = vld [vmem:[#allocation16 + $0xc8] sm:$0xff]  }
 0x6e6   : > { %5461 = vmatmul.mubr.bf16.vlgmr.msra.gmra.mrb[20].mxu0 %v4005_v20  ;;  %4420 = vmatpush1.bf16.msra.mxu1 %v5699_v21  ;;  %v5722_v20 = vld [vmem:[#allocation14 + $0xcc] ss:$16 sps:$4 sm:$0xff]  }
 0x6e7   : > { %4498 = vmatprep.mubr.bf16.mxu0 %v6150_v39  ;;  %4467 = vmatpush1.bf16.msra.mxu0 %v5684_v50 }
 0x6e8   : > { %4468 = vmatprep.subr.bf16.mxu0 %v5692_v53  ;;  %4421 = vmatprep.subr.bf16.mxu1 %v5707_v63  ;;  %v5738_v63 = vld [vmem:[#allocation16 + $0xd0] sm:$0xff]  }
 0x6ea   : > { %4422 = vmatpush1.bf16.msra.mxu1 %v5705_v26 }
 0x6eb   : > { %4469 = vmatpush1.bf16.msra.mxu0 %v5690_v61  ;;  %4423 = vmatprep.subr.bf16.mxu1 %v5713_v33  ;;  %v5740_v33 = vld [vmem:[#allocation16 + $0x90] sm:$0xff]  }
 0x6ec   : > { %4470 = vmatprep.subr.bf16.mxu0 %v5698_v60  ;;  %v5733_v60 = vld [vmem:[#allocation16 + $0x48] sm:$0xff]  }
 0x6ee   : > { %4424 = vmatpush1.bf16.msra.mxu1 %v5711_v3  ;;  %v5742_v3 = vld [vmem:[#allocation16 + $0xd8] sm:$0xff]  }
 0x6ef   : > { %4471 = vmatpush1.bf16.msra.mxu0 %v5696_v35  ;;  %4425 = vmatprep.subr.bf16.mxu1 %v5719_v25  ;;  %v5731_v35 = vld [vmem:[#allocation16] sm:$0xff]  }
 0x6f0   : > { %4472 = vmatprep.subr.bf16.mxu0 %v5704_v31  ;;  %v5745_v25 = vld [vmem:[#allocation16 + $0x60] sm:$0xff]  }
 0x6f3   : > { %4473 = vmatpush1.bf16.msra.mxu0 %v5702_v44  ;;  %v5736_v44 = vld [vmem:[#allocation16 + $0x88] sm:$0xff]  }
 0x6f4   : > { %4474 = vmatprep.subr.bf16.mxu0 %v5710_v37 }
 0x6f7   : > { %4475 = vmatpush1.bf16.msra.mxu0 %v5708_v27  ;;  %v5739_v27 = vld [vmem:[#allocation16 + $0x10] sm:$0xff]  }
 0x6f8   : > { %4476 = vmatprep.subr.bf16.mxu0 %v5716_v59  ;;  %v5741_v59 = vld [vmem:[#allocation16 + $0x58] sm:$0xff]  }
 0x6fb   : > { %4477 = vmatpush1.bf16.msra.mxu0 %v5714_v6  ;;  %v5744_v6 = vld [vmem:[#allocation16 + $0x98] sm:$0xff]  }
 0x6fc   : > { %4478 = vmatprep.subr.bf16.mxu0 %v5722_v20  ;;  %v5746_v20 = vld [vmem:[#allocation16 + $0xe0] sm:$0xff]  }
 0x7b9   : > { %v5462_v4 = vpop.f32.mrb[20].mxu0 }
 0x7ba   : > { %v4111_v29 = vpop.f32.mrb[21].mxu0  ;;  %v4120_v14 = vadd.f32 %v5462_v4, %v5169_v54  ;;  %v5720_v4 = vld [vmem:[#allocation14 + $0xc8] ss:$16 sps:$4 sm:$0xff]  }
 0x7bb   : > { %v4112_v30 = vadd.f32 %v5169_v54, %v4111_v29  ;;  %v5463_v32 = vpop.f32.mrb[22].mxu0  ;;  %v5728_v29 = vld [vmem:[#allocation14 + $0xec] ss:$16 sps:$4 sm:$0xff]   ;;  %4479 = vmatpush1.bf16.msra.mxu0 %v5720_v4  ;;  %v5748_v4 = vld [vmem:[#allocation16 + $0xa0] sm:$0xff]  }
 0x7bc   : > { %v4114_v22 = vpop.f32.mrb[23].mxu0  ;;  %v7246_v45 = vadd.f32 %v4120_v14, %v2719_v48  ;;  %v4123_v55 = vadd.f32 %v5463_v32, %v5169_v54  ;;  %v5726_v32 = vld [vmem:[#allocation14 + $0xe8] ss:$16 sps:$4 sm:$0xff]   ;;  %4480 = vmatprep.subr.bf16.mxu0 %v5728_v29 }
 0x7bd   : > { %v7240_v47 = vadd.f32 %v4112_v30, %v2717_v5  ;;  %v4115_v10 = vadd.f32 %v5169_v54, %v4114_v22  ;;  %v5717_v54 = vld [vmem:[#allocation14 + $0xc0] ss:$16 sps:$4 sm:$0xff]   ;;  %v5725_v5 = vld [vmem:[#allocation14 + $0xe4] ss:$16 sps:$4 sm:$0xff]   ;;  %v5750_v29 = vld [vmem:[#allocation16 + $0xe8] sm:$0xff]  }
 0x7be   : > { %v7251_v24 = vadd.f32 %v4123_v55, %v2720_v46  ;;  %4426 = vmatpush1.bf16.msra.mxu1 %v5717_v54  ;;  %v5723_v30 = vld [vmem:[#allocation14 + $0xe0] ss:$16 sps:$4 sm:$0xff]  }
 0x7bf   : > { %v7243_v51 = vadd.f32 %v4115_v10, %v2718_v41  ;;  %4132 = vadd.xlane.f32.xlu0 %v7240_v47  ;;  %4427 = vmatprep.subr.bf16.mxu1 %v5725_v5  ;;  %v5729_v41 = vld [vmem:[#allocation16 + $0x40] sm:$0xff]   ;;  %v5749_v5 = vld [vmem:[#allocation16 + $0x68] sm:$0xff]  }
 0x7c0   : > { %v5730_v22 = vld [vmem:[#allocation16 + $0xc0] sm:$0xff]   ;;  %4481 = vmatpush1.bf16.msra.mxu0 %v5726_v32  ;;  %v5752_v32 = vld [vmem:[#allocation16 + $0xa8] sm:$0xff]  }
 0x7c1   : > { %4134 = vadd.xlane.f32.xlu1 %v7243_v51  ;;  %5332 = vmatprep.subr.bf16.mxu0 %v5730_v22  ;;  %v5747_v54 = vld [vmem:[#allocation16 + $0x20] sm:$0xff]   ;;  %v5754_v22 = vld [vmem:[#allocation16 + $0xf0] sm:$0xff]  }
 0x7c2   : > { %4428 = vmatpush1.bf16.msra.mxu1 %v5723_v30  ;;  %v5751_v30 = vld [vmem:[#allocation16 + $0x28] sm:$0xff]  }
 0x7c3   : > { %4136 = vadd.xlane.f32.xlu0 %v7246_v45  ;;  %5304 = vmatprep.subr.bf16.mxu1 %v5729_v41  ;;  %v5753_v41 = vld [vmem:[#allocation16 + $0x70] sm:$0xff]  }
 0x7c7   : > { %4138 = vadd.xlane.f32.xlu0 %v7251_v24 }
 0x84c   : > { %v4133_v18 = vpop.xlane.xlu0 %4132 }
 0x84d   : > { %v4141_v58 = vmul.f32 0.0078125, %v4133_v18  ;;  %v5178_v18 = vld [vmem:[%s7405_s12] ss:$0 sm:$0xff] }
 0x84e   : > { %v4135_v0 = vpop.xlane.xlu1 %4134 }
 0x84f   : > { %v7255_v62 = vsub.f32 %v7240_v47, %v4141_v58  ;;  %v4142_v56 = vmul.f32 0.0078125, %v4135_v0 }
 0x850   : > { %v4137_v2 = vpop.xlane.xlu0 %4136 }
 0x851   : > { %v7258_v23 = vsub.f32 %v7243_v51, %v4142_v56  ;;  %v4143_v9 = vmul.f32 0.0078125, %v4137_v2  ;;  %v4149_v42 = vmul.f32 %v7255_v62, %v7255_v62 }
 0x853   : > { %v7263_v11 = vsub.f32 %v7246_v45, %v4143_v9  ;;  %4153 = vadd.xlane.f32.xlu0 %v4149_v42  ;;  %v4150_v16 = vmul.f32 %v7258_v23, %v7258_v23  ;;  %v5179_v42 = vld [vmem:[%s7406_s7] ss:$0 sm:$0xff]  ;;  %s4913_s7 = scalar_lea.sflag [#allocation7], %s6487_s1 }
 0x854   : > { %v4139_v1 = vpop.xlane.xlu0 %4138 }
 0x855   : > { %v4144_v19 = vmul.f32 0.0078125, %v4139_v1  ;;  %4155 = vadd.xlane.f32.xlu1 %v4150_v16  ;;  %v4151_v38 = vmul.f32 %v7263_v11, %v7263_v11 }
 0x857   : > { %v7270_v8 = vsub.f32 %v7251_v24, %v4144_v19  ;;  %4157 = vadd.xlane.f32.xlu0 %v4151_v38 }
 0x859   : > { %v4152_v7 = vmul.f32 %v7270_v8, %v7270_v8 }
 0x85b   : > { %4159 = vadd.xlane.f32.xlu1 %v4152_v7 }
 0x8e0   : > { %v4154_v14 = vpop.xlane.xlu0 %4153 }
 0x8e1   : > { %v4161_v10 = vmul.f32 0.0078125, %v4154_v14  ;;  %v5755_v14 = vld [vmem:[#allocation16 + $0x30] sm:$0xff]  }
 0x8e2   : > { %v4156_v48 = vpop.xlane.xlu1 %4155 }
 0x8e3   : > { %v4165_v55 = vadd.f32 1e-05, %v4161_v10  ;;  %v4162_v46 = vmul.f32 0.0078125, %v4156_v48  ;;  %v5756_v10 = vld [vmem:[#allocation16 + $0xb0] sm:$0xff]   ;;  %v5757_v48 = vld [vmem:[#allocation16 + $0x78] sm:$0xff]  }
 0x8e4   : > { %v4158_v36 = vpop.xlane.xlu0 %4157 }
 0x8e5   : > { %5833 = vrsqrt.f32 %v4165_v55  ;;  %v4166_v49 = vadd.f32 1e-05, %v4162_v46  ;;  %v4163_v50 = vmul.f32 0.0078125, %v4158_v36  ;;  %v5758_v55 = vld [vmem:[#allocation16 + $0xf8] sm:$0xff]  }
 0x8e6   : > { %v5759_v46 = vld [vmem:[#allocation16 + $0x38] sm:$0xff]  }
 0x8e7   : > { %5835 = vrsqrt.f32 %v4166_v49  ;;  %v4167_v52 = vadd.f32 1e-05, %v4163_v50  ;;  %v5760_v36 = vld [vmem:[#allocation16 + $0xb8] sm:$0xff]   ;;  %v4247_v50 = vsub.s32 3, %v6537_v13 }
 0x8e8   : > { %v4160_v34 = vpop.xlane.xlu1 %4159  ;;  %v4231_v49 = vld [vmem:[%s7407_s20] sm:$0xf]  ;;  %s6043_s20 = sshll.u32 %s6156_s16, 4  ;;  %s6044_s20 = int_to_ptr.vmem [resolvable:$false] %s6043_s20 }
 0x8e9   : > { %5837 = vrsqrt.f32 %v4167_v52  ;;  %v4164_v53 = vmul.f32 0.0078125, %v4160_v34  ;;  %v4236_v52 = vrot.slane %v4231_v49, %v671_v15  ;;  %v4244_v34 = vrot.slane %v4231_v49, %v679_v40  ;;  %s6045_s22 = scalar_lea.vmem %s6044_s20, 1024  ;;  %p6046_p10 = scmp.lt.s32.totalorder %s7304_s14, %s6044_s20 }
 0x8ea   : > { %p6047_p13 = scmp.lt.s32.totalorder %s6045_s22, %s6039_s15 }
 0x8eb   : > { %v4168_v57 = vadd.f32 1e-05, %v4164_v53  ;;  %v4240_v53 = vrot.slane %v4231_v49, %v675_v17 }
 0x8ec   : > { %p6048_p2 = por %p6047_p13, %p6046_p10 }
 0x8ed   : > { %5839 = vrsqrt.f32 %v4168_v57  ;;  %v4248_v57 = vrot.slane %v4231_v49, %v4247_v50 }
 0x8ee   : > { %p6049_p8 = pnand %p6048_p2, %p6042_p1 }
 0x8ef   : > { %v5834_v61 = vpop.eup %5833 }
 0x8f0   : > { %v4173_v58 = vmul.f32 %v5834_v61, %v7255_v62  ;;  %v5732_v62 = vld [vmem:[#allocation16 + $0x80] sm:$0xff]  }
 0x8f1   : > { %v5836_v0 = vpop.eup %5835 }
 0x8f2   : > { %v4174_v56 = vmul.f32 %v5836_v0, %v7258_v23  ;;  %v4183_v2 = vmul.f32 %v5178_v18, %v4173_v58 }
 0x8f3   : > { %v5838_v9 = vpop.eup %5837 }
 0x8f4   : > { %v4184_v16 = vmul.f32 %v5178_v18, %v4174_v56  ;;  %v4193_v1 = vadd.f32 %v5179_v42, %v4183_v2  ;;  %v4175_v38 = vmul.f32 %v5838_v9, %v7263_v11  ;;  %v5735_v11 = vld [vmem:[#allocation16 + $0x8] sm:$0xff]  }
 0x8f6   : > { %v4194_v19 = vadd.f32 %v5179_v42, %v4184_v16  ;;  %v4185_v23 = vmul.f32 %v5178_v18, %v4175_v38 }
 0x8f7   : > { %v5840_v7 = vpop.eup %5839 }
 0x8f8   : > { %v4197_v43 = vpack.c.bf16 %v4194_v19, %v4193_v1  ;;  %v4176_v28 = vmul.f32 %v5840_v7, %v7270_v8  ;;  %v5737_v8 = vld [vmem:[#allocation16 + $0x50] sm:$0xff]   ;;  %v4195_v37 = vadd.f32 %v5179_v42, %v4185_v23 }
 0x8fa   : > { %4446 = vmatmul.mubr.bf16.vlgmr.msra.gmra.mrb[24].mxu1 %v4197_v43  ;;  %4499 = vmatmul.mubr.bf16.vlgmr.msra.gmra.mrb[24].mxu0 %v4197_v43  ;;  %v4186_v21 = vmul.f32 %v5178_v18, %v4176_v28 }
 0x8fb   : > { %4455 = vmatprep.mubr.bf16.mxu1 %v6150_v39  ;;  %4508 = vmatprep.mubr.bf16.mxu0 %v6150_v39  ;;  %v5743_v39 = vld [vmem:[#allocation16 + $0x18] sm:$0xff]  }
 0x8fc   : > { %v4196_v31 = vadd.f32 %v5179_v42, %v4186_v21  ;;  %5305 = vmatpush3.bf16.msra.mxu1 %v5731_v35  ;;  %5333 = vmatpush3.bf16.msra.mxu0 %v5732_v62 }
 0x8fd   : > { %5306 = vmatprep.subr.bf16.mxu1 %v5733_v60  ;;  %5334 = vmatprep.subr.bf16.mxu0 %v5734_v12 }
 0x8fe   : > { %v4198_v26 = vpack.c.bf16 %v4196_v31, %v4195_v37 }
 0x900   : > { %5307 = vmatpush3.bf16.msra.mxu1 %v5735_v11  ;;  %5335 = vmatpush3.bf16.msra.mxu0 %v5736_v44 }
 0x901   : > { %5308 = vmatprep.subr.bf16.mxu1 %v5737_v8  ;;  %5336 = vmatprep.subr.bf16.mxu0 %v5738_v63 }
 0x902   : > { %4456 = vmatmul.mubr.bf16.gmra.mrb[28].mxu1 %v4198_v26  ;;  %4509 = vmatmul.mubr.bf16.gmra.mrb[28].mxu0 %v4198_v26 }
 0x904   : > { %5309 = vmatpush3.bf16.msra.mxu1 %v5739_v27  ;;  %5337 = vmatpush3.bf16.msra.mxu0 %v5740_v33 }
 0x905   : > { %5310 = vmatprep.subr.bf16.mxu1 %v5741_v59  ;;  %5338 = vmatprep.subr.bf16.mxu0 %v5742_v3 }
 0x908   : > { %5311 = vmatpush3.bf16.msra.mxu1 %v5743_v39  ;;  %5339 = vmatpush3.bf16.msra.mxu0 %v5744_v6 }
 0x909   : > { %5312 = vmatprep.subr.bf16.mxu1 %v5745_v25  ;;  %5340 = vmatprep.subr.bf16.mxu0 %v5746_v20 }
 0x90c   : > { %5313 = vmatpush3.bf16.msra.mxu1 %v5747_v54  ;;  %5341 = vmatpush3.bf16.msra.mxu0 %v5748_v4 }
 0x90d   : > { %5314 = vmatprep.subr.bf16.mxu1 %v5749_v5  ;;  %5342 = vmatprep.subr.bf16.mxu0 %v5750_v29 }
 0x910   : > { %5315 = vmatpush3.bf16.msra.mxu1 %v5751_v30  ;;  %5343 = vmatpush3.bf16.msra.mxu0 %v5752_v32 }
 0x911   : > { %5316 = vmatprep.subr.bf16.mxu1 %v5753_v41  ;;  %5344 = vmatprep.subr.bf16.mxu0 %v5754_v22 }
 0x914   : > { %5317 = vmatpush3.bf16.msra.mxu1 %v5755_v14  ;;  %5345 = vmatpush3.bf16.msra.mxu0 %v5756_v10 }
 0x915   : > { %5318 = vmatprep.subr.bf16.mxu1 %v5757_v48  ;;  %5346 = vmatprep.subr.bf16.mxu0 %v5758_v55 }
 0x918   : > { %5319 = vmatpush3.bf16.msra.mxu1 %v5759_v46  ;;  %5347 = vmatpush3.bf16.msra.mxu0 %v5760_v36 }
 0x9cd   : > { %v4447_v61 = vpop.f32.mrb[24].mxu1  ;;  %v4500_v18 = vpop.f32.mrb[24].mxu0 }
 0x9ce   : > { %v4448_v58 = vadd.f32 %v4447_v61, %v4236_v52  ;;  %v4501_v0 = vadd.f32 %v4500_v18, %v4244_v34  ;;  %v4449_v56 = vpop.f32.mrb[25].mxu1  ;;  %v4502_v2 = vpop.f32.mrb[25].mxu0 }
 0x9cf   : > { %v4450_v9 = vadd.f32 %v4449_v56, %v4240_v53  ;;  %v4503_v42 = vadd.f32 %v4502_v2, %v4248_v57  ;;  %v4451_v16 = vpop.f32.mrb[26].mxu1  ;;  %v4504_v1 = vpop.f32.mrb[26].mxu0 }
 0x9d0   : > { %v4452_v19 = vadd.f32 %v4451_v16, %v4236_v52  ;;  %v4505_v38 = vadd.f32 %v4504_v1, %v4244_v34  ;;  %v4453_v15 = vpop.f32.mrb[27].mxu1  ;;  %v4506_v7 = vpop.f32.mrb[27].mxu0  ;;  %v4519_v28 = vmax.f32 %v4448_v58, 0.0  ;;  %v4521_v13 = vmax.f32 %v4501_v0, 0.0 }
 0x9d1   : > { %v4454_v43 = vadd.f32 %v4453_v15, %v4240_v53  ;;  %v4507_v40 = vadd.f32 %v4506_v7, %v4248_v57  ;;  %v4520_v62 = vmax.f32 %v4450_v9, 0.0  ;;  %v4522_v60 = vmax.f32 %v4503_v42, 0.0 }
 0x9d2   : > { %v4523_v17 = vmax.f32 %v4452_v19, 0.0  ;;  %v4525_v35 = vmax.f32 %v4505_v38, 0.0 }
 0x9d3   : > { %v4524_v12 = vmax.f32 %v4454_v43, 0.0  ;;  %v4526_v23 = vmax.f32 %v4507_v40, 0.0 }
 0x9d4   : > { %v4535_v21 = vpack.c.bf16 %v4523_v17, %v4519_v28  ;;  %v4537_v31 = vpack.c.bf16 %v4525_v35, %v4521_v13 }
 0x9d5   : > { %v4536_v11 = vpack.c.bf16 %v4524_v12, %v4520_v62  ;;  %v4538_v44 = vpack.c.bf16 %v4526_v23, %v4522_v60  ;;  %v4457_v8 = vpop.f32.mrb[28].mxu1  ;;  %v4510_v63 = vpop.f32.mrb[28].mxu0 }
 0x9d6   : > { %v4458_v37 = vadd.f32 %v4457_v8, %v4236_v52  ;;  %v4511_v26 = vadd.f32 %v4510_v63, %v4244_v34  ;;  %v4459_v27 = vpop.f32.mrb[29].mxu1  ;;  %v4512_v33 = vpop.f32.mrb[29].mxu0 }
 0x9d7   : > { %v4460_v59 = vadd.f32 %v4459_v27, %v4240_v53  ;;  %v4513_v3 = vadd.f32 %v4512_v33, %v4248_v57  ;;  %v4461_v39 = vpop.f32.mrb[30].mxu1  ;;  %v4514_v6 = vpop.f32.mrb[30].mxu0  ;;  %4838 = vmatprep.mubr.bf16.mxu1 %v4536_v11  ;;  %4887 = vmatprep.mubr.bf16.mxu0 %v4538_v44 }
 0x9d8   : > { %v4462_v25 = vadd.f32 %v4461_v39, %v4236_v52  ;;  %v4515_v20 = vadd.f32 %v4514_v6, %v4244_v34  ;;  %v4463_v54 = vpop.f32.mrb[31].mxu1  ;;  %v4516_v4 = vpop.f32.mrb[31].mxu0  ;;  %4839 = vmatmul.mubr.bf16.vlgmr.msra.gmra.mrb[32].mxu1 %v4535_v21  ;;  %4888 = vmatmul.mubr.bf16.vlgmr.msra.gmra.mrb[32].mxu0 %v4537_v31  ;;  %v4527_v30 = vmax.f32 %v4458_v37, 0.0  ;;  %v4529_v32 = vmax.f32 %v4511_v26, 0.0 }
 0x9d9   : > { %v4464_v5 = vadd.f32 %v4463_v54, %v4240_v53  ;;  %v4517_v29 = vadd.f32 %v4516_v4, %v4248_v57  ;;  %v4528_v14 = vmax.f32 %v4460_v59, 0.0  ;;  %v4530_v10 = vmax.f32 %v4513_v3, 0.0  ;;  %v5212_v53 = vld [vmem:[%s7408_s19] ss:$0 sm:$0xff] }
 0x9da   : > { %v4531_v41 = vmax.f32 %v4462_v25, 0.0  ;;  %v4533_v22 = vmax.f32 %v4515_v20, 0.0 }
 0x9db   : > { %v4532_v48 = vmax.f32 %v4464_v5, 0.0  ;;  %v4534_v55 = vmax.f32 %v4517_v29, 0.0 }
 0x9dc   : > { %v4539_v46 = vpack.c.bf16 %v4531_v41, %v4527_v30  ;;  %v4541_v36 = vpack.c.bf16 %v4533_v22, %v4529_v32 }
 0x9dd   : > { %v4540_v49 = vpack.c.bf16 %v4532_v48, %v4528_v14  ;;  %v4542_v50 = vpack.c.bf16 %v4534_v55, %v4530_v10 }
 0x9df   : > { %4846 = vmatprep.mubr.bf16.mxu1 %v4540_v49  ;;  %4895 = vmatprep.mubr.bf16.mxu0 %v4542_v50 }
 0x9e0   : > { %4847 = vmatmul.mubr.bf16.gmra.mrb[36].mxu1 %v4539_v46  ;;  %4896 = vmatmul.mubr.bf16.gmra.mrb[36].mxu0 %v4541_v36 }
 0xaab   : > { %v5320_v52 = vpop.f32.mrb[32].mxu1  ;;  %v5348_v34 = vpop.f32.mrb[32].mxu0 }
 0xaac   : > { %v5321_v57 = vpop.f32.mrb[33].mxu1  ;;  %v5349_v61 = vpop.f32.mrb[33].mxu0 }
 0xaad   : > { %v5322_v18 = vadd.f32 %v5321_v57, %v5320_v52  ;;  %v5350_v58 = vadd.f32 %v5349_v61, %v5348_v34  ;;  %v5323_v0 = vpop.f32.mrb[34].mxu1  ;;  %v5351_v56 = vpop.f32.mrb[34].mxu0 }
 0xaae   : > { %v5324_v2 = vpop.f32.mrb[35].mxu1  ;;  %v5352_v9 = vpop.f32.mrb[35].mxu0 }
 0xaaf   : > { %v4841_v42 = vadd.f32 %v5322_v18, %v5212_v53  ;;  %v5325_v16 = vadd.f32 %v5324_v2, %v5323_v0  ;;  %v5353_v1 = vadd.f32 %v5352_v9, %v5351_v56 }
 0xab1   : > { %v4890_v19 = vadd.f32 %v5350_v58, %v4841_v42  ;;  %v4844_v38 = vadd.f32 %v5325_v16, %v5212_v53 }
 0xab3   : > { %v4904_v15 = vadd.f32 %v4890_v19, %v7240_v47  ;;  %v4893_v7 = vadd.f32 %v5353_v1, %v4844_v38  ;;  %v5326_v43 = vpop.f32.mrb[36].mxu1  ;;  %v5354_v40 = vpop.f32.mrb[36].mxu0 }
 0xab4   : > { %v5327_v28 = vpop.f32.mrb[37].mxu1  ;;  %v5355_v13 = vpop.f32.mrb[37].mxu0 }
 0xab5   : > { %4908 = vst [vmem:[%s555_s21] sm:$0xff] %v4904_v15  ;;  %v4905_v17 = vadd.f32 %v4893_v7, %v7243_v51  ;;  %v5328_v35 = vadd.f32 %v5327_v28, %v5326_v43  ;;  %v5356_v62 = vadd.f32 %v5355_v13, %v5354_v40  ;;  %v5329_v60 = vpop.f32.mrb[38].mxu1  ;;  %v5357_v12 = vpop.f32.mrb[38].mxu0 }
 0xab6   : > { %v5330_v23 = vpop.f32.mrb[39].mxu1  ;;  %v5358_v21 = vpop.f32.mrb[39].mxu0 }
 0xab7   : > { %4909 = vst [vmem:[%s555_s21 + $0x8] sm:$0xff] %v4905_v17  ;;  %v4849_v47 = vadd.f32 %v5328_v35, %v5212_v53  ;;  %v5331_v31 = vadd.f32 %v5330_v23, %v5329_v60  ;;  %v5359_v11 = vadd.f32 %v5358_v21, %v5357_v12 }
 0xab9   : > { %v4898_v44 = vadd.f32 %v5356_v62, %v4849_v47  ;;  %v4852_v8 = vadd.f32 %v5331_v31, %v5212_v53 }
 0xabb   : > { %v4906_v51 = vadd.f32 %v4898_v44, %v7246_v45  ;;  %v4901_v63 = vadd.f32 %v5359_v11, %v4852_v8 }
 0xabd   : > { %4910 = vst [vmem:[%s555_s21 + $0x10] sm:$0xff] %v4906_v51  ;;  %v4907_v37 = vadd.f32 %v4901_v63, %v7251_v24 }
 0xabf   : > { %4911 = vst [vmem:[%s555_s21 + $0x18] sm:$0xff] %v4907_v37 }
 0xac0   : > { %6052 = shalt.err (!%p6049_p8)
}
 0xac1   : > { %s6053_s13 = scalar_lea.hbm %s7310_s24, 512  ;;  %s6057_s17 = scalar_lea.hbm %s7410_s23, 1024 }
 0xac2   : > { %p6054_p9 = scmp.ne.s32.totalorder %s7310_s24, %s6053_s13  ;;  %p6058_p3 = scmp.lt.u32.totalorder %s7310_s24, %s7410_s23 }
 0xac3   : > { %p6059_p7 = scmp.lt.u32.totalorder %s6057_s17, %s6053_s13  ;;  %p6061_p11 = scmp.lt.u32.totalorder %s6053_s13, %s7310_s24 }
 0xac4   : > { %p6055_p4 = pnand %p6054_p9, %p7411_p0 }
 0xac5   : > { %p6060_p12 = por %p6059_p7, %p6058_p3 }
 0xac6   : > { %p6056_p6 = pneg %p6055_p4 }
 0xac7   : > { %p6062_p5 = por %p6061_p11, %p6060_p12 }
 0xac9   : > { %p6063_p1 = pnand %p6062_p5, %p6056_p6 }
 0xacb   : > { %6066 = shalt.err (!%p6063_p1)
}
 0xacc   : > { %s6157_s12 = smov 128   ;;  %s6158_s15 = smov 8  }
 0xacd   : > { %5498 = dma.vmem_to_hbm [thread:$0]  (%p7411_p0), %s7304_s14, 512, %s7310_s24, %s4913_s7, %s6157_s12, %s6157_s12, %s6158_s15  }
 0xace PF: > { %s4943_s16 = sand.u32 1, %s6113_s25   ;;  %p7412_p10 = scmp.ne.s32.totalorder %s7400_s6, 0 }
 0xacf   : > { %p7413_p13 = scmp.ge.s32.totalorder %s6133_s30, 2  ;;  %s4944_s20 = scalar_lea.sflag [#allocation7], %s4943_s16 }
 0xad1   : > { %p5524_p2 = pnand %p7413_p13, %p7412_p10 }
 0xad3   : > { %6108 = dma.done.wait (!%p5524_p2), %s4944_s20, 512  }
 0xad4   : > { %6110 = vsyncadd (!%p5524_p2), %s4944_s20, 4294966784  ;;  %s32_s30 = sadd.s32 1, %s6133_s30   ;;  %s7414_s3 = smov %s7421_s28 }
 0xad5   : > { %p29_p8 = scmp.ge.s32.totalorder %s32_s30, 4   ;;  %s7415_s25 = smov %s6117_s26 }
 0xad6   : > { %s7416_s26 = smov %s6121_s27  ;;  %s7417_s27 = smov %s6434_s8 }
 0xad7   : > { %s7418_s28 = smov %s6129_s29  ;;  %s7419_s29 = smov %s7414_s3 }
 0xad8   :  { %31 = sbr.rel (!%p29_p8) target bundleno = 18 (0x12), region = 147 }
 0xadf   :  { %4949 = vsyncpa [#allocation6], 1 }
 0xae0   :  { %4951 = vsyncpa [#allocation6 + $0x1], 1 }
 0xae1   :  { %4952 = vsyncpa [#allocation9], 1 }
 0xae2   :  { %4953 = vsyncpa [#allocation12], 1 }
 0xae3   :  { %4954 = vsyncpa [#allocation15], 1 }
 0xae4   :  { %4955 = vsyncpa [#allocation7], 1 }
 0xae5   :  { %4957 = vsyncpa [#allocation7 + $0x1], 1 }

</bundles_post_ra>
